<compile_context>
chip_gen: v7x
topology: tpu7x:2x2x1
jax: 0.10.0
libtpu: 0.0.40
codegen_flags: <defaults>
</compile_context>

<pallas_src>
import functools
import numpy as np
import jax
import jax.numpy as jnp
from jax.experimental import pallas as pl
from jax.experimental.pallas import tpu as pltpu


# ----------------------------------------------------------------------------
# Config / mask construction (mirrors the PyTorch helpers; host-side numpy glue)
# ----------------------------------------------------------------------------
def config_list(size, stride):
    record = []
    s = stride
    for p in range(1, size // 2):
        for d in range(1, 2 * p + s - 1 + 16):
            if (2 * p + s - 1) % d != 0:
                continue
            record.append([d, (2 * p + s - 1) // d + 1])
    return record


def get_mask(size, dilation_size=(1, 1), kernel_size=(3, 3)):
    size1, size2 = size[-2:]
    mask = np.zeros((*size[:-2], size1 + 1, size2 + 1), dtype=np.float32)
    k_s_1, k_s_2 = kernel_size
    d_s_1, d_s_2 = dilation_size
    k_1 = (k_s_1 - 1) * (d_s_1 - 1) + k_s_1
    k_2 = (k_s_2 - 1) * (d_s_2 - 1) + k_s_2
    start_1 = (size1 - k_1) // 2 + 1
    end_1 = (size1 + k_1) // 2 + 1
    start_2 = (size2 - k_2) // 2 + 1
    end_2 = (size2 + k_2) // 2 + 1
    mask[..., start_1:end_1:d_s_1, start_2:end_2:d_s_2] = 1.0
    return mask


def build_mask(in_planes, out_planes, w, h, cfg):
    masks = [get_mask((out_planes, in_planes, w, h), (d, d), (k, k)) for d, k in cfg]
    return np.concatenate(masks, axis=0)  # (out_planes*len(cfg), in_planes, w+1, h+1)


# ----------------------------------------------------------------------------
# Fused Pallas kernel: masked-conv GEMM + BN statistics + BN apply + tanh
# ----------------------------------------------------------------------------
def _fused_conv_bn_tanh_kernel(x_ref, w_ref, gamma_ref, beta_ref, y_ref,
                               sum_ref, sq_ref, *, tm, count, eps):
    # x_ref:     (tm, Kp)   bf16 im2col row tile
    # w_ref:     (Kp, OCp)  bf16 masked flattened weights (resident, constant block)
    # gamma/beta:(1, OCp)   f32 BN affine parameters
    # y_ref:     (Mp, OCp)  f32 full output block, resident in VMEM across the grid
    # sum/sq:    (1, OCp)   f32 per-channel accumulators (scratch)
    i = pl.program_id(0)

    @pl.when(i == 0)
    def _init():
        sum_ref[...] = jnp.zeros_like(sum_ref)
        sq_ref[...] = jnp.zeros_like(sq_ref)

    # Masked-conv GEMM for this row tile (bf16 operands, f32 accumulation on the MXU).
    acc = jnp.dot(x_ref[...], w_ref[...], preferred_element_type=jnp.float32)

    # Stash conv result into the VMEM-resident output block; accumulate channel stats.
    row = pl.multiple_of(i * tm, tm)
    y_ref[pl.ds(row, tm), :] = acc
    sum_ref[...] = sum_ref[...] + jnp.sum(acc, axis=0, keepdims=True)
    sq_ref[...] = sq_ref[...] + jnp.sum(acc * acc, axis=0, keepdims=True)

    # After the last tile the batch statistics are complete: BN + tanh in place,
    # only the final activations are written back to HBM.
    @pl.when(i == pl.num_programs(0) - 1)
    def _finalize():
        inv_n = 1.0 / count
        mean = sum_ref[...] * inv_n
        var = jnp.maximum(sq_ref[...] * inv_n - mean * mean, 0.0)  # biased variance
        scale = gamma_ref[...] * jax.lax.rsqrt(var + eps)
        shift = beta_ref[...] - mean * scale
        y_ref[...] = jnp.tanh(y_ref[...] * scale + shift)


def _round_up(x, m):
    return (x + m - 1) // m * m


def _pick_tile(m_rows, k_pad, oc_pad, vmem_budget_bytes=12 * 1024 * 1024):
    """Largest row tile whose double-buffered operands + resident output fit the budget."""
    for tm in (512, 256, 128, 64, 32, 16, 8):
        m_pad = _round_up(m_rows, tm)
        x_bytes = 2 * tm * k_pad * 2        # bf16 im2col tile, double-buffered
        w_bytes = 2 * k_pad * oc_pad * 2    # bf16 weights (conservative 2x)
        y_bytes = m_pad * oc_pad * 4        # f32 conv/activation block, VMEM-resident
        misc = 8 * oc_pad * 4               # stats accumulators, gamma/beta
        if x_bytes + w_bytes + y_bytes + misc <= vmem_budget_bytes:
            return tm
    return 8


# ----------------------------------------------------------------------------
# Forward wrapper (= Unified_Conv2d_Block.forward)
# ----------------------------------------------------------------------------
def unified_conv2d_block_forward(x, weight, mask, gamma, beta, *,
                                 registered_w, registered_h, stride, eps=1e-5):
    s1, s2 = stride
    N, C, H, W = x.shape
    OC, IC, KH, KW = weight.shape

    # F.pad(input, (h//2, h//2, w//2, w//2), mode='circular'); F.pad pads last dim first.
    ph, pw = registered_h // 2, registered_w // 2
    xp = jnp.pad(x, ((0, 0), (0, 0), (pw, pw), (ph, ph)), mode="wrap")
    xp = xp.astype(jnp.bfloat16)  # bf16 GEMM operands (accumulation stays f32 in-kernel)
    Hp, Wp = xp.shape[-2:]
    OH = (Hp - KH) // s1 + 1
    OW = (Wp - KW) // s2 + 1

    # im2col gather (XLA glue): rows = flattened (n, oh, ow), cols = (c, kh, kw).
    # TODO(synk): build the im2col tile inside the kernel from a VMEM-resident padded
    # input; Mosaic has no efficient dynamic gather and fully unrolling C*KH*KW slices
    # explodes compile time, so the gather stays as XLA glue (done in bf16 to halve the
    # HBM traffic it generates).
    r = (jnp.arange(OH) * s1)[:, None] + jnp.arange(KH)[None, :]       # (OH, KH)
    c = (jnp.arange(OW) * s2)[:, None] + jnp.arange(KW)[None, :]       # (OW, KW)
    patches = xp[:, :, r[:, None, :, None], c[None, :, None, :]]       # (N,C,OH,OW,KH,KW)
    x_col = patches.transpose(0, 2, 3, 1, 4, 5).reshape(N * OH * OW, C * KH * KW)

    M, K = x_col.shape
    # Pad: lane-dense output channels (-> mult of 128), vreg-aligned K (-> mult of 128),
    # rows to a tile multiple (zero rows are exact for the GEMM and add 0 to the stats).
    OCp = _round_up(OC, 128)
    Kp = _round_up(K, 128)
    tm = _pick_tile(M, Kp, OCp)
    Mp = _round_up(M, tm)

    x_col = jnp.pad(x_col, ((0, Mp - M), (0, Kp - K)))
    w_flat = jnp.pad((weight * mask).reshape(OC, IC * KH * KW).T,
                     ((0, Kp - K), (0, OCp - OC))).astype(jnp.bfloat16)
    gamma_p = jnp.pad(gamma.astype(jnp.float32), (0, OCp - OC),
                      constant_values=1.0).reshape(1, OCp)
    beta_p = jnp.pad(beta.astype(jnp.float32), (0, OCp - OC)).reshape(1, OCp)

    kernel = functools.partial(_fused_conv_bn_tanh_kernel,
                               tm=tm, count=float(M), eps=float(eps))

    y_flat = pl.pallas_call(
        kernel,
        out_shape=jax.ShapeDtypeStruct((Mp, OCp), jnp.float32),
        grid=(Mp // tm,),
        in_specs=[
            pl.BlockSpec((tm, Kp), lambda i: (i, 0)),     # im2col row tile
            pl.BlockSpec((Kp, OCp), lambda i: (0, 0)),    # masked weights (constant block)
            pl.BlockSpec((1, OCp), lambda i: (0, 0)),     # gamma
            pl.BlockSpec((1, OCp), lambda i: (0, 0)),     # beta
        ],
        # Whole padded output resident in VMEM across the grid (written back once).
        out_specs=pl.BlockSpec((Mp, OCp), lambda i: (0, 0)),
        scratch_shapes=[
            pltpu.VMEM((1, OCp), jnp.float32),   # per-channel sum
            pltpu.VMEM((1, OCp), jnp.float32),   # per-channel sum of squares
        ],
        compiler_params=pltpu.CompilerParams(
            dimension_semantics=("arbitrary",),   # resident accumulators / output
            vmem_limit_bytes=32 * 1024 * 1024,
        ),
    )(x_col, w_flat, gamma_p, beta_p)

    # Strip padding, back to NCHW.
    return y_flat[:M, :OC].reshape(N, OH, OW, OC).transpose(0, 3, 1, 2)


# ----------------------------------------------------------------------------
if __name__ == "__main__":
    N, IN_PLANES, OU_PLANES = 2, 4, 2
    SIZE, STRIDE = 16, 1

    cfg = config_list(SIZE, STRIDE)                        # 27 (dilation, kernel) configs
    mask_np = build_mask(IN_PLANES, OU_PLANES, SIZE, SIZE, cfg)
    OC, IC, KH, KW = mask_np.shape                         # (54, 4, 17, 17)

    key = jax.random.PRNGKey(0)
    kx, kw = jax.random.split(key)
    x = jax.random.normal(kx, (N, IN_PLANES, SIZE, SIZE), dtype=jnp.float32)
    weight = 0.05 * jax.random.normal(kw, (OC, IC, KH, KW), dtype=jnp.float32)
    mask = jnp.asarray(mask_np)
    gamma = jnp.ones((OC,), jnp.float32)    # BatchNorm2d weight init
    beta = jnp.zeros((OC,), jnp.float32)    # BatchNorm2d bias init

    fwd = jax.jit(functools.partial(
        unified_conv2d_block_forward,
        registered_w=SIZE, registered_h=SIZE, stride=(STRIDE, STRIDE)))

    y = jax.block_until_ready(fwd(x, weight, mask, gamma, beta))

    # Plain-JAX f32 reference (same semantics as the PyTorch forward).
    w_masked = weight * mask
    xp = jnp.pad(x, ((0, 0), (0, 0), (SIZE // 2, SIZE // 2), (SIZE // 2, SIZE // 2)),
                 mode="wrap")
    ref_conv = jax.lax.conv_general_dilated(
        xp, w_masked, (STRIDE, STRIDE), "VALID",
        dimension_numbers=("NCHW", "OIHW", "NCHW"),
        precision=jax.lax.Precision.HIGHEST)
    mu = ref_conv.mean(axis=(0, 2, 3), keepdims=True)
    var = ((ref_conv - mu) ** 2).mean(axis=(0, 2, 3), keepdims=True)
    ref = jnp.tanh((ref_conv - mu) / jnp.sqrt(var + 1e-5))

    assert y.shape == (N, OC, SIZE // STRIDE, SIZE // STRIDE), y.shape
    err = float(jnp.max(jnp.abs(y - ref)))
    # Tolerance slightly relaxed vs the pure-f32 path: GEMM operands are bf16
    # (f32 accumulation); post-BN error stays well inside this bound.
    assert err < 2.5e-2, f"max abs err {err}"
    print("KERNEL_OK")
</pallas_src>

<mosaic_0001>
module attributes {stable_mosaic.version = 11 : i64} {
  func.func @_fused_conv_bn_tanh_kernel(%arg0: i32, %arg1: memref<512x1280xbf16, #tpu.memory_space<vmem>>, %arg2: memref<1280x128xbf16, #tpu.memory_space<vmem>>, %arg3: memref<1x128xf32, #tpu.memory_space<vmem>>, %arg4: memref<1x128xf32, #tpu.memory_space<vmem>>, %arg5: memref<512x128xf32, #tpu.memory_space<vmem>>, %arg6: memref<1x128xf32, #tpu.memory_space<vmem>>, %arg7: memref<1x128xf32, #tpu.memory_space<vmem>>) attributes {dimension_semantics = [#tpu.dimension_semantics<arbitrary>], iteration_bounds = array<i64: 1>, scalar_prefetch = 0 : i64, scratch_operands = 2 : i64, tpu.core_type = #tpu.core_type<tc>, window_params = [{transform_indices = @transform_0, window_bounds = array<i64: 512, 1280>}, {pipeline_mode = #tpu.pipeline_mode<synchronous>, transform_indices = @transform_1, window_bounds = array<i64: 1280, 128>}, {pipeline_mode = #tpu.pipeline_mode<synchronous>, transform_indices = @transform_2, window_bounds = array<i64: 1, 128>}, {pipeline_mode = #tpu.pipeline_mode<synchronous>, transform_indices = @transform_3, window_bounds = array<i64: 1, 128>}, {pipeline_mode = #tpu.pipeline_mode<synchronous>, transform_indices = @transform_4, window_bounds = array<i64: 512, 128>}]} {
    %c0_i32 = arith.constant 0 : i32
    %0 = arith.cmpi eq, %arg0, %c0_i32 : i32
    %1 = arith.extui %0 : i1 to i32
    %c0_i32_0 = arith.constant 0 : i32
    %2 = arith.cmpi ne, %1, %c0_i32_0 : i32
    scf.if %2 {
      %cst_17 = arith.constant 0.000000e+00 : f32
      %24 = vector.broadcast %cst_17 : f32 to vector<1x128xf32>
      %c0_18 = arith.constant 0 : index
      %c0_19 = arith.constant 0 : index
      %25 = vector.load %arg6[%c0_18, %c0_19] : memref<1x128xf32, #tpu.memory_space<vmem>>, vector<1x128xf32>
      tpu.vector_store %arg6[%c0_18, %c0_19], %24 {strides = array<i32>} : memref<1x128xf32, #tpu.memory_space<vmem>>, vector<1x128xf32>,
      %cst_20 = arith.constant 0.000000e+00 : f32
      %26 = vector.broadcast %cst_20 : f32 to vector<1x128xf32>
      %c0_21 = arith.constant 0 : index
      %c0_22 = arith.constant 0 : index
      %27 = vector.load %arg7[%c0_21, %c0_22] : memref<1x128xf32, #tpu.memory_space<vmem>>, vector<1x128xf32>
      tpu.vector_store %arg7[%c0_21, %c0_22], %26 {strides = array<i32>} : memref<1x128xf32, #tpu.memory_space<vmem>>, vector<1x128xf32>,
    } else {
    }
    %c0 = arith.constant 0 : index
    %c0_1 = arith.constant 0 : index
    %3 = vector.load %arg1[%c0, %c0_1] : memref<512x1280xbf16, #tpu.memory_space<vmem>>, vector<512x1280xbf16>
    %c0_2 = arith.constant 0 : index
    %c0_3 = arith.constant 0 : index
    %4 = vector.load %arg2[%c0_2, %c0_3] : memref<1280x128xbf16, #tpu.memory_space<vmem>>, vector<1280x128xbf16>
    %cst = arith.constant dense<0.000000e+00> : vector<512x128xf32>
    %5 = tpu.matmul %3, %4, %cst {dimension_numbers = #tpu.dot_dimension_numbers<[1], [0], [0], [1], [0, 0, 1, 1], [], []>} : vector<512x1280xbf16>, vector<1280x128xbf16>, vector<512x128xf32> -> vector<512x128xf32>
    %c512_i32 = arith.constant 512 : i32
    %6 = arith.muli %arg0, %c512_i32 : i32
    %7 = tpu.assume_multiple %6, 512 : i32
    %8 = arith.index_cast %7 : i32 to index
    %c0_4 = arith.constant 0 : index
    %9 = vector.load %arg5[%8, %c0_4] : memref<512x128xf32, #tpu.memory_space<vmem>>, vector<512x128xf32>
    tpu.vector_store %arg5[%8, %c0_4], %5 {strides = array<i32>} : memref<512x128xf32, #tpu.memory_space<vmem>>, vector<512x128xf32>,
    %c0_5 = arith.constant 0 : index
    %c0_6 = arith.constant 0 : index
    %10 = vector.load %arg6[%c0_5, %c0_6] : memref<1x128xf32, #tpu.memory_space<vmem>>, vector<1x128xf32>
    %cst_7 = arith.constant dense<0.000000e+00> : vector<128xf32>
    %11 = vector.multi_reduction <add>, %5, %cst_7 [0] : vector<512x128xf32> to vector<128xf32>
    %12 = vector.shape_cast %11 : vector<128xf32> to vector<1x128xf32>
    %13 = arith.addf %10, %12 : vector<1x128xf32>
    %c0_8 = arith.constant 0 : index
    %c0_9 = arith.constant 0 : index
    %14 = vector.load %arg6[%c0_8, %c0_9] : memref<1x128xf32, #tpu.memory_space<vmem>>, vector<1x128xf32>
    tpu.vector_store %arg6[%c0_8, %c0_9], %13 {strides = array<i32>} : memref<1x128xf32, #tpu.memory_space<vmem>>, vector<1x128xf32>,
    %c0_10 = arith.constant 0 : index
    %c0_11 = arith.constant 0 : index
    %15 = vector.load %arg7[%c0_10, %c0_11] : memref<1x128xf32, #tpu.memory_space<vmem>>, vector<1x128xf32>
    %16 = arith.mulf %5, %5 : vector<512x128xf32>
    %cst_12 = arith.constant dense<0.000000e+00> : vector<128xf32>
    %17 = vector.multi_reduction <add>, %16, %cst_12 [0] : vector<512x128xf32> to vector<128xf32>
    %18 = vector.shape_cast %17 : vector<128xf32> to vector<1x128xf32>
    %19 = arith.addf %15, %18 : vector<1x128xf32>
    %c0_13 = arith.constant 0 : index
    %c0_14 = arith.constant 0 : index
    %20 = vector.load %arg7[%c0_13, %c0_14] : memref<1x128xf32, #tpu.memory_space<vmem>>, vector<1x128xf32>
    tpu.vector_store %arg7[%c0_13, %c0_14], %19 {strides = array<i32>} : memref<1x128xf32, #tpu.memory_space<vmem>>, vector<1x128xf32>,
    %c0_i32_15 = arith.constant 0 : i32
    %21 = arith.cmpi eq, %arg0, %c0_i32_15 : i32
    %22 = arith.extui %21 : i1 to i32
    %c0_i32_16 = arith.constant 0 : i32
    %23 = arith.cmpi ne, %22, %c0_i32_16 : i32
    scf.if %23 {
      %c0_17 = arith.constant 0 : index
      %c0_18 = arith.constant 0 : index
      %24 = vector.load %arg6[%c0_17, %c0_18] : memref<1x128xf32, #tpu.memory_space<vmem>>, vector<1x128xf32>
      %cst_19 = arith.constant 0.001953125 : f32
      %25 = vector.broadcast %cst_19 : f32 to vector<1x128xf32>
      %26 = arith.mulf %24, %25 : vector<1x128xf32>
      %c0_20 = arith.constant 0 : index
      %c0_21 = arith.constant 0 : index
      %27 = vector.load %arg7[%c0_20, %c0_21] : memref<1x128xf32, #tpu.memory_space<vmem>>, vector<1x128xf32>
      %cst_22 = arith.constant 0.001953125 : f32
      %28 = vector.broadcast %cst_22 : f32 to vector<1x128xf32>
      %29 = arith.mulf %27, %28 : vector<1x128xf32>
      %30 = arith.mulf %26, %26 : vector<1x128xf32>
      %31 = arith.subf %29, %30 : vector<1x128xf32>
      %cst_23 = arith.constant 0.000000e+00 : f32
      %32 = vector.broadcast %cst_23 : f32 to vector<1x128xf32>
      %33 = arith.maximumf %31, %32 : vector<1x128xf32>
      %c0_24 = arith.constant 0 : index
      %c0_25 = arith.constant 0 : index
      %34 = vector.load %arg3[%c0_24, %c0_25] : memref<1x128xf32, #tpu.memory_space<vmem>>, vector<1x128xf32>
      %cst_26 = arith.constant 9.99999974E-6 : f32
      %35 = vector.broadcast %cst_26 : f32 to vector<1x128xf32>
      %36 = arith.addf %33, %35 : vector<1x128xf32>
      %37 = math.rsqrt %36 : vector<1x128xf32>
      %38 = arith.mulf %34, %37 : vector<1x128xf32>
      %c0_27 = arith.constant 0 : index
      %c0_28 = arith.constant 0 : index
      %39 = vector.load %arg4[%c0_27, %c0_28] : memref<1x128xf32, #tpu.memory_space<vmem>>, vector<1x128xf32>
      %40 = arith.mulf %26, %38 : vector<1x128xf32>
      %41 = arith.subf %39, %40 : vector<1x128xf32>
      %c0_29 = arith.constant 0 : index
      %c0_30 = arith.constant 0 : index
      %42 = vector.load %arg5[%c0_29, %c0_30] : memref<512x128xf32, #tpu.memory_space<vmem>>, vector<512x128xf32>
      %43 = vector.broadcast %38 : vector<1x128xf32> to vector<512x128xf32>
      %44 = arith.mulf %42, %43 : vector<512x128xf32>
      %45 = vector.broadcast %41 : vector<1x128xf32> to vector<512x128xf32>
      %46 = arith.addf %44, %45 : vector<512x128xf32>
      %47 = math.tanh %46 : vector<512x128xf32>
      %c0_31 = arith.constant 0 : index
      %c0_32 = arith.constant 0 : index
      %48 = vector.load %arg5[%c0_31, %c0_32] : memref<512x128xf32, #tpu.memory_space<vmem>>, vector<512x128xf32>
      tpu.vector_store %arg5[%c0_31, %c0_32], %47 {strides = array<i32>} : memref<512x128xf32, #tpu.memory_space<vmem>>, vector<512x128xf32>,
    } else {
    }
    return
  }
  func.func @transform_0(%arg0: i32) -> (i32, i32) {
    %c0_i32 = arith.constant 0 : i32
    %c0_i32_0 = arith.constant 0 : i32
    return %arg0, %c0_i32 : i32, i32
  }
  func.func @transform_1(%arg0: i32) -> (i32, i32) {
    %c0_i32 = arith.constant 0 : i32
    %c0_i32_0 = arith.constant 0 : i32
    %c0_i32_1 = arith.constant 0 : i32
    return %c0_i32, %c0_i32_0 : i32, i32
  }
  func.func @transform_2(%arg0: i32) -> (i32, i32) {
    %c0_i32 = arith.constant 0 : i32
    %c0_i32_0 = arith.constant 0 : i32
    %c0_i32_1 = arith.constant 0 : i32
    return %c0_i32, %c0_i32_0 : i32, i32
  }
  func.func @transform_3(%arg0: i32) -> (i32, i32) {
    %c0_i32 = arith.constant 0 : i32
    %c0_i32_0 = arith.constant 0 : i32
    %c0_i32_1 = arith.constant 0 : i32
    return %c0_i32, %c0_i32_0 : i32, i32
  }
  func.func @transform_4(%arg0: i32) -> (i32, i32) {
    %c0_i32 = arith.constant 0 : i32
    %c0_i32_0 = arith.constant 0 : i32
    %c0_i32_1 = arith.constant 0 : i32
    return %c0_i32, %c0_i32_0 : i32, i32
  }
}

</mosaic_0001>

<bundles_post_ra>
// kernel: unified_conv2d_block_forward.1
= control target key start
LH: loop header
LB: loop body
LE: loop exit
PB: predicated region body
PF: predicated region fallthrough
CT: control target
= control target key end

     0   :  { %v6284_v1 = vmov 0   ;;  %s8363_s0 = inlined_call_operand.vmem [shape: bf16[512,1280], index: 0, kind: input, shape index: {}]   ;;  %s8364_s1 = inlined_call_operand.vmem [shape: bf16[1280,128], index: 1, kind: input, shape index: {}]   ;;  %s8365_s2 = inlined_call_operand.vmem [shape: f32[1,128], index: 2, kind: input, shape index: {}]   ;;  %s8366_s3 = inlined_call_operand.vmem [shape: f32[1,128], index: 3, kind: input, shape index: {}]   ;;  %s8367_s4 = inlined_call_operand.hbm [shape: f32[512,128], index: 4, kind: output, shape index: {}]  }
   0x1   :  { %v5554_v0 = vld [vmem:[%s8364_s1] sm:$0xff]   ;;  %2585 = vmatprep.subr.bf16.mxu1 %v6284_v1  ;;  %3163 = vmatprep.subr.bf16.mxu0 %v6284_v1  ;;  %v5556_v3 = vld [vmem:[%s8364_s1 + $0x8] sm:$0xff]   ;;  %v5558_v5 = vld [vmem:[%s8364_s1 + $0x10] sm:$0xff]  }
   0x2   :  { %v5555_v2 = vld [vmem:[%s8364_s1 + $0x100] sm:$0xff]   ;;  %2586 = vmatpush1.bf16.msra.mxu1 %v5554_v0  ;;  %v5557_v4 = vld [vmem:[%s8364_s1 + $0x108] sm:$0xff]   ;;  %v5559_v6 = vld [vmem:[%s8364_s1 + $0x110] sm:$0xff]  }
   0x3   :  { %3164 = vmatpush1.bf16.msra.mxu0 %v5555_v2  ;;  %2587 = vmatprep.subr.bf16.mxu1 %v6284_v1  ;;  %v5560_v7 = vld [vmem:[%s8364_s1 + $0x18] sm:$0xff]   ;;  %v5562_v9 = vld [vmem:[%s8364_s1 + $0x20] sm:$0xff]   ;;  %v5564_v11 = vld [vmem:[%s8364_s1 + $0x28] sm:$0xff]  }
   0x4   :  { %3165 = vmatprep.subr.bf16.mxu0 %v6284_v1  ;;  %v5561_v8 = vld [vmem:[%s8364_s1 + $0x118] sm:$0xff]   ;;  %v5563_v10 = vld [vmem:[%s8364_s1 + $0x120] sm:$0xff]   ;;  %v5565_v12 = vld [vmem:[%s8364_s1 + $0x128] sm:$0xff]  }
   0x5   :  { %v5566_v13 = vld [vmem:[%s8364_s1 + $0x30] sm:$0xff]   ;;  %v5568_v15 = vld [vmem:[%s8364_s1 + $0x38] sm:$0xff]   ;;  %v5570_v17 = vld [vmem:[%s8364_s1 + $0x40] sm:$0xff]  }
   0x6   :  { %2588 = vmatpush1.bf16.msra.mxu1 %v5556_v3  ;;  %v5567_v14 = vld [vmem:[%s8364_s1 + $0x130] sm:$0xff]   ;;  %v5569_v16 = vld [vmem:[%s8364_s1 + $0x138] sm:$0xff]   ;;  %v5571_v18 = vld [vmem:[%s8364_s1 + $0x140] sm:$0xff]  }
   0x7   :  { %3166 = vmatpush1.bf16.msra.mxu0 %v5557_v4  ;;  %2589 = vmatprep.subr.bf16.mxu1 %v6284_v1  ;;  %v5588_v19 = vld [vmem:[%s8363_s0 + $0x4] ss:$40 sps:$4 sm:$0xff]   ;;  %v5591_v21 = vld [vmem:[%s8363_s0 + $0x14] ss:$40 sps:$4 sm:$0xff]   ;;  %v5586_v35 = vld [vmem:[%s8363_s0] ss:$40 sps:$4 sm:$0xff]  }
   0x8   :  { %3167 = vmatprep.subr.bf16.mxu0 %v6284_v1  ;;  %v5572_v20 = vld [vmem:[%s8364_s1 + $0x48] sm:$0xff]   ;;  %2617 = vmatprep.mubr.bf16.mxu1 %v5588_v19  ;;  %v5574_v23 = vld [vmem:[%s8364_s1 + $0x50] sm:$0xff]   ;;  %v5576_v25 = vld [vmem:[%s8364_s1 + $0x58] sm:$0xff]  }
   0x9   :  { %v5573_v22 = vld [vmem:[%s8364_s1 + $0x148] sm:$0xff]   ;;  %3195 = vmatprep.mubr.bf16.mxu0 %v5591_v21  ;;  %v5575_v24 = vld [vmem:[%s8364_s1 + $0x150] sm:$0xff]   ;;  %v5577_v26 = vld [vmem:[%s8364_s1 + $0x158] sm:$0xff]  }
   0xa   :  { %2590 = vmatpush1.bf16.msra.mxu1 %v5558_v5  ;;  %v5578_v27 = vld [vmem:[%s8364_s1 + $0x60] sm:$0xff]   ;;  %v5580_v29 = vld [vmem:[%s8364_s1 + $0x68] sm:$0xff]   ;;  %v5582_v31 = vld [vmem:[%s8364_s1 + $0x70] sm:$0xff]  }
   0xb   :  { %3168 = vmatpush1.bf16.msra.mxu0 %v5559_v6  ;;  %2591 = vmatprep.subr.bf16.mxu1 %v6284_v1  ;;  %v5579_v28 = vld [vmem:[%s8364_s1 + $0x160] sm:$0xff]   ;;  %v5581_v30 = vld [vmem:[%s8364_s1 + $0x168] sm:$0xff]   ;;  %v5583_v32 = vld [vmem:[%s8364_s1 + $0x170] sm:$0xff]  }
   0xc   :  { %3169 = vmatprep.subr.bf16.mxu0 %v6284_v1  ;;  %v5584_v33 = vld [vmem:[%s8364_s1 + $0x78] sm:$0xff]   ;;  %v5592_v37 = vld [vmem:[%s8364_s1 + $0x80] sm:$0xff]   ;;  %v5607_v41 = vld [vmem:[%s8364_s1 + $0x88] sm:$0xff]  }
   0xd   :  { %v5585_v34 = vld [vmem:[%s8364_s1 + $0x178] sm:$0xff]   ;;  %v5593_v38 = vld [vmem:[%s8364_s1 + $0x180] sm:$0xff]   ;;  %v5600_v43 = vld [vmem:[%s8364_s1 + $0x188] sm:$0xff]  }
   0xe   :  { %2592 = vmatpush1.bf16.msra.mxu1 %v5560_v7  ;;  %v5589_v36 = vld [vmem:[%s8363_s0 + $0x10] ss:$40 sps:$4 sm:$0xff]   ;;  %v5594_v39 = vld [vmem:[%s8363_s0 + $0x54] ss:$40 sps:$4 sm:$0xff]   ;;  %v5596_v40 = vld [vmem:[%s8363_s0 + $0x64] ss:$40 sps:$4 sm:$0xff]  }
   0xf   :  { %3170 = vmatpush1.bf16.msra.mxu0 %v5561_v8  ;;  %2593 = vmatprep.subr.bf16.mxu1 %v6284_v1  ;;  %v5598_v42 = vld [vmem:[%s8363_s0 + $0x50] ss:$40 sps:$4 sm:$0xff]   ;;  %v5599_v44 = vld [vmem:[%s8363_s0 + $0x60] ss:$40 sps:$4 sm:$0xff]   ;;  %v5601_v45 = vld [vmem:[%s8363_s0 + $0xa4] ss:$40 sps:$4 sm:$0xff]  }
  0x10   :  { %3171 = vmatprep.subr.bf16.mxu0 %v6284_v1  ;;  %v5603_v46 = vld [vmem:[%s8363_s0 + $0xb4] ss:$40 sps:$4 sm:$0xff]   ;;  %v5605_v49 = vld [vmem:[%s8363_s0 + $0xa0] ss:$40 sps:$4 sm:$0xff]   ;;  %v5606_v51 = vld [vmem:[%s8363_s0 + $0xb0] ss:$40 sps:$4 sm:$0xff]  }
  0x11   :  { %v5608_v47 = vld [vmem:[%s8364_s1 + $0x190] sm:$0xff]   ;;  %v5615_v50 = vld [vmem:[%s8364_s1 + $0x198] sm:$0xff]   ;;  %v5611_v54 = vld [vmem:[%s8363_s0 + $0x104] ss:$40 sps:$4 sm:$0xff]  }
  0x12   :  { %2594 = vmatpush1.bf16.msra.mxu1 %v5562_v9  ;;  %v5622_v48 = vld [vmem:[%s8364_s1 + $0x90] sm:$0xff]   ;;  %v5637_v52 = vld [vmem:[%s8364_s1 + $0x98] sm:$0xff]   ;;  %v5623_v55 = vld [vmem:[%s8364_s1 + $0x1a0] sm:$0xff]  }
  0x13   :  { %3172 = vmatpush1.bf16.msra.mxu0 %v5563_v10  ;;  %2595 = vmatprep.subr.bf16.mxu1 %v6284_v1  ;;  %v5609_v53 = vld [vmem:[%s8363_s0 + $0xf4] ss:$40 sps:$4 sm:$0xff]   ;;  %v5652_v56 = vld [vmem:[%s8364_s1 + $0xa0] sm:$0xff]   ;;  %v5613_v57 = vld [vmem:[%s8363_s0 + $0xf0] ss:$40 sps:$4 sm:$0xff]  }
  0x14   :  { %3173 = vmatprep.subr.bf16.mxu0 %v6284_v1  ;;  %v5630_v58 = vld [vmem:[%s8364_s1 + $0x1a8] sm:$0xff]   ;;  %v5618_v62 = vld [vmem:[%s8363_s0 + $0x154] ss:$40 sps:$4 sm:$0xff]   ;;  %v5621_v4 = vld [vmem:[%s8363_s0 + $0x150] ss:$40 sps:$4 sm:$0xff]  }
  0x15   :  { %v5614_v59 = vld [vmem:[%s8363_s0 + $0x100] ss:$40 sps:$4 sm:$0xff]   ;;  %v5616_v61 = vld [vmem:[%s8363_s0 + $0x144] ss:$40 sps:$4 sm:$0xff]   ;;  %v5638_v63 = vld [vmem:[%s8364_s1 + $0x1b0] sm:$0xff]  }
  0x16   :  { %2596 = vmatpush1.bf16.msra.mxu1 %v5564_v11  ;;  %v5667_v60 = vld [vmem:[%s8364_s1 + $0xa8] sm:$0xff]   ;;  %v5682_v0 = vld [vmem:[%s8364_s1 + $0xb0] sm:$0xff]   ;;  %v5645_v2 = vld [vmem:[%s8364_s1 + $0x1b8] sm:$0xff]  }
  0x17   :  { %3174 = vmatpush1.bf16.msra.mxu0 %v5565_v12  ;;  %2597 = vmatprep.subr.bf16.mxu1 %v6284_v1  ;;  %v5620_v3 = vld [vmem:[%s8363_s0 + $0x140] ss:$40 sps:$4 sm:$0xff]   ;;  %v5624_v5 = vld [vmem:[%s8363_s0 + $0x194] ss:$40 sps:$4 sm:$0xff]   ;;  %v5626_v7 = vld [vmem:[%s8363_s0 + $0x1a4] ss:$40 sps:$4 sm:$0xff]  }
  0x18   :  { %3175 = vmatprep.subr.bf16.mxu0 %v6284_v1  ;;  %v5697_v6 = vld [vmem:[%s8364_s1 + $0xb8] sm:$0xff]   ;;  %v5653_v8 = vld [vmem:[%s8364_s1 + $0x1c0] sm:$0xff]   ;;  %v5660_v10 = vld [vmem:[%s8364_s1 + $0x1c8] sm:$0xff]  }
  0x19   :  { %v5628_v9 = vld [vmem:[%s8363_s0 + $0x190] ss:$40 sps:$4 sm:$0xff]   ;;  %v5629_v11 = vld [vmem:[%s8363_s0 + $0x1a0] ss:$40 sps:$4 sm:$0xff]   ;;  %v5631_v12 = vld [vmem:[%s8363_s0 + $0x1e4] ss:$40 sps:$4 sm:$0xff]  }
  0x1a   :  { %2598 = vmatpush1.bf16.msra.mxu1 %v5566_v13  ;;  %v5633_v13 = vld [vmem:[%s8363_s0 + $0x1f4] ss:$40 sps:$4 sm:$0xff]   ;;  %v5641_v21 = vld [vmem:[%s8363_s0 + $0x244] ss:$40 sps:$4 sm:$0xff]  }
  0x1b   :  { %3176 = vmatpush1.bf16.msra.mxu0 %v5567_v14  ;;  %2599 = vmatprep.subr.bf16.mxu1 %v6284_v1  ;;  %v5712_v14 = vld [vmem:[%s8364_s1 + $0xc0] sm:$0xff]   ;;  %v5639_v19 = vld [vmem:[%s8363_s0 + $0x234] ss:$40 sps:$4 sm:$0xff]  }
  0x1c   :  { %3177 = vmatprep.subr.bf16.mxu0 %v6284_v1 }
  0x1e   :  { %2600 = vmatpush1.bf16.msra.mxu1 %v5568_v15  ;;  %v5668_v15 = vld [vmem:[%s8364_s1 + $0x1d0] sm:$0xff]  }
  0x1f   :  { %3178 = vmatpush1.bf16.msra.mxu0 %v5569_v16  ;;  %2601 = vmatprep.subr.bf16.mxu1 %v6284_v1  ;;  %v5635_v16 = vld [vmem:[%s8363_s0 + $0x1e0] ss:$40 sps:$4 sm:$0xff]  }
  0x20   :  { %3179 = vmatprep.subr.bf16.mxu0 %v6284_v1 }
  0x22   :  { %2602 = vmatpush1.bf16.msra.mxu1 %v5570_v17  ;;  %v5675_v17 = vld [vmem:[%s8364_s1 + $0x1d8] sm:$0xff]  }
  0x23   :  { %3180 = vmatpush1.bf16.msra.mxu0 %v5571_v18  ;;  %2603 = vmatprep.subr.bf16.mxu1 %v6284_v1  ;;  %v5636_v18 = vld [vmem:[%s8363_s0 + $0x1f0] ss:$40 sps:$4 sm:$0xff]  }
  0x24   :  { %3181 = vmatprep.subr.bf16.mxu0 %v6284_v1 }
  0x26   :  { %2604 = vmatpush1.bf16.msra.mxu1 %v5572_v20  ;;  %v5726_v20 = vld [vmem:[%s8364_s1 + $0xc8] sm:$0xff]  }
  0x27   :  { %3182 = vmatpush1.bf16.msra.mxu0 %v5573_v22  ;;  %2605 = vmatprep.subr.bf16.mxu1 %v6284_v1  ;;  %v5683_v22 = vld [vmem:[%s8364_s1 + $0x1e0] sm:$0xff]  }
  0x28   :  { %3183 = vmatprep.subr.bf16.mxu0 %v6284_v1 }
  0x2a   :  { %2606 = vmatpush1.bf16.msra.mxu1 %v5574_v23  ;;  %v5643_v23 = vld [vmem:[%s8363_s0 + $0x230] ss:$40 sps:$4 sm:$0xff]  }
  0x2b   :  { %3184 = vmatpush1.bf16.msra.mxu0 %v5575_v24  ;;  %2607 = vmatprep.subr.bf16.mxu1 %v6284_v1  ;;  %v5690_v24 = vld [vmem:[%s8364_s1 + $0x1e8] sm:$0xff]  }
  0x2c   :  { %3185 = vmatprep.subr.bf16.mxu0 %v6284_v1 }
  0x2e   :  { %2608 = vmatpush1.bf16.msra.mxu1 %v5576_v25  ;;  %v5644_v25 = vld [vmem:[%s8363_s0 + $0x240] ss:$40 sps:$4 sm:$0xff]  }
  0x2f   :  { %3186 = vmatpush1.bf16.msra.mxu0 %v5577_v26  ;;  %2609 = vmatprep.subr.bf16.mxu1 %v6284_v1  ;;  %v5740_v26 = vld [vmem:[%s8364_s1 + $0xd0] sm:$0xff]  }
  0x30   :  { %3187 = vmatprep.subr.bf16.mxu0 %v6284_v1 }
  0x32   :  { %2610 = vmatpush1.bf16.msra.mxu1 %v5578_v27  ;;  %v5646_v27 = vld [vmem:[%s8363_s0 + $0x284] ss:$40 sps:$4 sm:$0xff]  }
  0x33   :  { %3188 = vmatpush1.bf16.msra.mxu0 %v5579_v28  ;;  %2611 = vmatprep.subr.bf16.mxu1 %v6284_v1  ;;  %v5648_v28 = vld [vmem:[%s8363_s0 + $0x294] ss:$40 sps:$4 sm:$0xff]  }
  0x34   :  { %3189 = vmatprep.subr.bf16.mxu0 %v6284_v1 }
  0x36   :  { %2612 = vmatpush1.bf16.msra.mxu1 %v5580_v29  ;;  %v5698_v29 = vld [vmem:[%s8364_s1 + $0x1f0] sm:$0xff]  }
  0x37   :  { %3190 = vmatpush1.bf16.msra.mxu0 %v5581_v30  ;;  %2613 = vmatprep.subr.bf16.mxu1 %v6284_v1  ;;  %v5650_v30 = vld [vmem:[%s8363_s0 + $0x280] ss:$40 sps:$4 sm:$0xff]  }
  0x38   :  { %3191 = vmatprep.subr.bf16.mxu0 %v6284_v1 }
  0x3a   :  { %2614 = vmatpush1.bf16.msra.mxu1 %v5582_v31  ;;  %v5705_v31 = vld [vmem:[%s8364_s1 + $0x1f8] sm:$0xff]  }
  0x3b   :  { %3192 = vmatpush1.bf16.msra.mxu0 %v5583_v32  ;;  %2615 = vmatprep.subr.bf16.mxu1 %v6284_v1  ;;  %v5754_v32 = vld [vmem:[%s8364_s1 + $0xd8] sm:$0xff]  }
  0x3c   :  { %3193 = vmatprep.subr.bf16.mxu0 %v6284_v1 }
  0x3e   :  { %2616 = vmatpush1.bf16.msra.mxu1 %v5584_v33  ;;  %v5651_v33 = vld [vmem:[%s8363_s0 + $0x290] ss:$40 sps:$4 sm:$0xff]  }
  0x3f   :  { %3194 = vmatpush1.bf16.msra.mxu0 %v5585_v34  ;;  %2874 = vmatprep.subr.bf16.mxu1 %v6284_v1  ;;  %v5654_v34 = vld [vmem:[%s8363_s0 + $0x2d4] ss:$40 sps:$4 sm:$0xff]  }
  0x40   :  { %3452 = vmatprep.subr.bf16.mxu0 %v6284_v1 }
  0x41   :  { %2618 = vmatmul.mubr.bf16.vlgmr.msra.gmra.mrb[0].mxu1 %v5586_v35  ;;  %v5656_v35 = vld [vmem:[%s8363_s0 + $0x2e4] ss:$40 sps:$4 sm:$0xff]  }
  0x42   :  { %3196 = vmatmul.mubr.bf16.vlgmr.msra.gmra.mrb[0].mxu0 %v5589_v36  ;;  %2875 = vmatpush1.bf16.msra.mxu1 %v5592_v37  ;;  %v5768_v36 = vld [vmem:[%s8364_s1 + $0xe0] sm:$0xff]   ;;  %v5658_v37 = vld [vmem:[%s8363_s0 + $0x2d0] ss:$40 sps:$4 sm:$0xff]  }
  0x43   :  { %3453 = vmatpush1.bf16.msra.mxu0 %v5593_v38  ;;  %2625 = vmatprep.mubr.bf16.mxu1 %v5594_v39  ;;  %v5659_v38 = vld [vmem:[%s8363_s0 + $0x2e0] ss:$40 sps:$4 sm:$0xff]   ;;  %v5661_v39 = vld [vmem:[%s8363_s0 + $0x324] ss:$40 sps:$4 sm:$0xff]  }
  0x44   :  { %3203 = vmatprep.mubr.bf16.mxu0 %v5596_v40  ;;  %3454 = vmatprep.subr.bf16.mxu0 %v6284_v1  ;;  %v5663_v40 = vld [vmem:[%s8363_s0 + $0x334] ss:$40 sps:$4 sm:$0xff]  }
  0x45   :  { %2876 = vmatprep.subr.bf16.mxu1 %v6284_v1 }
  0x46   :  { %2877 = vmatpush1.bf16.msra.mxu1 %v5607_v41  ;;  %v5665_v41 = vld [vmem:[%s8363_s0 + $0x320] ss:$40 sps:$4 sm:$0xff]  }
  0x47   :  { %3455 = vmatpush1.bf16.msra.mxu0 %v5600_v43  ;;  %2878 = vmatprep.subr.bf16.mxu1 %v6284_v1  ;;  %v5669_v43 = vld [vmem:[%s8363_s0 + $0x374] ss:$40 sps:$4 sm:$0xff]  }
  0x48   :  { %3456 = vmatprep.subr.bf16.mxu0 %v6284_v1 }
  0x49   :  { %2626 = vmatmul.mubr.bf16.gmra.mrb[4].mxu1 %v5598_v42  ;;  %v5666_v42 = vld [vmem:[%s8363_s0 + $0x330] ss:$40 sps:$4 sm:$0xff]  }
  0x4a   :  { %3204 = vmatmul.mubr.bf16.gmra.mrb[4].mxu0 %v5599_v44  ;;  %2633 = vmatprep.mubr.bf16.mxu1 %v5601_v45  ;;  %v5671_v44 = vld [vmem:[%s8363_s0 + $0x384] ss:$40 sps:$4 sm:$0xff]  }
  0x4b   :  { %3211 = vmatprep.mubr.bf16.mxu0 %v5603_v46  ;;  %3457 = vmatpush1.bf16.msra.mxu0 %v5608_v47  ;;  %v5782_v45 = vld [vmem:[%s8364_s1 + $0xe8] sm:$0xff]   ;;  %v5673_v46 = vld [vmem:[%s8363_s0 + $0x370] ss:$40 sps:$4 sm:$0xff]  }
  0x4c   :  { %3458 = vmatprep.subr.bf16.mxu0 %v6284_v1  ;;  %2879 = vmatpush1.bf16.msra.mxu1 %v5622_v48  ;;  %v5674_v47 = vld [vmem:[%s8363_s0 + $0x380] ss:$40 sps:$4 sm:$0xff]   ;;  %v5676_v48 = vld [vmem:[%s8363_s0 + $0x3c4] ss:$40 sps:$4 sm:$0xff]  }
  0x4d   :  { %2880 = vmatprep.subr.bf16.mxu1 %v6284_v1 }
  0x4f   :  { %3459 = vmatpush1.bf16.msra.mxu0 %v5615_v50  ;;  %v5680_v50 = vld [vmem:[%s8363_s0 + $0x3c0] ss:$40 sps:$4 sm:$0xff]  }
  0x50   :  { %3460 = vmatprep.subr.bf16.mxu0 %v6284_v1  ;;  %2881 = vmatpush1.bf16.msra.mxu1 %v5637_v52  ;;  %v5684_v52 = vld [vmem:[%s8363_s0 + $0x414] ss:$40 sps:$4 sm:$0xff]  }
  0x51   :  { %2634 = vmatmul.mubr.bf16.gmra.mrb[8].mxu1 %v5605_v49  ;;  %2882 = vmatprep.subr.bf16.mxu1 %v6284_v1  ;;  %v5678_v49 = vld [vmem:[%s8363_s0 + $0x3d4] ss:$40 sps:$4 sm:$0xff]  }
  0x52   :  { %3212 = vmatmul.mubr.bf16.gmra.mrb[8].mxu0 %v5606_v51  ;;  %2641 = vmatprep.mubr.bf16.mxu1 %v5609_v53  ;;  %v5681_v51 = vld [vmem:[%s8363_s0 + $0x3d0] ss:$40 sps:$4 sm:$0xff]   ;;  %v5686_v53 = vld [vmem:[%s8363_s0 + $0x424] ss:$40 sps:$4 sm:$0xff]  }
  0x53   :  { %3219 = vmatprep.mubr.bf16.mxu0 %v5611_v54  ;;  %3461 = vmatpush1.bf16.msra.mxu0 %v5623_v55  ;;  %v5796_v54 = vld [vmem:[%s8364_s1 + $0xf0] sm:$0xff]  }
  0x54   :  { %3462 = vmatprep.subr.bf16.mxu0 %v6284_v1  ;;  %2883 = vmatpush1.bf16.msra.mxu1 %v5652_v56  ;;  %v5688_v55 = vld [vmem:[%s8363_s0 + $0x410] ss:$40 sps:$4 sm:$0xff]   ;;  %v5689_v56 = vld [vmem:[%s8363_s0 + $0x420] ss:$40 sps:$4 sm:$0xff]  }
  0x55   :  { %2884 = vmatprep.subr.bf16.mxu1 %v6284_v1 }
  0x57   :  { %3463 = vmatpush1.bf16.msra.mxu0 %v5630_v58  ;;  %v5693_v58 = vld [vmem:[%s8363_s0 + $0x474] ss:$40 sps:$4 sm:$0xff]  }
  0x58   :  { %3464 = vmatprep.subr.bf16.mxu0 %v6284_v1  ;;  %2885 = vmatpush1.bf16.msra.mxu1 %v5667_v60  ;;  %v5696_v60 = vld [vmem:[%s8363_s0 + $0x470] ss:$40 sps:$4 sm:$0xff]  }
  0x59   :  { %2642 = vmatmul.mubr.bf16.gmra.mrb[12].mxu1 %v5613_v57  ;;  %2886 = vmatprep.subr.bf16.mxu1 %v6284_v1  ;;  %v5691_v57 = vld [vmem:[%s8363_s0 + $0x464] ss:$40 sps:$4 sm:$0xff]  }
  0x5a   :  { %3220 = vmatmul.mubr.bf16.gmra.mrb[12].mxu0 %v5614_v59  ;;  %2649 = vmatprep.mubr.bf16.mxu1 %v5616_v61  ;;  %v5695_v59 = vld [vmem:[%s8363_s0 + $0x460] ss:$40 sps:$4 sm:$0xff]   ;;  %v5699_v61 = vld [vmem:[%s8363_s0 + $0x4b4] ss:$40 sps:$4 sm:$0xff]  }
  0x5b   :  { %3227 = vmatprep.mubr.bf16.mxu0 %v5618_v62  ;;  %3465 = vmatpush1.bf16.msra.mxu0 %v5638_v63  ;;  %v5701_v62 = vld [vmem:[%s8363_s0 + $0x4c4] ss:$40 sps:$4 sm:$0xff]   ;;  %v5810_v63 = vld [vmem:[%s8364_s1 + $0xf8] sm:$0xff]  }
  0x5c   :  { %3466 = vmatprep.subr.bf16.mxu0 %v6284_v1  ;;  %2887 = vmatpush1.bf16.msra.mxu1 %v5682_v0  ;;  %v5703_v0 = vld [vmem:[%s8363_s0 + $0x4b0] ss:$40 sps:$4 sm:$0xff]  }
  0x5d   :  { %2888 = vmatprep.subr.bf16.mxu1 %v6284_v1 }
  0x5f   :  { %3467 = vmatpush1.bf16.msra.mxu0 %v5645_v2  ;;  %v5704_v2 = vld [vmem:[%s8363_s0 + $0x4c0] ss:$40 sps:$4 sm:$0xff]  }
  0x60   :  { %3468 = vmatprep.subr.bf16.mxu0 %v6284_v1  ;;  %2889 = vmatpush1.bf16.msra.mxu1 %v5697_v6  ;;  %v5708_v6 = vld [vmem:[%s8363_s0 + $0x18] ss:$40 sps:$4 sm:$0xff]  }
  0x61   :  { %2650 = vmatmul.mubr.bf16.gmra.mrb[16].mxu1 %v5620_v3  ;;  %2890 = vmatprep.subr.bf16.mxu1 %v6284_v1  ;;  %v5706_v3 = vld [vmem:[%s8363_s0 + $0x504] ss:$40 sps:$4 sm:$0xff]  }
  0x62   :  { %3228 = vmatmul.mubr.bf16.gmra.mrb[16].mxu0 %v5621_v4  ;;  %2657 = vmatprep.mubr.bf16.mxu1 %v5624_v5  ;;  %v5710_v4 = vld [vmem:[%s8363_s0 + $0x1c] ss:$40 sps:$4 sm:$0xff]   ;;  %v5711_v5 = vld [vmem:[%s8363_s0 + $0x500] ss:$40 sps:$4 sm:$0xff]  }
  0x63   :  { %3235 = vmatprep.mubr.bf16.mxu0 %v5626_v7  ;;  %3469 = vmatpush1.bf16.msra.mxu0 %v5653_v8  ;;  %v5714_v7 = vld [vmem:[%s8363_s0 + $0x554] ss:$40 sps:$4 sm:$0xff]   ;;  %v5713_v8 = vld [vmem:[%s8364_s1 + $0x200] sm:$0xff]  }
  0x64   :  { %3470 = vmatprep.subr.bf16.mxu0 %v6284_v1  ;;  %2891 = vmatpush1.bf16.msra.mxu1 %v5712_v14  ;;  %v5722_v14 = vld [vmem:[%s8363_s0 + $0xbc] ss:$40 sps:$4 sm:$0xff]  }
  0x65   :  { %2892 = vmatprep.subr.bf16.mxu1 %v6284_v1 }
  0x67   :  { %3471 = vmatpush1.bf16.msra.mxu0 %v5660_v10  ;;  %v5718_v10 = vld [vmem:[%s8363_s0 + $0x550] ss:$40 sps:$4 sm:$0xff]  }
  0x68   :  { %3472 = vmatprep.subr.bf16.mxu0 %v6284_v1  ;;  %2893 = vmatpush1.bf16.msra.mxu1 %v5726_v20  ;;  %v5730_v20 = vld [vmem:[%s8363_s0 + $0x10c] ss:$40 sps:$4 sm:$0xff]  }
  0x69   :  { %2658 = vmatmul.mubr.bf16.gmra.mrb[20].mxu1 %v5628_v9  ;;  %2894 = vmatprep.subr.bf16.mxu1 %v6284_v1  ;;  %v5716_v9 = vld [vmem:[%s8363_s0 + $0x6c] ss:$40 sps:$4 sm:$0xff]  }
  0x6a   :  { %3236 = vmatmul.mubr.bf16.gmra.mrb[20].mxu0 %v5629_v11  ;;  %2665 = vmatprep.mubr.bf16.mxu1 %v5631_v12  ;;  %v5727_v11 = vld [vmem:[%s8364_s1 + $0x208] sm:$0xff]  }
  0x6b   :  { %3243 = vmatprep.mubr.bf16.mxu0 %v5633_v13  ;;  %3473 = vmatpush1.bf16.msra.mxu0 %v5668_v15  ;;  %v5719_v12 = vld [vmem:[%s8363_s0 + $0x68] ss:$40 sps:$4 sm:$0xff]   ;;  %v5720_v13 = vld [vmem:[%s8363_s0 + $0x5a4] ss:$40 sps:$4 sm:$0xff]  }
  0x6c   :  { %3474 = vmatprep.subr.bf16.mxu0 %v6284_v1  ;;  %2895 = vmatpush1.bf16.msra.mxu1 %v5740_v26  ;;  %v5741_v15 = vld [vmem:[%s8364_s1 + $0x210] sm:$0xff]   ;;  %v5736_v26 = vld [vmem:[%s8363_s0 + $0x15c] ss:$40 sps:$4 sm:$0xff]  }
  0x6d   :  { %2896 = vmatprep.subr.bf16.mxu1 %v6284_v1 }
  0x6f   :  { %3475 = vmatpush1.bf16.msra.mxu0 %v5675_v17  ;;  %v5755_v17 = vld [vmem:[%s8364_s1 + $0x218] sm:$0xff]  }
  0x70   :  { %3476 = vmatprep.subr.bf16.mxu0 %v6284_v1  ;;  %2897 = vmatpush1.bf16.msra.mxu1 %v5754_v32  ;;  %v5744_v32 = vld [vmem:[%s8363_s0 + $0x1ac] ss:$40 sps:$4 sm:$0xff]  }
  0x71   :  { %2666 = vmatmul.mubr.bf16.gmra.mrb[24].mxu1 %v5635_v16  ;;  %2898 = vmatprep.subr.bf16.mxu1 %v6284_v1  ;;  %v5724_v16 = vld [vmem:[%s8363_s0 + $0x5a0] ss:$40 sps:$4 sm:$0xff]  }
  0x72   :  { %3244 = vmatmul.mubr.bf16.gmra.mrb[24].mxu0 %v5636_v18  ;;  %2673 = vmatprep.mubr.bf16.mxu1 %v5639_v19  ;;  %v5725_v18 = vld [vmem:[%s8363_s0 + $0xb8] ss:$40 sps:$4 sm:$0xff]   ;;  %v5728_v19 = vld [vmem:[%s8363_s0 + $0x5f4] ss:$40 sps:$4 sm:$0xff]  }
  0x73   :  { %3251 = vmatprep.mubr.bf16.mxu0 %v5641_v21  ;;  %3477 = vmatpush1.bf16.msra.mxu0 %v5683_v22  ;;  %v5769_v21 = vld [vmem:[%s8364_s1 + $0x220] sm:$0xff]   ;;  %v5732_v22 = vld [vmem:[%s8363_s0 + $0x5f0] ss:$40 sps:$4 sm:$0xff]  }
  0x74   :  { %3478 = vmatprep.subr.bf16.mxu0 %v6284_v1  ;;  %2899 = vmatpush1.bf16.msra.mxu1 %v5768_v36  ;;  %v5747_v36 = vld [vmem:[%s8363_s0 + $0x1a8] ss:$40 sps:$4 sm:$0xff]  }
  0x75   :  { %2900 = vmatprep.subr.bf16.mxu1 %v6284_v1 }
  0x77   :  { %3479 = vmatpush1.bf16.msra.mxu0 %v5690_v24  ;;  %v5733_v24 = vld [vmem:[%s8363_s0 + $0x108] ss:$40 sps:$4 sm:$0xff]  }
  0x78   :  { %3480 = vmatprep.subr.bf16.mxu0 %v6284_v1  ;;  %2901 = vmatpush1.bf16.msra.mxu1 %v5782_v45 }
  0x79   :  { %2674 = vmatmul.mubr.bf16.gmra.mrb[28].mxu1 %v5643_v23  ;;  %2902 = vmatprep.subr.bf16.mxu1 %v6284_v1  ;;  %v5783_v23 = vld [vmem:[%s8364_s1 + $0x228] sm:$0xff]  }
  0x7a   :  { %3252 = vmatmul.mubr.bf16.gmra.mrb[28].mxu0 %v5644_v25  ;;  %2681 = vmatprep.mubr.bf16.mxu1 %v5646_v27  ;;  %v5734_v25 = vld [vmem:[%s8363_s0 + $0x644] ss:$40 sps:$4 sm:$0xff]   ;;  %v5797_v27 = vld [vmem:[%s8364_s1 + $0x230] sm:$0xff]  }
  0x7b   :  { %3259 = vmatprep.mubr.bf16.mxu0 %v5648_v28  ;;  %3481 = vmatpush1.bf16.msra.mxu0 %v5698_v29  ;;  %v5738_v28 = vld [vmem:[%s8363_s0 + $0x640] ss:$40 sps:$4 sm:$0xff]   ;;  %v5811_v29 = vld [vmem:[%s8364_s1 + $0x238] sm:$0xff]  }
  0x7c   :  { %3482 = vmatprep.subr.bf16.mxu0 %v6284_v1  ;;  %2903 = vmatpush1.bf16.msra.mxu1 %v5796_v54 }
  0x7d   :  { %2904 = vmatprep.subr.bf16.mxu1 %v6284_v1 }
  0x7f   :  { %3483 = vmatpush1.bf16.msra.mxu0 %v5705_v31  ;;  %v5742_v31 = vld [vmem:[%s8363_s0 + $0x694] ss:$40 sps:$4 sm:$0xff]  }
  0x80   :  { %3741 = vmatprep.subr.bf16.mxu0 %v6284_v1  ;;  %2905 = vmatpush1.bf16.msra.mxu1 %v5810_v63 }
  0x81   :  { %2682 = vmatmul.mubr.bf16.gmra.mrb[32].mxu1 %v5650_v30  ;;  %5069 = vmatprep.subr.bf16.mxu1 %v6284_v1  ;;  %v5739_v30 = vld [vmem:[%s8363_s0 + $0x158] ss:$40 sps:$4 sm:$0xff]  }
  0x82   :  { %3260 = vmatmul.mubr.bf16.gmra.mrb[32].mxu0 %v5651_v33  ;;  %2689 = vmatprep.mubr.bf16.mxu1 %v5654_v34  ;;  %v5824_v33 = vld [vmem:[%s8364_s1 + $0x240] sm:$0xff]   ;;  %v5746_v34 = vld [vmem:[%s8363_s0 + $0x690] ss:$40 sps:$4 sm:$0xff]  }
  0x83   :  { %3267 = vmatprep.mubr.bf16.mxu0 %v5656_v35  ;;  %v5837_v35 = vld [vmem:[%s8364_s1 + $0x248] sm:$0xff]  }
  0x89   :  { %2690 = vmatmul.mubr.bf16.gmra.mrb[36].mxu1 %v5658_v37  ;;  %v5748_v37 = vld [vmem:[%s8363_s0 + $0x6e4] ss:$40 sps:$4 sm:$0xff]  }
  0x8a   :  { %3268 = vmatmul.mubr.bf16.gmra.mrb[36].mxu0 %v5659_v38  ;;  %2697 = vmatprep.mubr.bf16.mxu1 %v5661_v39  ;;  %v5750_v38 = vld [vmem:[%s8363_s0 + $0x1fc] ss:$40 sps:$4 sm:$0xff]   ;;  %v5850_v39 = vld [vmem:[%s8364_s1 + $0x250] sm:$0xff]  }
  0x8b   :  { %3275 = vmatprep.mubr.bf16.mxu0 %v5663_v40 }
  0x91   :  { %2698 = vmatmul.mubr.bf16.gmra.mrb[40].mxu1 %v5665_v41 }
  0x92   :  { %3276 = vmatmul.mubr.bf16.gmra.mrb[40].mxu0 %v5666_v42  ;;  %2705 = vmatprep.mubr.bf16.mxu1 %v5669_v43 }
  0x93   :  { %3283 = vmatprep.mubr.bf16.mxu0 %v5671_v44 }
  0x99   :  { %2706 = vmatmul.mubr.bf16.gmra.mrb[44].mxu1 %v5673_v46 }
  0x9a   :  { %3284 = vmatmul.mubr.bf16.gmra.mrb[44].mxu0 %v5674_v47  ;;  %2713 = vmatprep.mubr.bf16.mxu1 %v5676_v48 }
  0x9b   :  { %3291 = vmatprep.mubr.bf16.mxu0 %v5678_v49 }
  0xa1   :  { %2714 = vmatmul.mubr.bf16.gmra.mrb[48].mxu1 %v5680_v50 }
  0xa2   :  { %3292 = vmatmul.mubr.bf16.gmra.mrb[48].mxu0 %v5681_v51  ;;  %2721 = vmatprep.mubr.bf16.mxu1 %v5684_v52 }
  0xa3   :  { %3299 = vmatprep.mubr.bf16.mxu0 %v5686_v53 }
  0xa9   :  { %2722 = vmatmul.mubr.bf16.gmra.mrb[52].mxu1 %v5688_v55 }
  0xaa   :  { %3300 = vmatmul.mubr.bf16.gmra.mrb[52].mxu0 %v5689_v56  ;;  %2729 = vmatprep.mubr.bf16.mxu1 %v5691_v57 }
  0xab   :  { %3307 = vmatprep.mubr.bf16.mxu0 %v5693_v58 }
  0xb1   :  { %2730 = vmatmul.mubr.bf16.gmra.mrb[56].mxu1 %v5695_v59 }
  0xb2   :  { %3308 = vmatmul.mubr.bf16.gmra.mrb[56].mxu0 %v5696_v60  ;;  %2737 = vmatprep.mubr.bf16.mxu1 %v5699_v61 }
  0xb3   :  { %3315 = vmatprep.mubr.bf16.mxu0 %v5701_v62 }
  0xb9   :  { %2738 = vmatmul.mubr.bf16.gmra.mrb[60].mxu1 %v5703_v0 }
  0xba   :  { %3316 = vmatmul.mubr.bf16.gmra.mrb[60].mxu0 %v5704_v2  ;;  %2745 = vmatprep.mubr.bf16.mxu1 %v5706_v3 }
  0xbb   :  { %3484 = vmatprep.mubr.bf16.mxu0 %v5710_v4 }
  0xc1   :  { %2746 = vmatmul.mubr.bf16.gmra.mrb[64].mxu1 %v5711_v5 }
  0xc2   :  { %3485 = vmatmul.mubr.bf16.vlgmr.msra.gmra.mrb[0].mxu0 %v5708_v6  ;;  %2753 = vmatprep.mubr.bf16.mxu1 %v5714_v7 }
  0xc3   :  { %3742 = vmatpush1.bf16.msra.mxu0 %v5713_v8  ;;  %3492 = vmatprep.mubr.bf16.mxu0 %v5716_v9 }
  0xc4   :  { %3743 = vmatprep.subr.bf16.mxu0 %v6284_v1 }
  0xc7   :  { %3744 = vmatpush1.bf16.msra.mxu0 %v5727_v11 }
  0xc8   :  { %3745 = vmatprep.subr.bf16.mxu0 %v6284_v1 }
  0xc9   :  { %2754 = vmatmul.mubr.bf16.gmra.mrb[68].mxu1 %v5718_v10 }
  0xca   :  { %3493 = vmatmul.mubr.bf16.gmra.mrb[4].mxu0 %v5719_v12  ;;  %2761 = vmatprep.mubr.bf16.mxu1 %v5720_v13 }
  0xcb   :  { %3500 = vmatprep.mubr.bf16.mxu0 %v5722_v14  ;;  %3746 = vmatpush1.bf16.msra.mxu0 %v5741_v15 }
  0xcc   :  { %3747 = vmatprep.subr.bf16.mxu0 %v6284_v1 }
  0xcf   :  { %3748 = vmatpush1.bf16.msra.mxu0 %v5755_v17 }
  0xd0   :  { %3749 = vmatprep.subr.bf16.mxu0 %v6284_v1 }
  0xd1   :  { %2762 = vmatmul.mubr.bf16.gmra.mrb[72].mxu1 %v5724_v16 }
  0xd2   :  { %3501 = vmatmul.mubr.bf16.gmra.mrb[8].mxu0 %v5725_v18  ;;  %2769 = vmatprep.mubr.bf16.mxu1 %v5728_v19 }
  0xd3   :  { %3508 = vmatprep.mubr.bf16.mxu0 %v5730_v20  ;;  %3750 = vmatpush1.bf16.msra.mxu0 %v5769_v21 }
  0xd4   :  { %3751 = vmatprep.subr.bf16.mxu0 %v6284_v1 }
  0xd7   :  { %3752 = vmatpush1.bf16.msra.mxu0 %v5783_v23 }
  0xd8   :  { %3753 = vmatprep.subr.bf16.mxu0 %v6284_v1 }
  0xd9   :  { %2770 = vmatmul.mubr.bf16.gmra.mrb[76].mxu1 %v5732_v22 }
  0xda   :  { %3509 = vmatmul.mubr.bf16.gmra.mrb[12].mxu0 %v5733_v24  ;;  %2777 = vmatprep.mubr.bf16.mxu1 %v5734_v25 }
  0xdb   :  { %3516 = vmatprep.mubr.bf16.mxu0 %v5736_v26  ;;  %3754 = vmatpush1.bf16.msra.mxu0 %v5797_v27 }
  0xdc   :  { %3755 = vmatprep.subr.bf16.mxu0 %v6284_v1 }
  0xdf   :  { %3756 = vmatpush1.bf16.msra.mxu0 %v5811_v29 }
  0xe0   :  { %3757 = vmatprep.subr.bf16.mxu0 %v6284_v1 }
  0xe1   :  { %2778 = vmatmul.mubr.bf16.gmra.mrb[80].mxu1 %v5738_v28 }
  0xe2   :  { %3517 = vmatmul.mubr.bf16.gmra.mrb[16].mxu0 %v5739_v30  ;;  %2785 = vmatprep.mubr.bf16.mxu1 %v5742_v31 }
  0xe3   :  { %3524 = vmatprep.mubr.bf16.mxu0 %v5744_v32  ;;  %3758 = vmatpush1.bf16.msra.mxu0 %v5824_v33 }
  0xe4   :  { %3759 = vmatprep.subr.bf16.mxu0 %v6284_v1 }
  0xe7   :  { %3760 = vmatpush1.bf16.msra.mxu0 %v5837_v35 }
  0xe8   :  { %3761 = vmatprep.subr.bf16.mxu0 %v6284_v1 }
  0xe9   :  { %2786 = vmatmul.mubr.bf16.gmra.mrb[84].mxu1 %v5746_v34 }
  0xea   :  { %3525 = vmatmul.mubr.bf16.gmra.mrb[20].mxu0 %v5747_v36  ;;  %2793 = vmatprep.mubr.bf16.mxu1 %v5748_v37 }
  0xeb   :  { %3532 = vmatprep.mubr.bf16.mxu0 %v5750_v38  ;;  %3762 = vmatpush1.bf16.msra.mxu0 %v5850_v39 }
  0xec   :  { %3763 = vmatprep.subr.bf16.mxu0 %v6284_v1 }
  0xed   :  { %9 = vsyncpa [#allocation5], 0  ;;  %v5752_v40 = vld [vmem:[%s8363_s0 + $0x6e0] ss:$40 sps:$4 sm:$0xff]   ;;  %v5756_v42 = vld [vmem:[%s8363_s0 + $0x734] ss:$40 sps:$4 sm:$0xff]  }
  0xee   :  { %v5753_v41 = vld [vmem:[%s8363_s0 + $0x1f8] ss:$40 sps:$4 sm:$0xff]   ;;  %v5758_v43 = vld [vmem:[%s8363_s0 + $0x24c] ss:$40 sps:$4 sm:$0xff]   ;;  %v5761_v46 = vld [vmem:[%s8363_s0 + $0x248] ss:$40 sps:$4 sm:$0xff]  }
  0xef   :  { %v5863_v44 = vld [vmem:[%s8364_s1 + $0x258] sm:$0xff]   ;;  %v5762_v47 = vld [vmem:[%s8363_s0 + $0x784] ss:$40 sps:$4 sm:$0xff]   ;;  %v5766_v49 = vld [vmem:[%s8363_s0 + $0x780] ss:$40 sps:$4 sm:$0xff]  }
  0xf0   :  { %3764 = vmatpush1.bf16.msra.mxu0 %v5863_v44  ;;  %v5760_v45 = vld [vmem:[%s8363_s0 + $0x730] ss:$40 sps:$4 sm:$0xff]   ;;  %v5764_v48 = vld [vmem:[%s8363_s0 + $0x29c] ss:$40 sps:$4 sm:$0xff]   ;;  %v5772_v52 = vld [vmem:[%s8363_s0 + $0x2ec] ss:$40 sps:$4 sm:$0xff]  }
  0xf1   :  { %2794 = vmatmul.mubr.bf16.gmra.mrb[88].mxu1 %v5752_v40  ;;  %3765 = vmatprep.subr.bf16.mxu0 %v6284_v1  ;;  %v5767_v50 = vld [vmem:[%s8363_s0 + $0x298] ss:$40 sps:$4 sm:$0xff]   ;;  %v5770_v51 = vld [vmem:[%s8363_s0 + $0x7d4] ss:$40 sps:$4 sm:$0xff]   ;;  %v5775_v55 = vld [vmem:[%s8363_s0 + $0x2e8] ss:$40 sps:$4 sm:$0xff]  }
  0xf2   :  { %3533 = vmatmul.mubr.bf16.gmra.mrb[24].mxu0 %v5753_v41  ;;  %2801 = vmatprep.mubr.bf16.mxu1 %v5756_v42  ;;  %v5876_v53 = vld [vmem:[%s8364_s1 + $0x260] sm:$0xff]   ;;  %v5774_v54 = vld [vmem:[%s8363_s0 + $0x7d0] ss:$40 sps:$4 sm:$0xff]   ;;  %v5784_v60 = vld [vmem:[%s8363_s0 + $0x874] ss:$40 sps:$4 sm:$0xff]  }
  0xf3   :  { %3540 = vmatprep.mubr.bf16.mxu0 %v5758_v43  ;;  %v5776_v56 = vld [vmem:[%s8363_s0 + $0x824] ss:$40 sps:$4 sm:$0xff]   ;;  %v5780_v58 = vld [vmem:[%s8363_s0 + $0x820] ss:$40 sps:$4 sm:$0xff]   ;;  %v5788_v63 = vld [vmem:[%s8363_s0 + $0x870] ss:$40 sps:$4 sm:$0xff]  }
  0xf4   :  { %3766 = vmatpush1.bf16.msra.mxu0 %v5876_v53  ;;  %v5778_v57 = vld [vmem:[%s8363_s0 + $0x33c] ss:$40 sps:$4 sm:$0xff]   ;;  %v5781_v59 = vld [vmem:[%s8363_s0 + $0x338] ss:$40 sps:$4 sm:$0xff]   ;;  %v5786_v61 = vld [vmem:[%s8363_s0 + $0x38c] ss:$40 sps:$4 sm:$0xff]  }
  0xf5   :  { %3767 = vmatprep.subr.bf16.mxu0 %v6284_v1  ;;  %v5889_v62 = vld [vmem:[%s8364_s1 + $0x268] sm:$0xff]   ;;  %v5792_v3 = vld [vmem:[%s8363_s0 + $0x3dc] ss:$40 sps:$4 sm:$0xff]   ;;  %v5795_v5 = vld [vmem:[%s8363_s0 + $0x3d8] ss:$40 sps:$4 sm:$0xff]  }
  0xf6   :  { %v5789_v0 = vld [vmem:[%s8363_s0 + $0x388] ss:$40 sps:$4 sm:$0xff]   ;;  %v5790_v2 = vld [vmem:[%s8363_s0 + $0x8c4] ss:$40 sps:$4 sm:$0xff]   ;;  %v5798_v6 = vld [vmem:[%s8363_s0 + $0x914] ss:$40 sps:$4 sm:$0xff]  }
  0xf7   :  { %v5794_v4 = vld [vmem:[%s8363_s0 + $0x8c0] ss:$40 sps:$4 sm:$0xff]   ;;  %v5800_v7 = vld [vmem:[%s8363_s0 + $0x42c] ss:$40 sps:$4 sm:$0xff]   ;;  %v5802_v9 = vld [vmem:[%s8363_s0 + $0x910] ss:$40 sps:$4 sm:$0xff]  }
  0xf8   :  { %3768 = vmatpush1.bf16.msra.mxu0 %v5889_v62  ;;  %v5902_v8 = vld [vmem:[%s8364_s1 + $0x270] sm:$0xff]   ;;  %v5804_v11 = vld [vmem:[%s8363_s0 + $0x964] ss:$40 sps:$4 sm:$0xff]   ;;  %v5808_v13 = vld [vmem:[%s8363_s0 + $0x960] ss:$40 sps:$4 sm:$0xff]  }
  0xf9   :  { %2802 = vmatmul.mubr.bf16.gmra.mrb[92].mxu1 %v5760_v45  ;;  %3769 = vmatprep.subr.bf16.mxu0 %v6284_v1  ;;  %v5803_v10 = vld [vmem:[%s8363_s0 + $0x428] ss:$40 sps:$4 sm:$0xff]   ;;  %v5806_v12 = vld [vmem:[%s8363_s0 + $0x47c] ss:$40 sps:$4 sm:$0xff]   ;;  %v5809_v14 = vld [vmem:[%s8363_s0 + $0x478] ss:$40 sps:$4 sm:$0xff]  }
  0xfa   :  { %3541 = vmatmul.mubr.bf16.gmra.mrb[28].mxu0 %v5761_v46  ;;  %2809 = vmatprep.mubr.bf16.mxu1 %v5762_v47  ;;  %v5812_v15 = vld [vmem:[%s8363_s0 + $0x9b4] ss:$40 sps:$4 sm:$0xff]   ;;  %v5816_v18 = vld [vmem:[%s8363_s0 + $0x9b0] ss:$40 sps:$4 sm:$0xff]   ;;  %v6244_v26 = vld [vmem:[%s8364_s1 + $0x100] sm:$0xff]  }
  0xfb   :  { %3548 = vmatprep.mubr.bf16.mxu0 %v5764_v48  ;;  %v5814_v16 = vld [vmem:[%s8363_s0 + $0x4cc] ss:$40 sps:$4 sm:$0xff]   ;;  %v5915_v17 = vld [vmem:[%s8364_s1 + $0x278] sm:$0xff]   ;;  %v5817_v19 = vld [vmem:[%s8363_s0 + $0x4c8] ss:$40 sps:$4 sm:$0xff]  }
  0xfc   :  { %3770 = vmatpush1.bf16.msra.mxu0 %v5902_v8  ;;  %v5820_v20 = vld [vmem:[%s8363_s0 + $0xc] ss:$40 sps:$4 sm:$0xff]   ;;  %v5821_v21 = vld [vmem:[%s8363_s0 + $0x51c] ss:$40 sps:$4 sm:$0xff]   ;;  %v5818_v22 = vld [vmem:[%s8363_s0 + $0x8] ss:$40 sps:$4 sm:$0xff]  }
  0xfd   :  { %3771 = vmatprep.subr.bf16.mxu0 %v6284_v1  ;;  %v5823_v23 = vld [vmem:[%s8363_s0 + $0x518] ss:$40 sps:$4 sm:$0xff]   ;;  %v5825_v24 = vld [vmem:[%s8363_s0 + $0x5c] ss:$40 sps:$4 sm:$0xff]   ;;  %v5827_v25 = vld [vmem:[%s8363_s0 + $0x56c] ss:$40 sps:$4 sm:$0xff]  }
  0xfe   :  { %v5829_v27 = vld [vmem:[%s8363_s0 + $0x58] ss:$40 sps:$4 sm:$0xff]   ;;  %v5830_v28 = vld [vmem:[%s8363_s0 + $0x568] ss:$40 sps:$4 sm:$0xff]   ;;  %v5831_v29 = vld [vmem:[%s8363_s0 + $0xac] ss:$40 sps:$4 sm:$0xff]  }
  0xff   :  { %v6245_v30 = vld [vmem:[%s8364_s1 + $0x108] sm:$0xff]   ;;  %v5833_v31 = vld [vmem:[%s8363_s0 + $0x5bc] ss:$40 sps:$4 sm:$0xff]   ;;  %v6246_v32 = vld [vmem:[%s8364_s1 + $0x110] sm:$0xff]  }
 0x100   :  { %3772 = vmatpush1.bf16.msra.mxu0 %v5915_v17  ;;  %v5835_v33 = vld [vmem:[%s8363_s0 + $0xa8] ss:$40 sps:$4 sm:$0xff]   ;;  %v5836_v34 = vld [vmem:[%s8363_s0 + $0x5b8] ss:$40 sps:$4 sm:$0xff]   ;;  %v5838_v35 = vld [vmem:[%s8363_s0 + $0xfc] ss:$40 sps:$4 sm:$0xff]  }
 0x101   :  { %2810 = vmatmul.mubr.bf16.gmra.mrb[96].mxu1 %v5766_v49  ;;  %v5840_v36 = vld [vmem:[%s8363_s0 + $0x60c] ss:$40 sps:$4 sm:$0xff]   ;;  %v6247_v37 = vld [vmem:[%s8364_s1 + $0x118] sm:$0xff]   ;;  %v6248_v38 = vld [vmem:[%s8364_s1 + $0x120] sm:$0xff]  }
 0x102   :  { %3549 = vmatmul.mubr.bf16.gmra.mrb[32].mxu0 %v5767_v50  ;;  %2817 = vmatprep.mubr.bf16.mxu1 %v5770_v51  ;;  %v5842_v39 = vld [vmem:[%s8363_s0 + $0xf8] ss:$40 sps:$4 sm:$0xff]   ;;  %v5843_v40 = vld [vmem:[%s8363_s0 + $0x608] ss:$40 sps:$4 sm:$0xff]   ;;  %v5844_v41 = vld [vmem:[%s8363_s0 + $0x14c] ss:$40 sps:$4 sm:$0xff]  }
 0x103   :  { %3556 = vmatprep.mubr.bf16.mxu0 %v5772_v52  ;;  %v5846_v42 = vld [vmem:[%s8363_s0 + $0x65c] ss:$40 sps:$4 sm:$0xff]   ;;  %v6249_v43 = vld [vmem:[%s8364_s1 + $0x128] sm:$0xff]   ;;  %v6250_v44 = vld [vmem:[%s8364_s1 + $0x130] sm:$0xff]  }
 0x104   :  { %v5848_v45 = vld [vmem:[%s8363_s0 + $0x148] ss:$40 sps:$4 sm:$0xff]   ;;  %v5849_v46 = vld [vmem:[%s8363_s0 + $0x658] ss:$40 sps:$4 sm:$0xff]   ;;  %v5851_v47 = vld [vmem:[%s8363_s0 + $0x19c] ss:$40 sps:$4 sm:$0xff]  }
 0x105   :  { %v5853_v48 = vld [vmem:[%s8363_s0 + $0x6ac] ss:$40 sps:$4 sm:$0xff]   ;;  %v6251_v49 = vld [vmem:[%s8364_s1 + $0x138] sm:$0xff]   ;;  %v6252_v50 = vld [vmem:[%s8364_s1 + $0x140] sm:$0xff]  }
 0x106   :  { %v5855_v51 = vld [vmem:[%s8363_s0 + $0x198] ss:$40 sps:$4 sm:$0xff]   ;;  %v5856_v52 = vld [vmem:[%s8363_s0 + $0x6a8] ss:$40 sps:$4 sm:$0xff]   ;;  %v5857_v53 = vld [vmem:[%s8363_s0 + $0x1ec] ss:$40 sps:$4 sm:$0xff]  }
 0x107   :  { %v6256_v62 = vld [vmem:[%s8364_s1 + $0x160] sm:$0xff]   ;;  %v5892_v17 = vld [vmem:[%s8363_s0 + $0x88c] ss:$40 sps:$4 sm:$0xff]  }
 0x108   :  { %v5877_v8 = vld [vmem:[%s8363_s0 + $0x2dc] ss:$40 sps:$4 sm:$0xff]  }
 0x109   :  { %2818 = vmatmul.mubr.bf16.gmra.mrb[100].mxu1 %v5774_v54  ;;  %v5859_v54 = vld [vmem:[%s8363_s0 + $0x6fc] ss:$40 sps:$4 sm:$0xff]  }
 0x10a   :  { %3557 = vmatmul.mubr.bf16.gmra.mrb[36].mxu0 %v5775_v55  ;;  %2825 = vmatprep.mubr.bf16.mxu1 %v5776_v56  ;;  %v6253_v55 = vld [vmem:[%s8364_s1 + $0x148] sm:$0xff]   ;;  %v6254_v56 = vld [vmem:[%s8364_s1 + $0x150] sm:$0xff]  }
 0x10b   :  { %3564 = vmatprep.mubr.bf16.mxu0 %v5778_v57  ;;  %v5861_v57 = vld [vmem:[%s8363_s0 + $0x1e8] ss:$40 sps:$4 sm:$0xff]  }
 0x111   :  { %2826 = vmatmul.mubr.bf16.gmra.mrb[104].mxu1 %v5780_v58  ;;  %v5862_v58 = vld [vmem:[%s8363_s0 + $0x6f8] ss:$40 sps:$4 sm:$0xff]  }
 0x112   :  { %3565 = vmatmul.mubr.bf16.gmra.mrb[40].mxu0 %v5781_v59  ;;  %2833 = vmatprep.mubr.bf16.mxu1 %v5784_v60  ;;  %v5864_v59 = vld [vmem:[%s8363_s0 + $0x23c] ss:$40 sps:$4 sm:$0xff]   ;;  %v5866_v60 = vld [vmem:[%s8363_s0 + $0x74c] ss:$40 sps:$4 sm:$0xff]  }
 0x113   :  { %3572 = vmatprep.mubr.bf16.mxu0 %v5786_v61  ;;  %v6255_v61 = vld [vmem:[%s8364_s1 + $0x158] sm:$0xff]  }
 0x119   :  { %2834 = vmatmul.mubr.bf16.gmra.mrb[108].mxu1 %v5788_v63  ;;  %v5868_v63 = vld [vmem:[%s8363_s0 + $0x238] ss:$40 sps:$4 sm:$0xff]  }
 0x11a   :  { %3573 = vmatmul.mubr.bf16.gmra.mrb[44].mxu0 %v5789_v0  ;;  %2841 = vmatprep.mubr.bf16.mxu1 %v5790_v2  ;;  %v5869_v0 = vld [vmem:[%s8363_s0 + $0x748] ss:$40 sps:$4 sm:$0xff]   ;;  %v5870_v2 = vld [vmem:[%s8363_s0 + $0x28c] ss:$40 sps:$4 sm:$0xff]  }
 0x11b   :  { %3580 = vmatprep.mubr.bf16.mxu0 %v5792_v3  ;;  %v5872_v3 = vld [vmem:[%s8363_s0 + $0x79c] ss:$40 sps:$4 sm:$0xff]  }
 0x121   :  { %2842 = vmatmul.mubr.bf16.gmra.mrb[112].mxu1 %v5794_v4  ;;  %v6257_v4 = vld [vmem:[%s8364_s1 + $0x168] sm:$0xff]  }
 0x122   :  { %3581 = vmatmul.mubr.bf16.gmra.mrb[48].mxu0 %v5795_v5  ;;  %2849 = vmatprep.mubr.bf16.mxu1 %v5798_v6  ;;  %v6258_v5 = vld [vmem:[%s8364_s1 + $0x170] sm:$0xff]  }
 0x123   :  { %3588 = vmatprep.mubr.bf16.mxu0 %v5800_v7  ;;  %v5874_v6 = vld [vmem:[%s8363_s0 + $0x288] ss:$40 sps:$4 sm:$0xff]   ;;  %v5875_v7 = vld [vmem:[%s8363_s0 + $0x798] ss:$40 sps:$4 sm:$0xff]  }
 0x129   :  { %2850 = vmatmul.mubr.bf16.gmra.mrb[116].mxu1 %v5802_v9  ;;  %v5879_v9 = vld [vmem:[%s8363_s0 + $0x7ec] ss:$40 sps:$4 sm:$0xff]  }
 0x12a   :  { %3589 = vmatmul.mubr.bf16.gmra.mrb[52].mxu0 %v5803_v10  ;;  %2857 = vmatprep.mubr.bf16.mxu1 %v5804_v11  ;;  %v5881_v10 = vld [vmem:[%s8363_s0 + $0x2d8] ss:$40 sps:$4 sm:$0xff]   ;;  %v5882_v11 = vld [vmem:[%s8363_s0 + $0x7e8] ss:$40 sps:$4 sm:$0xff]  }
 0x12b   :  { %3596 = vmatprep.mubr.bf16.mxu0 %v5806_v12  ;;  %v5883_v12 = vld [vmem:[%s8363_s0 + $0x32c] ss:$40 sps:$4 sm:$0xff]  }
 0x131   :  { %2858 = vmatmul.mubr.bf16.gmra.mrb[120].mxu1 %v5808_v13  ;;  %v5885_v13 = vld [vmem:[%s8363_s0 + $0x83c] ss:$40 sps:$4 sm:$0xff]  }
 0x132   :  { %3597 = vmatmul.mubr.bf16.gmra.mrb[56].mxu0 %v5809_v14  ;;  %2865 = vmatprep.mubr.bf16.mxu1 %v5812_v15  ;;  %v5887_v14 = vld [vmem:[%s8363_s0 + $0x328] ss:$40 sps:$4 sm:$0xff]   ;;  %v5888_v15 = vld [vmem:[%s8363_s0 + $0x838] ss:$40 sps:$4 sm:$0xff]  }
 0x133   :  { %3604 = vmatprep.mubr.bf16.mxu0 %v5814_v16  ;;  %v5890_v16 = vld [vmem:[%s8363_s0 + $0x37c] ss:$40 sps:$4 sm:$0xff]  }
 0x139   :  { %2866 = vmatmul.mubr.bf16.gmra.mrb[124].mxu1 %v5816_v18  ;;  %v5894_v18 = vld [vmem:[%s8363_s0 + $0x378] ss:$40 sps:$4 sm:$0xff]  }
 0x13a   :  { %3605 = vmatmul.mubr.bf16.gmra.mrb[60].mxu0 %v5817_v19  ;;  %2906 = vmatprep.mubr.bf16.mxu1 %v5820_v20  ;;  %v5895_v19 = vld [vmem:[%s8363_s0 + $0x888] ss:$40 sps:$4 sm:$0xff]   ;;  %v5896_v20 = vld [vmem:[%s8363_s0 + $0x3cc] ss:$40 sps:$4 sm:$0xff]  }
 0x13b   :  { %3612 = vmatprep.mubr.bf16.mxu0 %v5821_v21  ;;  %v5898_v21 = vld [vmem:[%s8363_s0 + $0x8dc] ss:$40 sps:$4 sm:$0xff]  }
 0x141   :  { %2907 = vmatmul.mubr.bf16.vlgmr.msra.gmra.mrb[0].mxu1 %v5818_v22  ;;  %v5900_v22 = vld [vmem:[%s8363_s0 + $0x3c8] ss:$40 sps:$4 sm:$0xff]  }
 0x142   :  { %3613 = vmatmul.mubr.bf16.gmra.mrb[64].mxu0 %v5823_v23  ;;  %5085 = vmatpush1.bf16.msra.mxu1 %v6244_v26  ;;  %v5901_v23 = vld [vmem:[%s8363_s0 + $0x8d8] ss:$40 sps:$4 sm:$0xff]  }
 0x143   :  { %2914 = vmatprep.mubr.bf16.mxu1 %v5825_v24  ;;  %3620 = vmatprep.mubr.bf16.mxu0 %v5827_v25  ;;  %v5903_v24 = vld [vmem:[%s8363_s0 + $0x41c] ss:$40 sps:$4 sm:$0xff]   ;;  %v5905_v25 = vld [vmem:[%s8363_s0 + $0x92c] ss:$40 sps:$4 sm:$0xff]   ;;  %v5907_v26 = vld [vmem:[%s8363_s0 + $0x418] ss:$40 sps:$4 sm:$0xff]  }
 0x144   :  { %5070 = vmatprep.subr.bf16.mxu1 %v6284_v1 }
 0x146   :  { %5086 = vmatpush1.bf16.msra.mxu1 %v6245_v30  ;;  %v5913_v30 = vld [vmem:[%s8363_s0 + $0x468] ss:$40 sps:$4 sm:$0xff]  }
 0x147   :  { %5071 = vmatprep.subr.bf16.mxu1 %v6284_v1 }
 0x149   :  { %2915 = vmatmul.mubr.bf16.gmra.mrb[4].mxu1 %v5829_v27  ;;  %v5908_v27 = vld [vmem:[%s8363_s0 + $0x928] ss:$40 sps:$4 sm:$0xff]  }
 0x14a   :  { %3621 = vmatmul.mubr.bf16.gmra.mrb[68].mxu0 %v5830_v28  ;;  %2922 = vmatprep.mubr.bf16.mxu1 %v5831_v29  ;;  %v5909_v28 = vld [vmem:[%s8363_s0 + $0x46c] ss:$40 sps:$4 sm:$0xff]   ;;  %v5911_v29 = vld [vmem:[%s8363_s0 + $0x97c] ss:$40 sps:$4 sm:$0xff]  }
 0x14b   :  { %3628 = vmatprep.mubr.bf16.mxu0 %v5833_v31  ;;  %5087 = vmatpush1.bf16.msra.mxu1 %v6246_v32  ;;  %v5914_v31 = vld [vmem:[%s8363_s0 + $0x978] ss:$40 sps:$4 sm:$0xff]   ;;  %v5916_v32 = vld [vmem:[%s8363_s0 + $0x4bc] ss:$40 sps:$4 sm:$0xff]  }
 0x14c   :  { %5072 = vmatprep.subr.bf16.mxu1 %v6284_v1 }
 0x14f   :  { %5088 = vmatpush1.bf16.msra.mxu1 %v6247_v37  ;;  %v5926_v37 = vld [vmem:[%s8363_s0 + $0x24] ss:$40 sps:$4 sm:$0xff]  }
 0x150   :  { %5073 = vmatprep.subr.bf16.mxu1 %v6284_v1 }
 0x151   :  { %2923 = vmatmul.mubr.bf16.gmra.mrb[8].mxu1 %v5835_v33  ;;  %v5918_v33 = vld [vmem:[%s8363_s0 + $0x9cc] ss:$40 sps:$4 sm:$0xff]  }
 0x152   :  { %3629 = vmatmul.mubr.bf16.gmra.mrb[72].mxu0 %v5836_v34  ;;  %2930 = vmatprep.mubr.bf16.mxu1 %v5838_v35  ;;  %v5920_v34 = vld [vmem:[%s8363_s0 + $0x4b8] ss:$40 sps:$4 sm:$0xff]   ;;  %v5921_v35 = vld [vmem:[%s8363_s0 + $0x9c8] ss:$40 sps:$4 sm:$0xff]  }
 0x153   :  { %3636 = vmatprep.mubr.bf16.mxu0 %v5840_v36  ;;  %5089 = vmatpush1.bf16.msra.mxu1 %v6248_v38  ;;  %v5922_v36 = vld [vmem:[%s8363_s0 + $0x50c] ss:$40 sps:$4 sm:$0xff]   ;;  %v5927_v38 = vld [vmem:[%s8363_s0 + $0x508] ss:$40 sps:$4 sm:$0xff]  }
 0x154   :  { %5074 = vmatprep.subr.bf16.mxu1 %v6284_v1 }
 0x157   :  { %5090 = vmatpush1.bf16.msra.mxu1 %v6249_v43  ;;  %v5933_v43 = vld [vmem:[%s8363_s0 + $0x70] ss:$40 sps:$4 sm:$0xff]  }
 0x158   :  { %5075 = vmatprep.subr.bf16.mxu1 %v6284_v1 }
 0x159   :  { %2931 = vmatmul.mubr.bf16.gmra.mrb[12].mxu1 %v5842_v39  ;;  %v5924_v39 = vld [vmem:[%s8363_s0 + $0x20] ss:$40 sps:$4 sm:$0xff]  }
 0x15a   :  { %3637 = vmatmul.mubr.bf16.gmra.mrb[76].mxu0 %v5843_v40  ;;  %2938 = vmatprep.mubr.bf16.mxu1 %v5844_v41  ;;  %v5928_v40 = vld [vmem:[%s8363_s0 + $0x55c] ss:$40 sps:$4 sm:$0xff]  }
 0x15b   :  { %3644 = vmatprep.mubr.bf16.mxu0 %v5846_v42  ;;  %5091 = vmatpush1.bf16.msra.mxu1 %v6250_v44  ;;  %v5930_v41 = vld [vmem:[%s8363_s0 + $0x74] ss:$40 sps:$4 sm:$0xff]   ;;  %v5932_v42 = vld [vmem:[%s8363_s0 + $0x558] ss:$40 sps:$4 sm:$0xff]  }
 0x15c   :  { %5076 = vmatprep.subr.bf16.mxu1 %v6284_v1  ;;  %v5934_v44 = vld [vmem:[%s8363_s0 + $0x5ac] ss:$40 sps:$4 sm:$0xff]  }
 0x15f   :  { %5092 = vmatpush1.bf16.msra.mxu1 %v6251_v49  ;;  %v5942_v49 = vld [vmem:[%s8363_s0 + $0x114] ss:$40 sps:$4 sm:$0xff]  }
 0x160   :  { %5077 = vmatprep.subr.bf16.mxu1 %v6284_v1 }
 0x161   :  { %2939 = vmatmul.mubr.bf16.gmra.mrb[16].mxu1 %v5848_v45  ;;  %v5936_v45 = vld [vmem:[%s8363_s0 + $0xc4] ss:$40 sps:$4 sm:$0xff]  }
 0x162   :  { %3645 = vmatmul.mubr.bf16.gmra.mrb[80].mxu0 %v5849_v46  ;;  %2946 = vmatprep.mubr.bf16.mxu1 %v5851_v47  ;;  %v5938_v46 = vld [vmem:[%s8363_s0 + $0x5a8] ss:$40 sps:$4 sm:$0xff]  }
 0x163   :  { %3652 = vmatprep.mubr.bf16.mxu0 %v5853_v48  ;;  %5093 = vmatpush1.bf16.msra.mxu1 %v6252_v50  ;;  %v5939_v47 = vld [vmem:[%s8363_s0 + $0xc0] ss:$40 sps:$4 sm:$0xff]   ;;  %v5940_v48 = vld [vmem:[%s8363_s0 + $0x5fc] ss:$40 sps:$4 sm:$0xff]  }
 0x164   :  { %5078 = vmatprep.subr.bf16.mxu1 %v6284_v1  ;;  %v5944_v50 = vld [vmem:[%s8363_s0 + $0x5f8] ss:$40 sps:$4 sm:$0xff]  }
 0x167   :  { %5094 = vmatpush1.bf16.msra.mxu1 %v6253_v55  ;;  %v5951_v55 = vld [vmem:[%s8363_s0 + $0x160] ss:$40 sps:$4 sm:$0xff]  }
 0x168   :  { %5079 = vmatprep.subr.bf16.mxu1 %v6284_v1 }
 0x169   :  { %2947 = vmatmul.mubr.bf16.gmra.mrb[20].mxu1 %v5855_v51  ;;  %v5945_v51 = vld [vmem:[%s8363_s0 + $0x110] ss:$40 sps:$4 sm:$0xff]  }
 0x16a   :  { %3653 = vmatmul.mubr.bf16.gmra.mrb[84].mxu0 %v5856_v52  ;;  %2954 = vmatprep.mubr.bf16.mxu1 %v5857_v53  ;;  %v5946_v52 = vld [vmem:[%s8363_s0 + $0x64c] ss:$40 sps:$4 sm:$0xff]  }
 0x16b   :  { %3660 = vmatprep.mubr.bf16.mxu0 %v5859_v54  ;;  %5095 = vmatpush1.bf16.msra.mxu1 %v6254_v56  ;;  %v5948_v53 = vld [vmem:[%s8363_s0 + $0x164] ss:$40 sps:$4 sm:$0xff]   ;;  %v5950_v54 = vld [vmem:[%s8363_s0 + $0x648] ss:$40 sps:$4 sm:$0xff]  }
 0x16c   :  { %5080 = vmatprep.subr.bf16.mxu1 %v6284_v1  ;;  %v5952_v56 = vld [vmem:[%s8363_s0 + $0x69c] ss:$40 sps:$4 sm:$0xff]  }
 0x16f   :  { %5096 = vmatpush1.bf16.msra.mxu1 %v6255_v61  ;;  %v5960_v61 = vld [vmem:[%s8363_s0 + $0x204] ss:$40 sps:$4 sm:$0xff]  }
 0x170   :  { %5081 = vmatprep.subr.bf16.mxu1 %v6284_v1 }
 0x171   :  { %2955 = vmatmul.mubr.bf16.gmra.mrb[24].mxu1 %v5861_v57  ;;  %v5954_v57 = vld [vmem:[%s8363_s0 + $0x1b4] ss:$40 sps:$4 sm:$0xff]  }
 0x172   :  { %3661 = vmatmul.mubr.bf16.gmra.mrb[88].mxu0 %v5862_v58  ;;  %2962 = vmatprep.mubr.bf16.mxu1 %v5864_v59  ;;  %v5956_v58 = vld [vmem:[%s8363_s0 + $0x698] ss:$40 sps:$4 sm:$0xff]  }
 0x173   :  { %3668 = vmatprep.mubr.bf16.mxu0 %v5866_v60  ;;  %5097 = vmatpush1.bf16.msra.mxu1 %v6256_v62  ;;  %v5957_v59 = vld [vmem:[%s8363_s0 + $0x1b0] ss:$40 sps:$4 sm:$0xff]   ;;  %v5958_v60 = vld [vmem:[%s8363_s0 + $0x6ec] ss:$40 sps:$4 sm:$0xff]  }
 0x174   :  { %5082 = vmatprep.subr.bf16.mxu1 %v6284_v1  ;;  %v5962_v62 = vld [vmem:[%s8363_s0 + $0x6e8] ss:$40 sps:$4 sm:$0xff]  }
 0x177   :  { %5098 = vmatpush1.bf16.msra.mxu1 %v6257_v4  ;;  %v5969_v4 = vld [vmem:[%s8363_s0 + $0x250] ss:$40 sps:$4 sm:$0xff]  }
 0x178   :  { %5083 = vmatprep.subr.bf16.mxu1 %v6284_v1 }
 0x179   :  { %2963 = vmatmul.mubr.bf16.gmra.mrb[28].mxu1 %v5868_v63  ;;  %v5963_v63 = vld [vmem:[%s8363_s0 + $0x200] ss:$40 sps:$4 sm:$0xff]  }
 0x17a   :  { %3669 = vmatmul.mubr.bf16.gmra.mrb[92].mxu0 %v5869_v0  ;;  %2970 = vmatprep.mubr.bf16.mxu1 %v5870_v2  ;;  %v5964_v0 = vld [vmem:[%s8363_s0 + $0x73c] ss:$40 sps:$4 sm:$0xff]  }
 0x17b   :  { %3676 = vmatprep.mubr.bf16.mxu0 %v5872_v3  ;;  %5099 = vmatpush1.bf16.msra.mxu1 %v6258_v5  ;;  %v5966_v2 = vld [vmem:[%s8363_s0 + $0x254] ss:$40 sps:$4 sm:$0xff]   ;;  %v5968_v3 = vld [vmem:[%s8363_s0 + $0x738] ss:$40 sps:$4 sm:$0xff]  }
 0x17c   :  { %5084 = vmatprep.subr.bf16.mxu1 %v6284_v1  ;;  %v6259_v1 = vld [vmem:[%s8364_s1 + $0x178] sm:$0xff]   ;;  %v5970_v5 = vld [vmem:[%s8363_s0 + $0x78c] ss:$40 sps:$4 sm:$0xff]  }
 0x17f   :  { %5100 = vmatpush1.bf16.msra.mxu1 %v6259_v1  ;;  %v5978_v1 = vld [vmem:[%s8363_s0 + $0x2f4] ss:$40 sps:$4 sm:$0xff]  }
 0x181   :  { %2971 = vmatmul.mubr.bf16.gmra.mrb[32].mxu1 %v5874_v6  ;;  %v5972_v6 = vld [vmem:[%s8363_s0 + $0x2a4] ss:$40 sps:$4 sm:$0xff]  }
 0x182   :  { %3677 = vmatmul.mubr.bf16.gmra.mrb[96].mxu0 %v5875_v7  ;;  %2978 = vmatprep.mubr.bf16.mxu1 %v5877_v8  ;;  %v5974_v7 = vld [vmem:[%s8363_s0 + $0x788] ss:$40 sps:$4 sm:$0xff]  }
 0x183   :  { %3684 = vmatprep.mubr.bf16.mxu0 %v5879_v9  ;;  %v5975_v8 = vld [vmem:[%s8363_s0 + $0x2a0] ss:$40 sps:$4 sm:$0xff]   ;;  %v5976_v9 = vld [vmem:[%s8363_s0 + $0x7dc] ss:$40 sps:$4 sm:$0xff]  }
 0x189   :  { %2979 = vmatmul.mubr.bf16.gmra.mrb[36].mxu1 %v5881_v10  ;;  %v5980_v10 = vld [vmem:[%s8363_s0 + $0x7d8] ss:$40 sps:$4 sm:$0xff]  }
 0x18a   :  { %3685 = vmatmul.mubr.bf16.gmra.mrb[100].mxu0 %v5882_v11  ;;  %2986 = vmatprep.mubr.bf16.mxu1 %v5883_v12  ;;  %v5981_v11 = vld [vmem:[%s8363_s0 + $0x2f0] ss:$40 sps:$4 sm:$0xff]   ;;  %v5982_v12 = vld [vmem:[%s8363_s0 + $0x82c] ss:$40 sps:$4 sm:$0xff]  }
 0x18b   :  { %3692 = vmatprep.mubr.bf16.mxu0 %v5885_v13  ;;  %v5984_v13 = vld [vmem:[%s8363_s0 + $0x344] ss:$40 sps:$4 sm:$0xff]  }
 0x191   :  { %2987 = vmatmul.mubr.bf16.gmra.mrb[40].mxu1 %v5887_v14  ;;  %v5986_v14 = vld [vmem:[%s8363_s0 + $0x828] ss:$40 sps:$4 sm:$0xff]  }
 0x192   :  { %3693 = vmatmul.mubr.bf16.gmra.mrb[104].mxu0 %v5888_v15  ;;  %2994 = vmatprep.mubr.bf16.mxu1 %v5890_v16  ;;  %v5987_v15 = vld [vmem:[%s8363_s0 + $0x340] ss:$40 sps:$4 sm:$0xff]   ;;  %v5988_v16 = vld [vmem:[%s8363_s0 + $0x87c] ss:$40 sps:$4 sm:$0xff]  }
 0x193   :  { %3700 = vmatprep.mubr.bf16.mxu0 %v5892_v17  ;;  %v5990_v17 = vld [vmem:[%s8363_s0 + $0x394] ss:$40 sps:$4 sm:$0xff]  }
 0x199   :  { %2995 = vmatmul.mubr.bf16.gmra.mrb[44].mxu1 %v5894_v18 }
 0x19a   :  { %3701 = vmatmul.mubr.bf16.gmra.mrb[108].mxu0 %v5895_v19  ;;  %3002 = vmatprep.mubr.bf16.mxu1 %v5896_v20  ;;  %v5992_v20 = vld [vmem:[%s8363_s0 + $0x878] ss:$40 sps:$4 sm:$0xff]  }
 0x19b   :  { %3708 = vmatprep.mubr.bf16.mxu0 %v5898_v21 }
 0x1a1   :  { %3003 = vmatmul.mubr.bf16.gmra.mrb[48].mxu1 %v5900_v22  ;;  %v5993_v22 = vld [vmem:[%s8363_s0 + $0x390] ss:$40 sps:$4 sm:$0xff]  }
 0x1a2   :  { %3709 = vmatmul.mubr.bf16.gmra.mrb[112].mxu0 %v5901_v23  ;;  %3010 = vmatprep.mubr.bf16.mxu1 %v5903_v24  ;;  %v5994_v23 = vld [vmem:[%s8363_s0 + $0x8cc] ss:$40 sps:$4 sm:$0xff]  }
 0x1a3   :  { %3716 = vmatprep.mubr.bf16.mxu0 %v5905_v25  ;;  %v5996_v25 = vld [vmem:[%s8363_s0 + $0x3e4] ss:$40 sps:$4 sm:$0xff]  }
 0x1a9   :  { %3011 = vmatmul.mubr.bf16.gmra.mrb[52].mxu1 %v5907_v26 }
 0x1aa   :  { %3717 = vmatmul.mubr.bf16.gmra.mrb[116].mxu0 %v5908_v27  ;;  %3018 = vmatprep.mubr.bf16.mxu1 %v5909_v28  ;;  %v5998_v28 = vld [vmem:[%s8363_s0 + $0x8c8] ss:$40 sps:$4 sm:$0xff]  }
 0x1ab   :  { %3724 = vmatprep.mubr.bf16.mxu0 %v5911_v29 }
 0x1b1   :  { %3019 = vmatmul.mubr.bf16.gmra.mrb[56].mxu1 %v5913_v30  ;;  %v5999_v30 = vld [vmem:[%s8363_s0 + $0x3e0] ss:$40 sps:$4 sm:$0xff]  }
 0x1b2   :  { %3725 = vmatmul.mubr.bf16.gmra.mrb[120].mxu0 %v5914_v31  ;;  %3026 = vmatprep.mubr.bf16.mxu1 %v5916_v32  ;;  %v6000_v31 = vld [vmem:[%s8363_s0 + $0x91c] ss:$40 sps:$4 sm:$0xff]  }
 0x1b3   :  { %3732 = vmatprep.mubr.bf16.mxu0 %v5918_v33  ;;  %v6002_v33 = vld [vmem:[%s8363_s0 + $0x434] ss:$40 sps:$4 sm:$0xff]  }
 0x1b9   :  { %3027 = vmatmul.mubr.bf16.gmra.mrb[60].mxu1 %v5920_v34 }
 0x1ba   :  { %3733 = vmatmul.mubr.bf16.gmra.mrb[124].mxu0 %v5921_v35  ;;  %3034 = vmatprep.mubr.bf16.mxu1 %v5922_v36  ;;  %v6004_v36 = vld [vmem:[%s8363_s0 + $0x918] ss:$40 sps:$4 sm:$0xff]  }
 0x1bb   :  { %3773 = vmatprep.mubr.bf16.mxu0 %v5926_v37 }
 0x1c1   :  { %3035 = vmatmul.mubr.bf16.gmra.mrb[64].mxu1 %v5927_v38  ;;  %v6005_v38 = vld [vmem:[%s8363_s0 + $0x430] ss:$40 sps:$4 sm:$0xff]  }
 0x1c2   :  { %3774 = vmatmul.mubr.bf16.vlgmr.msra.gmra.mrb[0].mxu0 %v5924_v39  ;;  %3042 = vmatprep.mubr.bf16.mxu1 %v5928_v40  ;;  %v6006_v39 = vld [vmem:[%s8363_s0 + $0x96c] ss:$40 sps:$4 sm:$0xff]  }
 0x1c3   :  { %3781 = vmatprep.mubr.bf16.mxu0 %v5930_v41  ;;  %v6008_v41 = vld [vmem:[%s8363_s0 + $0x484] ss:$40 sps:$4 sm:$0xff]  }
 0x1c9   :  { %3043 = vmatmul.mubr.bf16.gmra.mrb[68].mxu1 %v5932_v42 }
 0x1ca   :  { %3782 = vmatmul.mubr.bf16.gmra.mrb[4].mxu0 %v5933_v43  ;;  %3050 = vmatprep.mubr.bf16.mxu1 %v5934_v44  ;;  %v6010_v44 = vld [vmem:[%s8363_s0 + $0x968] ss:$40 sps:$4 sm:$0xff]  }
 0x1cb   :  { %3789 = vmatprep.mubr.bf16.mxu0 %v5936_v45 }
 0x1d1   :  { %3051 = vmatmul.mubr.bf16.gmra.mrb[72].mxu1 %v5938_v46  ;;  %v6011_v46 = vld [vmem:[%s8363_s0 + $0x480] ss:$40 sps:$4 sm:$0xff]  }
 0x1d2   :  { %3790 = vmatmul.mubr.bf16.gmra.mrb[8].mxu0 %v5939_v47  ;;  %3058 = vmatprep.mubr.bf16.mxu1 %v5940_v48  ;;  %v6012_v47 = vld [vmem:[%s8363_s0 + $0x9bc] ss:$40 sps:$4 sm:$0xff]  }
 0x1d3   :  { %3797 = vmatprep.mubr.bf16.mxu0 %v5942_v49  ;;  %v6014_v49 = vld [vmem:[%s8363_s0 + $0x4d4] ss:$40 sps:$4 sm:$0xff]  }
 0x1d9   :  { %3059 = vmatmul.mubr.bf16.gmra.mrb[76].mxu1 %v5944_v50 }
 0x1da   :  { %3798 = vmatmul.mubr.bf16.gmra.mrb[12].mxu0 %v5945_v51  ;;  %3066 = vmatprep.mubr.bf16.mxu1 %v5946_v52  ;;  %v6016_v52 = vld [vmem:[%s8363_s0 + $0x9b8] ss:$40 sps:$4 sm:$0xff]  }
 0x1db   :  { %3805 = vmatprep.mubr.bf16.mxu0 %v5948_v53 }
 0x1e1   :  { %3067 = vmatmul.mubr.bf16.gmra.mrb[80].mxu1 %v5950_v54  ;;  %v6017_v54 = vld [vmem:[%s8363_s0 + $0x4d0] ss:$40 sps:$4 sm:$0xff]  }
 0x1e2   :  { %3806 = vmatmul.mubr.bf16.gmra.mrb[16].mxu0 %v5951_v55  ;;  %3074 = vmatprep.mubr.bf16.mxu1 %v5952_v56  ;;  %v6020_v55 = vld [vmem:[%s8363_s0 + $0x514] ss:$40 sps:$4 sm:$0xff]  }
 0x1e3   :  { %3813 = vmatprep.mubr.bf16.mxu0 %v5954_v57  ;;  %v6021_v57 = vld [vmem:[%s8363_s0 + $0x524] ss:$40 sps:$4 sm:$0xff]  }
 0x1e9   :  { %3075 = vmatmul.mubr.bf16.gmra.mrb[84].mxu1 %v5956_v58 }
 0x1ea   :  { %3814 = vmatmul.mubr.bf16.gmra.mrb[20].mxu0 %v5957_v59  ;;  %3082 = vmatprep.mubr.bf16.mxu1 %v5958_v60  ;;  %v6018_v60 = vld [vmem:[%s8363_s0 + $0x510] ss:$40 sps:$4 sm:$0xff]  }
 0x1eb   :  { %3821 = vmatprep.mubr.bf16.mxu0 %v5960_v61 }
 0x1f1   :  { %3083 = vmatmul.mubr.bf16.gmra.mrb[88].mxu1 %v5962_v62  ;;  %v6023_v62 = vld [vmem:[%s8363_s0 + $0x520] ss:$40 sps:$4 sm:$0xff]  }
 0x1f2   :  { %3822 = vmatmul.mubr.bf16.gmra.mrb[24].mxu0 %v5963_v63  ;;  %3090 = vmatprep.mubr.bf16.mxu1 %v5964_v0  ;;  %v6024_v63 = vld [vmem:[%s8363_s0 + $0x564] ss:$40 sps:$4 sm:$0xff]  }
 0x1f3   :  { %3829 = vmatprep.mubr.bf16.mxu0 %v5966_v2  ;;  %v6026_v2 = vld [vmem:[%s8363_s0 + $0x574] ss:$40 sps:$4 sm:$0xff]  }
 0x1f9   :  { %3091 = vmatmul.mubr.bf16.gmra.mrb[92].mxu1 %v5968_v3 }
 0x1fa   :  { %3830 = vmatmul.mubr.bf16.gmra.mrb[28].mxu0 %v5969_v4  ;;  %3098 = vmatprep.mubr.bf16.mxu1 %v5970_v5  ;;  %v6028_v5 = vld [vmem:[%s8363_s0 + $0x560] ss:$40 sps:$4 sm:$0xff]  }
 0x1fb   :  { %3837 = vmatprep.mubr.bf16.mxu0 %v5972_v6 }
 0x201   :  { %3099 = vmatmul.mubr.bf16.gmra.mrb[96].mxu1 %v5974_v7  ;;  %v6029_v7 = vld [vmem:[%s8363_s0 + $0x570] ss:$40 sps:$4 sm:$0xff]  }
 0x202   :  { %3838 = vmatmul.mubr.bf16.gmra.mrb[32].mxu0 %v5975_v8  ;;  %3106 = vmatprep.mubr.bf16.mxu1 %v5976_v9  ;;  %v6030_v8 = vld [vmem:[%s8363_s0 + $0x5b4] ss:$40 sps:$4 sm:$0xff]  }
 0x203   :  { %3845 = vmatprep.mubr.bf16.mxu0 %v5978_v1  ;;  %v6032_v1 = vld [vmem:[%s8363_s0 + $0x5c4] ss:$40 sps:$4 sm:$0xff]  }
 0x209   :  { %3107 = vmatmul.mubr.bf16.gmra.mrb[100].mxu1 %v5980_v10 }
 0x20a   :  { %3846 = vmatmul.mubr.bf16.gmra.mrb[36].mxu0 %v5981_v11  ;;  %3114 = vmatprep.mubr.bf16.mxu1 %v5982_v12  ;;  %v6034_v12 = vld [vmem:[%s8363_s0 + $0x5b0] ss:$40 sps:$4 sm:$0xff]  }
 0x20b   :  { %3853 = vmatprep.mubr.bf16.mxu0 %v5984_v13 }
 0x211   :  { %3115 = vmatmul.mubr.bf16.gmra.mrb[104].mxu1 %v5986_v14  ;;  %v6035_v14 = vld [vmem:[%s8363_s0 + $0x5c0] ss:$40 sps:$4 sm:$0xff]  }
 0x212   :  { %3854 = vmatmul.mubr.bf16.gmra.mrb[40].mxu0 %v5987_v15  ;;  %3122 = vmatprep.mubr.bf16.mxu1 %v5988_v16  ;;  %v6036_v15 = vld [vmem:[%s8363_s0 + $0x604] ss:$40 sps:$4 sm:$0xff]  }
 0x213   :  { %3861 = vmatprep.mubr.bf16.mxu0 %v5990_v17  ;;  %v6038_v17 = vld [vmem:[%s8363_s0 + $0x614] ss:$40 sps:$4 sm:$0xff]  }
 0x214   :  { %v7412_v18 = vpop.f32.mrb[0].mxu1 }
 0x215   :  { %v2910_v19 = vpop.f32.mrb[1].mxu1 }
 0x216   :  { %v7417_v21 = vpop.f32.mrb[2].mxu1 }
 0x217   :  { %v2913_v24 = vpop.f32.mrb[3].mxu1 }
 0x218   :  { %v6041_v24 = vld [vmem:[%s8363_s0 + $0x610] ss:$40 sps:$4 sm:$0xff]  }
 0x219   :  { %3123 = vmatmul.mubr.bf16.gmra.mrb[108].mxu1 %v5992_v20 }
 0x21a   :  { %3862 = vmatmul.mubr.bf16.gmra.mrb[44].mxu0 %v5993_v22  ;;  %3130 = vmatprep.mubr.bf16.mxu1 %v5994_v23  ;;  %v6040_v22 = vld [vmem:[%s8363_s0 + $0x600] ss:$40 sps:$4 sm:$0xff]  }
 0x21b   :  { %3869 = vmatprep.mubr.bf16.mxu0 %v5996_v25  ;;  %v6042_v25 = vld [vmem:[%s8363_s0 + $0x654] ss:$40 sps:$4 sm:$0xff]  }
 0x21c   :  { %v7428_v26 = vpop.f32.mrb[4].mxu1 }
 0x21d   :  { %v2918_v27 = vpop.f32.mrb[5].mxu1 }
 0x21e   :  { %v7433_v29 = vpop.f32.mrb[6].mxu1 }
 0x21f   :  { %v2921_v32 = vpop.f32.mrb[7].mxu1 }
 0x220   :  { %v6046_v32 = vld [vmem:[%s8363_s0 + $0x650] ss:$40 sps:$4 sm:$0xff]  }
 0x221   :  { %3131 = vmatmul.mubr.bf16.gmra.mrb[112].mxu1 %v5998_v28  ;;  %v6044_v28 = vld [vmem:[%s8363_s0 + $0x664] ss:$40 sps:$4 sm:$0xff]  }
 0x222   :  { %3870 = vmatmul.mubr.bf16.gmra.mrb[48].mxu0 %v5999_v30  ;;  %3138 = vmatprep.mubr.bf16.mxu1 %v6000_v31 }
 0x223   :  { %3877 = vmatprep.mubr.bf16.mxu0 %v6002_v33 }
 0x224   :  { %v7444_v34 = vpop.f32.mrb[8].mxu1 }
 0x225   :  { %v2926_v35 = vpop.f32.mrb[9].mxu1 }
 0x226   :  { %v7449_v37 = vpop.f32.mrb[10].mxu1  ;;  %v6047_v35 = vld [vmem:[%s8363_s0 + $0x660] ss:$40 sps:$4 sm:$0xff]  }
 0x227   :  { %v2929_v40 = vpop.f32.mrb[11].mxu1 }
 0x229   :  { %3139 = vmatmul.mubr.bf16.gmra.mrb[116].mxu1 %v6004_v36  ;;  %v6048_v36 = vld [vmem:[%s8363_s0 + $0x6a4] ss:$40 sps:$4 sm:$0xff]  }
 0x22a   :  { %3878 = vmatmul.mubr.bf16.gmra.mrb[52].mxu0 %v6005_v38  ;;  %3146 = vmatprep.mubr.bf16.mxu1 %v6006_v39  ;;  %v6050_v39 = vld [vmem:[%s8363_s0 + $0x6b4] ss:$40 sps:$4 sm:$0xff]  }
 0x22b   :  { %3885 = vmatprep.mubr.bf16.mxu0 %v6008_v41 }
 0x22c   :  { %v7460_v42 = vpop.f32.mrb[12].mxu1 }
 0x22d   :  { %v2934_v43 = vpop.f32.mrb[13].mxu1 }
 0x22e   :  { %v7465_v45 = vpop.f32.mrb[14].mxu1  ;;  %v6052_v43 = vld [vmem:[%s8363_s0 + $0x6a0] ss:$40 sps:$4 sm:$0xff]  }
 0x22f   :  { %v2937_v48 = vpop.f32.mrb[15].mxu1 }
 0x231   :  { %3147 = vmatmul.mubr.bf16.gmra.mrb[120].mxu1 %v6010_v44 }
 0x232   :  { %3886 = vmatmul.mubr.bf16.gmra.mrb[56].mxu0 %v6011_v46  ;;  %3154 = vmatprep.mubr.bf16.mxu1 %v6012_v47  ;;  %v6053_v46 = vld [vmem:[%s8363_s0 + $0x6b0] ss:$40 sps:$4 sm:$0xff]   ;;  %v6054_v47 = vld [vmem:[%s8363_s0 + $0x6f4] ss:$40 sps:$4 sm:$0xff]  }
 0x233   :  { %3893 = vmatprep.mubr.bf16.mxu0 %v6014_v49  ;;  %v6056_v49 = vld [vmem:[%s8363_s0 + $0x704] ss:$40 sps:$4 sm:$0xff]  }
 0x234   :  { %v7476_v50 = vpop.f32.mrb[16].mxu1 }
 0x235   :  { %v2942_v51 = vpop.f32.mrb[17].mxu1 }
 0x236   :  { %v7481_v53 = vpop.f32.mrb[18].mxu1 }
 0x237   :  { %v2945_v56 = vpop.f32.mrb[19].mxu1 }
 0x238   :  { %v6059_v56 = vld [vmem:[%s8363_s0 + $0x700] ss:$40 sps:$4 sm:$0xff]  }
 0x239   :  { %3155 = vmatmul.mubr.bf16.gmra.mrb[124].mxu1 %v6016_v52 }
 0x23a   :  { %3894 = vmatmul.mubr.bf16.gmra.mrb[60].mxu0 %v6017_v54  ;;  %3323 = vmatprep.mubr.bf16.mxu1 %v6020_v55  ;;  %v6058_v54 = vld [vmem:[%s8363_s0 + $0x6f0] ss:$40 sps:$4 sm:$0xff]  }
 0x23b   :  { %3901 = vmatprep.mubr.bf16.mxu0 %v6021_v57  ;;  %v6060_v57 = vld [vmem:[%s8363_s0 + $0x744] ss:$40 sps:$4 sm:$0xff]  }
 0x23c   :  { %v7492_v58 = vpop.f32.mrb[20].mxu1 }
 0x23d   :  { %v2950_v59 = vpop.f32.mrb[21].mxu1 }
 0x23e   :  { %v7497_v61 = vpop.f32.mrb[22].mxu1 }
 0x23f   :  { %v2953_v0 = vpop.f32.mrb[23].mxu1 }
 0x240   :  { %v6064_v0 = vld [vmem:[%s8363_s0 + $0x740] ss:$40 sps:$4 sm:$0xff]  }
 0x241   :  { %3324 = vmatmul.mubr.bf16.vlgmr.msra.gmra.mrb[64].mxu1 %v6018_v60  ;;  %v6062_v60 = vld [vmem:[%s8363_s0 + $0x754] ss:$40 sps:$4 sm:$0xff]  }
 0x242   :  { %3902 = vmatmul.mubr.bf16.gmra.mrb[64].mxu0 %v6023_v62  ;;  %3331 = vmatprep.mubr.bf16.mxu1 %v6024_v63 }
 0x243   :  { %3909 = vmatprep.mubr.bf16.mxu0 %v6026_v2 }
 0x244   :  { %v7508_v3 = vpop.f32.mrb[24].mxu1 }
 0x245   :  { %v2958_v4 = vpop.f32.mrb[25].mxu1 }
 0x246   :  { %v7513_v6 = vpop.f32.mrb[26].mxu1  ;;  %v6065_v4 = vld [vmem:[%s8363_s0 + $0x750] ss:$40 sps:$4 sm:$0xff]  }
 0x247   :  { %v2961_v9 = vpop.f32.mrb[27].mxu1 }
 0x249   :  { %3332 = vmatmul.mubr.bf16.gmra.mrb[68].mxu1 %v6028_v5  ;;  %v6066_v5 = vld [vmem:[%s8363_s0 + $0x794] ss:$40 sps:$4 sm:$0xff]  }
 0x24a   :  { %3910 = vmatmul.mubr.bf16.gmra.mrb[68].mxu0 %v6029_v7  ;;  %3339 = vmatprep.mubr.bf16.mxu1 %v6030_v8  ;;  %v6068_v8 = vld [vmem:[%s8363_s0 + $0x7a4] ss:$40 sps:$4 sm:$0xff]  }
 0x24b   :  { %3917 = vmatprep.mubr.bf16.mxu0 %v6032_v1 }
 0x24c   :  { %v7524_v10 = vpop.f32.mrb[28].mxu1 }
 0x24d   :  { %v2966_v11 = vpop.f32.mrb[29].mxu1 }
 0x24e   :  { %v7529_v13 = vpop.f32.mrb[30].mxu1  ;;  %v6070_v11 = vld [vmem:[%s8363_s0 + $0x790] ss:$40 sps:$4 sm:$0xff]  }
 0x24f   :  { %v2969_v16 = vpop.f32.mrb[31].mxu1 }
 0x251   :  { %3340 = vmatmul.mubr.bf16.gmra.mrb[72].mxu1 %v6034_v12 }
 0x252   :  { %3918 = vmatmul.mubr.bf16.gmra.mrb[72].mxu0 %v6035_v14  ;;  %3347 = vmatprep.mubr.bf16.mxu1 %v6036_v15  ;;  %v6071_v14 = vld [vmem:[%s8363_s0 + $0x7a0] ss:$40 sps:$4 sm:$0xff]   ;;  %v6072_v15 = vld [vmem:[%s8363_s0 + $0x7e4] ss:$40 sps:$4 sm:$0xff]  }
 0x253   :  { %3925 = vmatprep.mubr.bf16.mxu0 %v6038_v17  ;;  %v6074_v17 = vld [vmem:[%s8363_s0 + $0x7f4] ss:$40 sps:$4 sm:$0xff]  }
 0x254   :  { %v7540_v19 = vpop.f32.mrb[32].mxu1 }
 0x255   :  { %v2974_v20 = vpop.f32.mrb[33].mxu1 }
 0x256   :  { %v7545_v23 = vpop.f32.mrb[34].mxu1 }
 0x257   :  { %v2977_v27 = vpop.f32.mrb[35].mxu1 }
 0x258   :  { %v6077_v27 = vld [vmem:[%s8363_s0 + $0x7f0] ss:$40 sps:$4 sm:$0xff]  }
 0x259   :  { %3348 = vmatmul.mubr.bf16.gmra.mrb[76].mxu1 %v6040_v22 }
 0x25a   :  { %3926 = vmatmul.mubr.bf16.gmra.mrb[76].mxu0 %v6041_v24  ;;  %3355 = vmatprep.mubr.bf16.mxu1 %v6042_v25  ;;  %v6076_v24 = vld [vmem:[%s8363_s0 + $0x7e0] ss:$40 sps:$4 sm:$0xff]  }
 0x25b   :  { %3933 = vmatprep.mubr.bf16.mxu0 %v6044_v28  ;;  %v6078_v28 = vld [vmem:[%s8363_s0 + $0x834] ss:$40 sps:$4 sm:$0xff]  }
 0x25c   :  { %v7556_v30 = vpop.f32.mrb[36].mxu1 }
 0x25d   :  { %v2982_v31 = vpop.f32.mrb[37].mxu1 }
 0x25e   :  { %v7561_v33 = vpop.f32.mrb[38].mxu1 }
 0x25f   :  { %v2985_v38 = vpop.f32.mrb[39].mxu1 }
 0x260   :  { %v6082_v38 = vld [vmem:[%s8363_s0 + $0x830] ss:$40 sps:$4 sm:$0xff]  }
 0x261   :  { %3356 = vmatmul.mubr.bf16.gmra.mrb[80].mxu1 %v6046_v32  ;;  %v6080_v32 = vld [vmem:[%s8363_s0 + $0x844] ss:$40 sps:$4 sm:$0xff]  }
 0x262   :  { %3934 = vmatmul.mubr.bf16.gmra.mrb[80].mxu0 %v6047_v35  ;;  %3363 = vmatprep.mubr.bf16.mxu1 %v6048_v36 }
 0x263   :  { %3941 = vmatprep.mubr.bf16.mxu0 %v6050_v39 }
 0x264   :  { %v7572_v40 = vpop.f32.mrb[40].mxu1 }
 0x265   :  { %v2990_v41 = vpop.f32.mrb[41].mxu1 }
 0x266   :  { %v7577_v44 = vpop.f32.mrb[42].mxu1  ;;  %v6083_v41 = vld [vmem:[%s8363_s0 + $0x840] ss:$40 sps:$4 sm:$0xff]  }
 0x267   :  { %v2993_v48 = vpop.f32.mrb[43].mxu1 }
 0x269   :  { %3364 = vmatmul.mubr.bf16.gmra.mrb[84].mxu1 %v6052_v43  ;;  %v6084_v43 = vld [vmem:[%s8363_s0 + $0x884] ss:$40 sps:$4 sm:$0xff]  }
 0x26a   :  { %3942 = vmatmul.mubr.bf16.gmra.mrb[84].mxu0 %v6053_v46  ;;  %3371 = vmatprep.mubr.bf16.mxu1 %v6054_v47  ;;  %v6086_v47 = vld [vmem:[%s8363_s0 + $0x894] ss:$40 sps:$4 sm:$0xff]  }
 0x26b   :  { %3949 = vmatprep.mubr.bf16.mxu0 %v6056_v49  ;;  %v6088_v49 = vld [vmem:[%s8363_s0 + $0x880] ss:$40 sps:$4 sm:$0xff]  }
 0x26c   :  { %v7588_v51 = vpop.f32.mrb[44].mxu1 }
 0x26d   :  { %v2998_v52 = vpop.f32.mrb[45].mxu1 }
 0x26e   :  { %v7593_v55 = vpop.f32.mrb[46].mxu1 }
 0x26f   :  { %v3001_v59 = vpop.f32.mrb[47].mxu1 }
 0x271   :  { %3372 = vmatmul.mubr.bf16.gmra.mrb[88].mxu1 %v6058_v54 }
 0x272   :  { %3950 = vmatmul.mubr.bf16.gmra.mrb[88].mxu0 %v6059_v56  ;;  %3379 = vmatprep.mubr.bf16.mxu1 %v6060_v57  ;;  %v6089_v56 = vld [vmem:[%s8363_s0 + $0x890] ss:$40 sps:$4 sm:$0xff]   ;;  %v6090_v57 = vld [vmem:[%s8363_s0 + $0x8d4] ss:$40 sps:$4 sm:$0xff]  }
 0x273   :  { %3957 = vmatprep.mubr.bf16.mxu0 %v6062_v60  ;;  %v6092_v60 = vld [vmem:[%s8363_s0 + $0x8e4] ss:$40 sps:$4 sm:$0xff]  }
 0x274   :  { %v7604_v62 = vpop.f32.mrb[48].mxu1 }
 0x275   :  { %v3006_v63 = vpop.f32.mrb[49].mxu1 }
 0x276   :  { %v7609_v2 = vpop.f32.mrb[50].mxu1 }
 0x277   :  { %v3009_v7 = vpop.f32.mrb[51].mxu1 }
 0x279   :  { %3380 = vmatmul.mubr.bf16.gmra.mrb[92].mxu1 %v6064_v0 }
 0x27a   :  { %3958 = vmatmul.mubr.bf16.gmra.mrb[92].mxu0 %v6065_v4  ;;  %3387 = vmatprep.mubr.bf16.mxu1 %v6066_v5  ;;  %v6094_v4 = vld [vmem:[%s8363_s0 + $0x8d0] ss:$40 sps:$4 sm:$0xff]  }
 0x27b   :  { %3965 = vmatprep.mubr.bf16.mxu0 %v6068_v8  ;;  %v6095_v8 = vld [vmem:[%s8363_s0 + $0x8e0] ss:$40 sps:$4 sm:$0xff]  }
 0x27c   :  { %v7620_v9 = vpop.f32.mrb[52].mxu1 }
 0x27d   :  { %v3014_v1 = vpop.f32.mrb[53].mxu1 }
 0x27e   :  { %v7625_v12 = vpop.f32.mrb[54].mxu1 }
 0x27f   :  { %v3017_v16 = vpop.f32.mrb[55].mxu1 }
 0x280   :  { %v6100_v16 = vld [vmem:[%s8363_s0 + $0x920] ss:$40 sps:$4 sm:$0xff]  }
 0x281   :  { %3388 = vmatmul.mubr.bf16.gmra.mrb[96].mxu1 %v6070_v11  ;;  %v6098_v11 = vld [vmem:[%s8363_s0 + $0x934] ss:$40 sps:$4 sm:$0xff]  }
 0x282   :  { %3966 = vmatmul.mubr.bf16.gmra.mrb[96].mxu0 %v6071_v14  ;;  %3395 = vmatprep.mubr.bf16.mxu1 %v6072_v15 }
 0x283   :  { %3973 = vmatprep.mubr.bf16.mxu0 %v6074_v17 }
 0x284   :  { %v7636_v20 = vpop.f32.mrb[56].mxu1 }
 0x285   :  { %v3022_v22 = vpop.f32.mrb[57].mxu1 }
 0x286   :  { %v7641_v25 = vpop.f32.mrb[58].mxu1 }
 0x287   :  { %v3025_v31 = vpop.f32.mrb[59].mxu1 }
 0x289   :  { %3396 = vmatmul.mubr.bf16.gmra.mrb[100].mxu1 %v6076_v24  ;;  %v6101_v24 = vld [vmem:[%s8363_s0 + $0x930] ss:$40 sps:$4 sm:$0xff]  }
 0x28a   :  { %3974 = vmatmul.mubr.bf16.gmra.mrb[100].mxu0 %v6077_v27  ;;  %3403 = vmatprep.mubr.bf16.mxu1 %v6078_v28  ;;  %v6104_v28 = vld [vmem:[%s8363_s0 + $0x984] ss:$40 sps:$4 sm:$0xff]  }
 0x28b   :  { %3981 = vmatprep.mubr.bf16.mxu0 %v6080_v32 }
 0x28c   :  { %v7652_v35 = vpop.f32.mrb[60].mxu1 }
 0x28d   :  { %v3030_v36 = vpop.f32.mrb[61].mxu1 }
 0x28e   :  { %v7657_v39 = vpop.f32.mrb[62].mxu1  ;;  %v6106_v36 = vld [vmem:[%s8363_s0 + $0x970] ss:$40 sps:$4 sm:$0xff]  }
 0x28f   :  { %v3033_v46 = vpop.f32.mrb[63].mxu1 }
 0x291   :  { %3404 = vmatmul.mubr.bf16.gmra.mrb[104].mxu1 %v6082_v38 }
 0x292   :  { %3982 = vmatmul.mubr.bf16.gmra.mrb[104].mxu0 %v6083_v41  ;;  %3411 = vmatprep.mubr.bf16.mxu1 %v6084_v43  ;;  %v6107_v43 = vld [vmem:[%s8363_s0 + $0x980] ss:$40 sps:$4 sm:$0xff]  }
 0x293   :  { %3989 = vmatprep.mubr.bf16.mxu0 %v6086_v47  ;;  %v6110_v47 = vld [vmem:[%s8363_s0 + $0x9d4] ss:$40 sps:$4 sm:$0xff]  }
 0x295   :  { %v3775_v48 = vpop.f32.mrb[0].mxu0 }
 0x296   :  { %v7672_v52 = vadd.f32 %v3775_v48, %v7412_v18  ;;  %v3777_v54 = vpop.f32.mrb[1].mxu0 }
 0x297   :  { %v3778_v59 = vpop.f32.mrb[2].mxu0  ;;  %v6112_v54 = vld [vmem:[%s8363_s0 + $0x9c0] ss:$40 sps:$4 sm:$0xff]  }
 0x298   :  { %v7684_v63 = vadd.f32 %v3778_v59, %v7417_v21  ;;  %v3780_v0 = vpop.f32.mrb[3].mxu0  ;;  %v6096_v21 = vld [vmem:[%s8363_s0 + $0x924] ss:$40 sps:$4 sm:$0xff]   ;;  %v6113_v59 = vld [vmem:[%s8363_s0 + $0x9d0] ss:$40 sps:$4 sm:$0xff]  }
 0x299   :  { %3412 = vmatmul.mubr.bf16.gmra.mrb[108].mxu1 %v6088_v49 }
 0x29a   :  { %3990 = vmatmul.mubr.bf16.gmra.mrb[108].mxu0 %v6089_v56  ;;  %3419 = vmatprep.mubr.bf16.mxu1 %v6090_v57 }
 0x29b   :  { %3997 = vmatprep.mubr.bf16.mxu0 %v6092_v60 }
 0x29d   :  { %v3783_v18 = vpop.f32.mrb[4].mxu0 }
 0x29e   :  { %v7690_v5 = vadd.f32 %v3783_v18, %v7428_v26  ;;  %v3785_v7 = vpop.f32.mrb[5].mxu0 }
 0x29f   :  { %v3786_v1 = vpop.f32.mrb[6].mxu0 }
 0x2a0   :  { %v7702_v14 = vadd.f32 %v3786_v1, %v7433_v29  ;;  %v3788_v15 = vpop.f32.mrb[7].mxu0  ;;  %v6102_v29 = vld [vmem:[%s8363_s0 + $0x974] ss:$40 sps:$4 sm:$0xff]  }
 0x2a1   :  { %3420 = vmatmul.mubr.bf16.gmra.mrb[112].mxu1 %v6094_v4 }
 0x2a2   :  { %3998 = vmatmul.mubr.bf16.gmra.mrb[112].mxu0 %v6095_v8  ;;  %3427 = vmatprep.mubr.bf16.mxu1 %v6096_v21 }
 0x2a3   :  { %4005 = vmatprep.mubr.bf16.mxu0 %v6098_v11 }
 0x2a5   :  { %v3791_v26 = vpop.f32.mrb[8].mxu0 }
 0x2a6   :  { %v7708_v17 = vadd.f32 %v3791_v26, %v7444_v34  ;;  %v3793_v22 = vpop.f32.mrb[9].mxu0 }
 0x2a7   :  { %v3794_v27 = vpop.f32.mrb[10].mxu0 }
 0x2a8   :  { %v7720_v31 = vadd.f32 %v3794_v27, %v7449_v37  ;;  %v3796_v32 = vpop.f32.mrb[11].mxu0  ;;  %v6108_v37 = vld [vmem:[%s8363_s0 + $0x9c4] ss:$40 sps:$4 sm:$0xff]  }
 0x2a9   :  { %3428 = vmatmul.mubr.bf16.gmra.mrb[116].mxu1 %v6100_v16 }
 0x2aa   :  { %4006 = vmatmul.mubr.bf16.gmra.mrb[116].mxu0 %v6101_v24  ;;  %3435 = vmatprep.mubr.bf16.mxu1 %v6102_v29 }
 0x2ab   :  { %4013 = vmatprep.mubr.bf16.mxu0 %v6104_v28 }
 0x2ad   :  { %v3799_v34 = vpop.f32.mrb[12].mxu0 }
 0x2ae   :  { %v7726_v38 = vadd.f32 %v3799_v34, %v7460_v42  ;;  %v3801_v41 = vpop.f32.mrb[13].mxu0 }
 0x2af   :  { %v3802_v46 = vpop.f32.mrb[14].mxu0  ;;  %v4169_v41 = vmul.f32 %v7672_v52, %v7672_v52 }
 0x2b0   :  { %v7738_v48 = vadd.f32 %v3802_v46, %v7465_v45  ;;  %v3804_v49 = vpop.f32.mrb[15].mxu0 }
 0x2b1   :  { %3436 = vmatmul.mubr.bf16.gmra.mrb[120].mxu1 %v6106_v36  ;;  %v4172_v49 = vmul.f32 %v7702_v14, %v7702_v14 }
 0x2b2   :  { %4014 = vmatmul.mubr.bf16.gmra.mrb[120].mxu0 %v6107_v43  ;;  %3443 = vmatprep.mubr.bf16.mxu1 %v6108_v37  ;;  %v4171_v43 = vmul.f32 %v7690_v5, %v7690_v5 }
 0x2b3   :  { %4021 = vmatprep.mubr.bf16.mxu0 %v6110_v47 }
 0x2b5   :  { %v3807_v42 = vpop.f32.mrb[16].mxu0 }
 0x2b6   :  { %v7744_v56 = vadd.f32 %v3807_v42, %v7476_v50  ;;  %v3809_v57 = vpop.f32.mrb[17].mxu0 }
 0x2b7   :  { %v3810_v45 = vpop.f32.mrb[18].mxu0 }
 0x2b8   :  { %v7750_v60 = vadd.f32 %v3810_v45, %v7481_v53  ;;  %v3812_v0 = vpop.f32.mrb[19].mxu0 }
 0x2b9   :  { %3444 = vmatmul.mubr.bf16.gmra.mrb[124].mxu1 %v6112_v54 }
 0x2ba   :  { %4022 = vmatmul.mubr.bf16.gmra.mrb[124].mxu0 %v6113_v59  ;;  %v4173_v59 = vmul.f32 %v7708_v17, %v7708_v17 }
 0x2bd   :  { %v3815_v18 = vpop.f32.mrb[20].mxu0 }
 0x2be   :  { %v7753_v4 = vadd.f32 %v3815_v18, %v7492_v58  ;;  %v3817_v7 = vpop.f32.mrb[21].mxu0 }
 0x2bf   :  { %v3818_v8 = vpop.f32.mrb[22].mxu0 }
 0x2c0   :  { %v7756_v50 = vadd.f32 %v3818_v8, %v7497_v61  ;;  %v3820_v21 = vpop.f32.mrb[23].mxu0 }
 0x2c1   :  { %v4174_v21 = vmul.f32 %v7720_v31, %v7720_v31 }
 0x2c5   :  { %v3823_v1 = vpop.f32.mrb[24].mxu0 }
 0x2c6   :  { %v7759_v11 = vadd.f32 %v3823_v1, %v7508_v3  ;;  %v3825_v15 = vpop.f32.mrb[25].mxu0 }
 0x2c7   :  { %v3826_v53 = vpop.f32.mrb[26].mxu0  ;;  %v4175_v15 = vmul.f32 %v7726_v38, %v7726_v38 }
 0x2c8   :  { %v7762_v26 = vadd.f32 %v3826_v53, %v7513_v6  ;;  %v3828_v16 = vpop.f32.mrb[27].mxu0  ;;  %v4170_v6 = vmul.f32 %v7684_v63, %v7684_v63 }
 0x2ca   :  { %8392 = vst [vmem:[#allocation7_spill] sm:$0xff] %v7762_v26 }
 0x2cd   :  { %v3831_v22 = vpop.f32.mrb[28].mxu0 }
 0x2ce   :  { %v7765_v58 = vadd.f32 %v3831_v22, %v7524_v10  ;;  %v3833_v24 = vpop.f32.mrb[29].mxu0 }
 0x2cf   :  { %v3834_v29 = vpop.f32.mrb[30].mxu0 }
 0x2d0   :  { %8393 = vst [vmem:[#allocation8_spill] sm:$0xff] %v7765_v58  ;;  %v7768_v61 = vadd.f32 %v3834_v29, %v7529_v13  ;;  %v3836_v27 = vpop.f32.mrb[31].mxu0  ;;  %v4097_v13 = vadd.f32 %v7684_v63, %v7672_v52 }
 0x2d2   :  { %8394 = vst [vmem:[#allocation9_spill] sm:$0xff] %v7768_v61  ;;  %v4098_v37 = vadd.f32 %v7690_v5, %v4097_v13 }
 0x2d4   :  { %v4099_v57 = vadd.f32 %v7702_v14, %v4098_v37  ;;  %v4178_v37 = vmul.f32 %v7750_v60, %v7750_v60 }
 0x2d5   :  { %v3839_v28 = vpop.f32.mrb[32].mxu0 }
 0x2d6   :  { %v7771_v3 = vadd.f32 %v3839_v28, %v7540_v19  ;;  %v3841_v32 = vpop.f32.mrb[33].mxu0  ;;  %v4233_v19 = vadd.f32 %v4170_v6, %v4169_v41  ;;  %v4100_v7 = vadd.f32 %v7708_v17, %v4099_v57  ;;  %v4177_v6 = vmul.f32 %v7744_v56, %v7744_v56 }
 0x2d7   :  { %v3842_v34 = vpop.f32.mrb[34].mxu0  ;;  %v4176_v32 = vmul.f32 %v7738_v48, %v7738_v48 }
 0x2d8   :  { %8395 = vst [vmem:[#allocation10_spill] sm:$0xff] %v7771_v3  ;;  %v7776_v36 = vadd.f32 %v3842_v34, %v7545_v23  ;;  %v3844_v10 = vpop.f32.mrb[35].mxu0  ;;  %v4234_v47 = vadd.f32 %v4233_v19, %v4171_v43  ;;  %v4101_v1 = vadd.f32 %v7720_v31, %v4100_v7 }
 0x2da   :  { %8396 = vst [vmem:[#allocation11_spill] sm:$0xff] %v7776_v36  ;;  %v4235_v18 = vadd.f32 %v4234_v47, %v4172_v49  ;;  %v4102_v24 = vadd.f32 %v7726_v38, %v4101_v1 }
 0x2dc   :  { %v4236_v8 = vadd.f32 %v4235_v18, %v4173_v59  ;;  %v4103_v34 = vadd.f32 %v7738_v48, %v4102_v24 }
 0x2dd   :  { %v3847_v46 = vpop.f32.mrb[36].mxu0 }
 0x2de   :  { %v7788_v23 = vadd.f32 %v3847_v46, %v7556_v30  ;;  %v3849_v42 = vpop.f32.mrb[37].mxu0  ;;  %v4237_v22 = vadd.f32 %v4236_v8, %v4174_v21  ;;  %v4104_v41 = vadd.f32 %v7744_v56, %v4103_v34  ;;  %v4181_v21 = vmul.f32 %v7759_v11, %v7759_v11 }
 0x2df   :  { %v3850_v54 = vpop.f32.mrb[38].mxu0  ;;  %v4179_v42 = vmul.f32 %v7753_v4, %v7753_v4 }
 0x2e0   :  { %8397 = vst [vmem:[#allocation12_spill] sm:$0xff] %v7788_v23  ;;  %v7794_v45 = vadd.f32 %v3850_v54, %v7561_v33  ;;  %v3852_v0 = vpop.f32.mrb[39].mxu0  ;;  %v4238_v28 = vadd.f32 %v4237_v22, %v4175_v15  ;;  %v4105_v49 = vadd.f32 %v7750_v60, %v4104_v41  ;;  %v4182_v22 = vmul.f32 %v7762_v26, %v7762_v26 }
 0x2e1   :  { %v4180_v0 = vmul.f32 %v7756_v50, %v7756_v50 }
 0x2e2   :  { %8398 = vst [vmem:[#allocation13_spill] sm:$0xff] %v7794_v45  ;;  %v4239_v10 = vadd.f32 %v4238_v28, %v4176_v32  ;;  %v4106_v57 = vadd.f32 %v7753_v4, %v4105_v49 }
 0x2e4   :  { %v4240_v19 = vadd.f32 %v4239_v10, %v4177_v6  ;;  %v4107_v8 = vadd.f32 %v7756_v50, %v4106_v57  ;;  %v4186_v57 = vmul.f32 %v7776_v36, %v7776_v36 }
 0x2e5   :  { %v3855_v30 = vpop.f32.mrb[40].mxu0 }
 0x2e6   :  { %v7803_v53 = vadd.f32 %v3855_v30, %v7572_v40  ;;  %v3857_v16 = vpop.f32.mrb[41].mxu0  ;;  %v4241_v54 = vadd.f32 %v4240_v19, %v4178_v37  ;;  %v4185_v19 = vmul.f32 %v7771_v3, %v7771_v3 }
 0x2e7   :  { %v3858_v33 = vpop.f32.mrb[42].mxu0  ;;  %v4108_v16 = vadd.f32 %v7759_v11, %v4107_v8 }
 0x2e8   :  { %8399 = vst [vmem:[#allocation14_spill] sm:$0xff] %v7803_v53  ;;  %v7807_v29 = vadd.f32 %v3858_v33, %v7577_v44  ;;  %v3860_v27 = vpop.f32.mrb[43].mxu0  ;;  %v4242_v59 = vadd.f32 %v4241_v54, %v4179_v42 }
 0x2e9   :  { %v4109_v24 = vadd.f32 %v7762_v26, %v4108_v16  ;;  %v4183_v27 = vmul.f32 %v7765_v58, %v7765_v58 }
 0x2ea   :  { %8400 = vst [vmem:[#allocation15_spill] sm:$0xff] %v7807_v29  ;;  %v4243_v15 = vadd.f32 %v4242_v59, %v4180_v0 }
 0x2eb   :  { %v4110_v6 = vadd.f32 %v7765_v58, %v4109_v24 }
 0x2ec   :  { %v4244_v33 = vadd.f32 %v4243_v15, %v4181_v21 }
 0x2ed   :  { %v3863_v40 = vpop.f32.mrb[44].mxu0 }
 0x2ee   :  { %v7816_v13 = vadd.f32 %v3863_v40, %v7588_v51  ;;  %v3865_v43 = vpop.f32.mrb[45].mxu0  ;;  %v4245_v34 = vadd.f32 %v4244_v33, %v4182_v22  ;;  %v4189_v22 = vmul.f32 %v7803_v53, %v7803_v53 }
 0x2ef   :  { %v3866_v44 = vpop.f32.mrb[46].mxu0  ;;  %v4184_v43 = vmul.f32 %v7768_v61, %v7768_v61 }
 0x2f0   :  { %8401 = vst [vmem:[#allocation16_spill] sm:$0xff] %v7816_v13  ;;  %v7821_v46 = vadd.f32 %v3866_v44, %v7593_v55  ;;  %v3868_v47 = vpop.f32.mrb[47].mxu0  ;;  %v4246_v41 = vadd.f32 %v4245_v34, %v4183_v27  ;;  %v4111_v44 = vadd.f32 %v7768_v61, %v4110_v6 }
 0x2f2   :  { %8402 = vst [vmem:[#allocation17_spill] sm:$0xff] %v7821_v46  ;;  %v4247_v37 = vadd.f32 %v4246_v41, %v4184_v43  ;;  %v4112_v47 = vadd.f32 %v7771_v3, %v4111_v44 }
 0x2f4   :  { %v4248_v54 = vadd.f32 %v4247_v37, %v4185_v19  ;;  %v4113_v0 = vadd.f32 %v7776_v36, %v4112_v47 }
 0x2f5   :  { %v3871_v51 = vpop.f32.mrb[48].mxu0 }
 0x2f6   :  { %v7830_v18 = vadd.f32 %v3871_v51, %v7604_v62  ;;  %v3873_v7 = vpop.f32.mrb[49].mxu0  ;;  %v4114_v8 = vadd.f32 %v7788_v23, %v4113_v0  ;;  %v4192_v0 = vmul.f32 %v7821_v46, %v7821_v46 }
 0x2f7   :  { %v3874_v55 = vpop.f32.mrb[50].mxu0  ;;  %v4187_v7 = vmul.f32 %v7788_v23, %v7788_v23 }
 0x2f8   :  { %8403 = vst [vmem:[#allocation18_spill] sm:$0xff] %v7830_v18  ;;  %v7836_v30 = vadd.f32 %v3874_v55, %v7609_v2  ;;  %v3876_v1 = vpop.f32.mrb[51].mxu0  ;;  %v4249_v55 = vadd.f32 %v4248_v54, %v4186_v57  ;;  %v4115_v33 = vadd.f32 %v7794_v45, %v4114_v8 }
 0x2f9   :  { %v4188_v1 = vmul.f32 %v7794_v45, %v7794_v45 }
 0x2fa   :  { %8404 = vst [vmem:[#allocation19_spill] sm:$0xff] %v7836_v30  ;;  %v4250_v21 = vadd.f32 %v4249_v55, %v4187_v7  ;;  %v4193_v55 = vmul.f32 %v7830_v18, %v7830_v18 }
 0x2fc   :  { %v4251_v27 = vadd.f32 %v4250_v21, %v4188_v1 }
 0x2fd   :  { %v3879_v62 = vpop.f32.mrb[52].mxu0 }
 0x2fe   :  { %v7845_v28 = vadd.f32 %v3879_v62, %v7620_v9  ;;  %v3881_v32 = vpop.f32.mrb[53].mxu0  ;;  %v4252_v34 = vadd.f32 %v4251_v27, %v4189_v22 }
 0x2ff   :  { %v3882_v2 = vpop.f32.mrb[54].mxu0  ;;  %v4116_v32 = vadd.f32 %v7803_v53, %v4115_v33 }
 0x300   :  { %8405 = vst [vmem:[#allocation20_spill] sm:$0xff] %v7845_v28  ;;  %v7849_v40 = vadd.f32 %v3882_v2, %v7625_v12  ;;  %v3884_v10 = vpop.f32.mrb[55].mxu0  ;;  %v6285_v2 = vmov 0.0  }
 0x301   :  { %23 = vst [vmem:[#allocation2] sm:$0x1] %v6285_v2  ;;  %24 = vst [vmem:[#allocation3] sm:$0x1] %v6285_v2  ;;  %v4117_v43 = vadd.f32 %v7807_v29, %v4116_v32  ;;  %v4194_v2 = vmul.f32 %v7836_v30, %v7836_v30 }
 0x302   :  { %8406 = vst [vmem:[#allocation21_spill] sm:$0xff] %v7849_v40 }
 0x305   :  { %v3887_v9 = vpop.f32.mrb[56].mxu0 }
 0x306   :  { %v7858_v49 = vadd.f32 %v3887_v9, %v7636_v20  ;;  %v3889_v42 = vpop.f32.mrb[57].mxu0 }
 0x307   :  { %v3890_v12 = vpop.f32.mrb[58].mxu0 }
 0x308   :  { %8407 = vst [vmem:[#allocation22_spill] sm:$0xff] %v7858_v49  ;;  %v7863_v51 = vadd.f32 %v3890_v12, %v7641_v25  ;;  %v3892_v59 = vpop.f32.mrb[59].mxu0  ;;  %v4118_v12 = vadd.f32 %v7816_v13, %v4117_v43  ;;  %v4168_v58 = vld [vmem:[#allocation3] sm:$0x1] }
 0x30a   :  { %8408 = vst [vmem:[#allocation23_spill] sm:$0xff] %v7863_v51  ;;  %v4119_v7 = vadd.f32 %v7821_v46, %v4118_v12 }
 0x30d   :  { %v3895_v20 = vpop.f32.mrb[60].mxu0 }
 0x30e   :  { %v7872_v15 = vadd.f32 %v3895_v20, %v7652_v35  ;;  %v3897_v16 = vpop.f32.mrb[61].mxu0  ;;  %v4190_v35 = vmul.f32 %v7807_v29, %v7807_v29 }
 0x30f   :  { %v3898_v25 = vpop.f32.mrb[62].mxu0  ;;  %v4120_v16 = vadd.f32 %v7830_v18, %v4119_v7 }
 0x310   :  { %8409 = vst [vmem:[#allocation24_spill] sm:$0xff] %v7872_v15  ;;  %v7878_v62 = vadd.f32 %v3898_v25, %v7657_v39  ;;  %v3900_v24 = vpop.f32.mrb[63].mxu0  ;;  %v4191_v39 = vmul.f32 %v7816_v13, %v7816_v13  ;;  %v4253_v42 = vadd.f32 %v4252_v34, %v4190_v35 }
 0x312   :  { %8410 = vst [vmem:[#allocation25_spill] sm:$0xff] %v7878_v62  ;;  %v4254_v59 = vadd.f32 %v4253_v42, %v4191_v39 }
 0x314   :  { %v3325_v6 = vpop.f32.mrb[64].mxu1  ;;  %v4255_v1 = vadd.f32 %v4254_v59, %v4192_v0 }
 0x315   :  { %v3903_v10 = vpop.f32.mrb[64].mxu0  ;;  %v3327_v41 = vpop.f32.mrb[65].mxu1 }
 0x316   :  { %v7886_v44 = vadd.f32 %v3903_v10, %v3325_v6  ;;  %v3905_v19 = vpop.f32.mrb[65].mxu0  ;;  %v3328_v9 = vpop.f32.mrb[66].mxu1  ;;  %v4256_v32 = vadd.f32 %v4255_v1, %v4193_v55  ;;  %v4121_v6 = vadd.f32 %v7836_v30, %v4120_v16  ;;  %v4195_v10 = vmul.f32 %v7845_v28, %v7845_v28 }
 0x317   :  { %v3906_v37 = vpop.f32.mrb[66].mxu0  ;;  %v3330_v47 = vpop.f32.mrb[67].mxu1  ;;  %v4197_v55 = vmul.f32 %v7858_v49, %v7858_v49 }
 0x318   :  { %8411 = vst [vmem:[#allocation26_spill] sm:$0xff] %v7886_v44  ;;  %v7889_v54 = vadd.f32 %v3906_v37, %v3328_v9  ;;  %v3908_v57 = vpop.f32.mrb[67].mxu0  ;;  %v4257_v41 = vadd.f32 %v4256_v32, %v4194_v2  ;;  %v4122_v43 = vadd.f32 %v7845_v28, %v4121_v6  ;;  %v4196_v47 = vmul.f32 %v7849_v40, %v7849_v40 }
 0x319   :  { %v4199_v2 = vmul.f32 %v7872_v15, %v7872_v15 }
 0x31a   :  { %8412 = vst [vmem:[#allocation27_spill] sm:$0xff] %v7889_v54  ;;  %v4258_v37 = vadd.f32 %v4257_v41, %v4195_v10  ;;  %v4123_v7 = vadd.f32 %v7849_v40, %v4122_v43 }
 0x31c   :  { %v3333_v8 = vpop.f32.mrb[68].mxu1  ;;  %v4124_v1 = vadd.f32 %v7858_v49, %v4123_v7 }
 0x31d   :  { %v3911_v20 = vpop.f32.mrb[68].mxu0  ;;  %v3335_v21 = vpop.f32.mrb[69].mxu1 }
 0x31e   :  { %v7897_v25 = vadd.f32 %v3911_v20, %v3333_v8  ;;  %v3913_v33 = vpop.f32.mrb[69].mxu0  ;;  %v3336_v22 = vpop.f32.mrb[70].mxu1  ;;  %v4259_v21 = vadd.f32 %v4258_v37, %v4196_v47  ;;  %v4125_v32 = vadd.f32 %v7863_v51, %v4124_v1 }
 0x31f   :  { %v3914_v24 = vpop.f32.mrb[70].mxu0  ;;  %v3338_v27 = vpop.f32.mrb[71].mxu1  ;;  %v4198_v33 = vmul.f32 %v7863_v51, %v7863_v51 }
 0x320   :  { %8413 = vst [vmem:[#allocation28_spill] sm:$0xff] %v7897_v25  ;;  %v7901_v34 = vadd.f32 %v3914_v24, %v3336_v22  ;;  %v3916_v35 = vpop.f32.mrb[71].mxu0  ;;  %v4260_v16 = vadd.f32 %v4259_v21, %v4197_v55 }
 0x322   :  { %8414 = vst [vmem:[#allocation29_spill] sm:$0xff] %v7901_v34 }
 0x324   :  { %v3341_v39 = vpop.f32.mrb[72].mxu1 }
 0x325   :  { %v3919_v19 = vpop.f32.mrb[72].mxu0  ;;  %v3343_v9 = vpop.f32.mrb[73].mxu1 }
 0x326   :  { %v7909_v42 = vadd.f32 %v3919_v19, %v3341_v39  ;;  %v3921_v12 = vpop.f32.mrb[73].mxu0  ;;  %v3344_v57 = vpop.f32.mrb[74].mxu1  ;;  %v4261_v39 = vadd.f32 %v4260_v16, %v4198_v33  ;;  %v4126_v19 = vadd.f32 %v7872_v15, %v4125_v32  ;;  %v4202_v32 = vmul.f32 %v7889_v54, %v7889_v54 }
 0x327   :  { %v3922_v59 = vpop.f32.mrb[74].mxu0  ;;  %v3346_v0 = vpop.f32.mrb[75].mxu1  ;;  %v4200_v12 = vmul.f32 %v7878_v62, %v7878_v62 }
 0x328   :  { %8415 = vst [vmem:[#allocation30_spill] sm:$0xff] %v7909_v42  ;;  %v7914_v8 = vadd.f32 %v3922_v59, %v3344_v57  ;;  %v3924_v20 = vpop.f32.mrb[75].mxu0  ;;  %v4262_v47 = vadd.f32 %v4261_v39, %v4199_v2  ;;  %v4127_v57 = vadd.f32 %v7878_v62, %v4126_v19  ;;  %v4201_v59 = vmul.f32 %v7886_v44, %v7886_v44 }
 0x32a   :  { %v4263_v20 = vadd.f32 %v4262_v47, %v4200_v12  ;;  %v4128_v21 = vadd.f32 %v7886_v44, %v4127_v57  ;;  %v4204_v57 = vmul.f32 %v7901_v34, %v7901_v34 }
 0x32c   :  { %v3349_v22 = vpop.f32.mrb[76].mxu1 }
 0x32d   :  { %v3927_v24 = vpop.f32.mrb[76].mxu0  ;;  %v3351_v27 = vpop.f32.mrb[77].mxu1 }
 0x32e   :  { %v7922_v35 = vadd.f32 %v3927_v24, %v3349_v22  ;;  %v3929_v6 = vpop.f32.mrb[77].mxu0  ;;  %v3352_v10 = vpop.f32.mrb[78].mxu1  ;;  %v4264_v27 = vadd.f32 %v4263_v20, %v4201_v59 }
 0x32f   :  { %v3930_v41 = vpop.f32.mrb[78].mxu0  ;;  %v3354_v43 = vpop.f32.mrb[79].mxu1 }
 0x330   :  { %v7925_v9 = vadd.f32 %v3930_v41, %v3352_v10  ;;  %v3932_v37 = vpop.f32.mrb[79].mxu0  ;;  %v4129_v10 = vadd.f32 %v7889_v54, %v4128_v21  ;;  %v4203_v41 = vmul.f32 %v7897_v25, %v7897_v25  ;;  %v4265_v43 = vadd.f32 %v4264_v27, %v4202_v32 }
 0x332   :  { %v4130_v39 = vadd.f32 %v7897_v25, %v4129_v10  ;;  %v4266_v12 = vadd.f32 %v4265_v43, %v4203_v41 }
 0x334   :  { %v3357_v0 = vpop.f32.mrb[80].mxu1  ;;  %v4131_v21 = vadd.f32 %v7901_v34, %v4130_v39  ;;  %v4207_v39 = vmul.f32 %v7922_v35, %v7922_v35 }
 0x335   :  { %v3935_v7 = vpop.f32.mrb[80].mxu0  ;;  %v3359_v55 = vpop.f32.mrb[81].mxu1 }
 0x336   :  { %v7933_v1 = vadd.f32 %v3935_v7, %v3357_v0  ;;  %v3937_v16 = vpop.f32.mrb[81].mxu0  ;;  %v3360_v33 = vpop.f32.mrb[82].mxu1  ;;  %v4132_v27 = vadd.f32 %v7909_v42, %v4131_v21 }
 0x337   :  { %v3938_v22 = vpop.f32.mrb[82].mxu0  ;;  %v3362_v24 = vpop.f32.mrb[83].mxu1  ;;  %v4205_v16 = vmul.f32 %v7909_v42, %v7909_v42 }
 0x338   :  { %v7937_v2 = vadd.f32 %v3938_v22, %v3360_v33  ;;  %v3940_v6 = vpop.f32.mrb[83].mxu0  ;;  %v4267_v24 = vadd.f32 %v4266_v12, %v4204_v57 }
 0x339   :  { %v4206_v6 = vmul.f32 %v7914_v8, %v7914_v8 }
 0x33a   :  { %v4268_v32 = vadd.f32 %v4267_v24, %v4205_v16 }
 0x33c   :  { %v3365_v19 = vpop.f32.mrb[84].mxu1  ;;  %v4269_v57 = vadd.f32 %v4268_v32, %v4206_v6 }
 0x33d   :  { %v3943_v37 = vpop.f32.mrb[84].mxu0  ;;  %v3367_v47 = vpop.f32.mrb[85].mxu1 }
 0x33e   :  { %v7945_v59 = vadd.f32 %v3943_v37, %v3365_v19  ;;  %v3945_v0 = vpop.f32.mrb[85].mxu0  ;;  %v3368_v7 = vpop.f32.mrb[86].mxu1  ;;  %v4133_v19 = vadd.f32 %v7914_v8, %v4132_v27  ;;  %v4270_v16 = vadd.f32 %v4269_v57, %v4207_v39  ;;  %v4209_v27 = vmul.f32 %v7933_v1, %v7933_v1 }
 0x33f   :  { %v3946_v55 = vpop.f32.mrb[86].mxu0  ;;  %v3370_v20 = vpop.f32.mrb[87].mxu1  ;;  %v4210_v57 = vmul.f32 %v7937_v2, %v7937_v2 }
 0x340   :  { %v7950_v33 = vadd.f32 %v3946_v55, %v3368_v7  ;;  %v3948_v22 = vpop.f32.mrb[87].mxu0  ;;  %v4134_v55 = vadd.f32 %v7922_v35, %v4133_v19 }
 0x341   :  { %v4208_v22 = vmul.f32 %v7925_v9, %v7925_v9 }
 0x342   :  { %v4135_v24 = vadd.f32 %v7925_v9, %v4134_v55 }
 0x344   :  { %v3373_v10 = vpop.f32.mrb[88].mxu1  ;;  %v4136_v32 = vadd.f32 %v7933_v1, %v4135_v24 }
 0x345   :  { %v3951_v41 = vpop.f32.mrb[88].mxu0  ;;  %v3375_v43 = vpop.f32.mrb[89].mxu1 }
 0x346   :  { %v7958_v37 = vadd.f32 %v3951_v41, %v3373_v10  ;;  %v3953_v47 = vpop.f32.mrb[89].mxu0  ;;  %v3376_v0 = vpop.f32.mrb[90].mxu1  ;;  %v4137_v42 = vadd.f32 %v7937_v2, %v4136_v32 }
 0x347   :  { %v3954_v7 = vpop.f32.mrb[90].mxu0  ;;  %v3378_v12 = vpop.f32.mrb[91].mxu1  ;;  %v4271_v47 = vadd.f32 %v4270_v16, %v4208_v22  ;;  %v4211_v16 = vmul.f32 %v7945_v59, %v7945_v59 }
 0x348   :  { %v7961_v20 = vadd.f32 %v3954_v7, %v3376_v0  ;;  %v3956_v21 = vpop.f32.mrb[91].mxu0  ;;  %v4138_v24 = vadd.f32 %v7945_v59, %v4137_v42 }
 0x349   :  { %v4272_v12 = vadd.f32 %v4271_v47, %v4209_v27  ;;  %v4212_v27 = vmul.f32 %v7950_v33, %v7950_v33 }
 0x34a   :  { %v4139_v32 = vadd.f32 %v7950_v33, %v4138_v24 }
 0x34b   :  { %v4273_v22 = vadd.f32 %v4272_v12, %v4210_v57  ;;  %v4213_v12 = vmul.f32 %v7958_v37, %v7958_v37 }
 0x34c   :  { %v3381_v10 = vpop.f32.mrb[92].mxu1 }
 0x34d   :  { %v3959_v41 = vpop.f32.mrb[92].mxu0  ;;  %v3383_v43 = vpop.f32.mrb[93].mxu1 }
 0x34e   :  { %v7969_v6 = vadd.f32 %v3959_v41, %v3381_v10  ;;  %v3961_v19 = vpop.f32.mrb[93].mxu0  ;;  %v3384_v0 = vpop.f32.mrb[94].mxu1 }
 0x34f   :  { %v3962_v7 = vpop.f32.mrb[94].mxu0  ;;  %v3386_v39 = vpop.f32.mrb[95].mxu1  ;;  %v4274_v19 = vadd.f32 %v4273_v22, %v4211_v16  ;;  %v4140_v16 = vadd.f32 %v7958_v37, %v4139_v32 }
 0x350   :  { %v7973_v55 = vadd.f32 %v3962_v7, %v3384_v0  ;;  %v3964_v21 = vpop.f32.mrb[95].mxu0  ;;  %v4215_v24 = vmul.f32 %v7969_v6, %v7969_v6 }
 0x351   :  { %v4275_v34 = vadd.f32 %v4274_v19, %v4212_v27 }
 0x353   :  { %v4276_v22 = vadd.f32 %v4275_v34, %v4213_v12 }
 0x354   :  { %v3389_v10 = vpop.f32.mrb[96].mxu1 }
 0x355   :  { %v3967_v41 = vpop.f32.mrb[96].mxu0  ;;  %v3391_v43 = vpop.f32.mrb[97].mxu1 }
 0x356   :  { %v7981_v47 = vadd.f32 %v3967_v41, %v3389_v10  ;;  %v3969_v0 = vpop.f32.mrb[97].mxu0  ;;  %v3392_v7 = vpop.f32.mrb[98].mxu1  ;;  %v4214_v10 = vmul.f32 %v7961_v20, %v7961_v20 }
 0x357   :  { %v3970_v39 = vpop.f32.mrb[98].mxu0  ;;  %v3394_v21 = vpop.f32.mrb[99].mxu1 }
 0x358   :  { %v7986_v57 = vadd.f32 %v3970_v39, %v3392_v7  ;;  %v3972_v42 = vpop.f32.mrb[99].mxu0  ;;  %v4141_v21 = vadd.f32 %v7961_v20, %v4140_v16  ;;  %v4277_v27 = vadd.f32 %v4276_v22, %v4214_v10 }
 0x35a   :  { %v4142_v34 = vadd.f32 %v7969_v6, %v4141_v21  ;;  %v4278_v54 = vadd.f32 %v4277_v27, %v4215_v24  ;;  %v4218_v27 = vmul.f32 %v7986_v57, %v7986_v57 }
 0x35c   :  { %v3397_v41 = vpop.f32.mrb[100].mxu1  ;;  %v4143_v16 = vadd.f32 %v7973_v55, %v4142_v34 }
 0x35d   :  { %v3975_v43 = vpop.f32.mrb[100].mxu0  ;;  %v3399_v0 = vpop.f32.mrb[101].mxu1 }
 0x35e   :  { %v7994_v25 = vadd.f32 %v3975_v43, %v3397_v41  ;;  %v3977_v7 = vpop.f32.mrb[101].mxu0  ;;  %v3400_v39 = vpop.f32.mrb[102].mxu1  ;;  %v4216_v0 = vmul.f32 %v7973_v55, %v7973_v55  ;;  %v4217_v41 = vmul.f32 %v7981_v47, %v7981_v47  ;;  %v4144_v22 = vadd.f32 %v7981_v47, %v4143_v16 }
 0x35f   :  { %v3978_v42 = vpop.f32.mrb[102].mxu0  ;;  %v3402_v19 = vpop.f32.mrb[103].mxu1 }
 0x360   :  { %v7997_v32 = vadd.f32 %v3978_v42, %v3400_v39  ;;  %v3980_v12 = vpop.f32.mrb[103].mxu0  ;;  %v4279_v62 = vadd.f32 %v4278_v54, %v4216_v0  ;;  %v4145_v15 = vadd.f32 %v7986_v57, %v4144_v22 }
 0x362   :  { %v4280_v19 = vadd.f32 %v4279_v62, %v4217_v41  ;;  %v4146_v0 = vadd.f32 %v7994_v25, %v4145_v15  ;;  %v4220_v62 = vmul.f32 %v7997_v32, %v7997_v32 }
 0x364   :  { %v3405_v43 = vpop.f32.mrb[104].mxu1  ;;  %v4281_v54 = vadd.f32 %v4280_v19, %v4218_v27  ;;  %v4147_v22 = vadd.f32 %v7997_v32, %v4146_v0 }
 0x365   :  { %v3983_v7 = vpop.f32.mrb[104].mxu0  ;;  %v3407_v44 = vpop.f32.mrb[105].mxu1 }
 0x366   :  { %v8005_v10 = vadd.f32 %v3983_v7, %v3405_v43  ;;  %v3985_v21 = vpop.f32.mrb[105].mxu0  ;;  %v3408_v39 = vpop.f32.mrb[106].mxu1  ;;  %v4219_v44 = vmul.f32 %v7994_v25, %v7994_v25 }
 0x367   :  { %v3986_v42 = vpop.f32.mrb[106].mxu0  ;;  %v3410_v24 = vpop.f32.mrb[107].mxu1 }
 0x368   :  { %v8009_v34 = vadd.f32 %v3986_v42, %v3408_v39  ;;  %v3988_v12 = vpop.f32.mrb[107].mxu0  ;;  %v4282_v21 = vadd.f32 %v4281_v54, %v4219_v44  ;;  %v4221_v19 = vmul.f32 %v8005_v10, %v8005_v10  ;;  %v4148_v44 = vadd.f32 %v8005_v10, %v4147_v22 }
 0x36a   :  { %v4283_v51 = vadd.f32 %v4282_v21, %v4220_v62 }
 0x36c   :  { %v3413_v16 = vpop.f32.mrb[108].mxu1  ;;  %v4284_v54 = vadd.f32 %v4283_v51, %v4221_v19 }
 0x36d   :  { %v3991_v43 = vpop.f32.mrb[108].mxu0  ;;  %v3415_v7 = vpop.f32.mrb[109].mxu1 }
 0x36e   :  { %v8017_v41 = vadd.f32 %v3991_v43, %v3413_v16  ;;  %v3993_v39 = vpop.f32.mrb[109].mxu0  ;;  %v3416_v42 = vpop.f32.mrb[110].mxu1  ;;  %v4222_v16 = vmul.f32 %v8009_v34, %v8009_v34 }
 0x36f   :  { %v3994_v24 = vpop.f32.mrb[110].mxu0  ;;  %v3418_v12 = vpop.f32.mrb[111].mxu1 }
 0x370   :  { %v8022_v27 = vadd.f32 %v3994_v24, %v3416_v42  ;;  %v3996_v15 = vpop.f32.mrb[111].mxu0  ;;  %v4149_v12 = vadd.f32 %v8009_v34, %v4148_v44  ;;  %v4223_v0 = vmul.f32 %v8017_v41, %v8017_v41  ;;  %v4285_v62 = vadd.f32 %v4284_v54, %v4222_v16 }
 0x372   :  { %v4150_v51 = vadd.f32 %v8017_v41, %v4149_v12  ;;  %v4286_v40 = vadd.f32 %v4285_v62, %v4223_v0 }
 0x374   :  { %v3421_v43 = vpop.f32.mrb[112].mxu1  ;;  %v4151_v44 = vadd.f32 %v8022_v27, %v4150_v51 }
 0x375   :  { %v3999_v7 = vpop.f32.mrb[112].mxu0  ;;  %v3423_v39 = vpop.f32.mrb[113].mxu1 }
 0x376   :  { %v8030_v49 = vadd.f32 %v3999_v7, %v3421_v43  ;;  %v4001_v42 = vpop.f32.mrb[113].mxu0  ;;  %v3424_v24 = vpop.f32.mrb[114].mxu1  ;;  %v4224_v39 = vmul.f32 %v8022_v27, %v8022_v27 }
 0x377   :  { %v4002_v15 = vpop.f32.mrb[114].mxu0  ;;  %v3426_v21 = vpop.f32.mrb[115].mxu1 }
 0x378   :  { %v8033_v22 = vadd.f32 %v4002_v15, %v3424_v24  ;;  %v4004_v19 = vpop.f32.mrb[115].mxu0  ;;  %v4225_v43 = vmul.f32 %v8030_v49, %v8030_v49  ;;  %v4287_v30 = vadd.f32 %v4286_v40, %v4224_v39  ;;  %v4152_v54 = vadd.f32 %v8030_v49, %v4151_v44 }
 0x37a   :  { %v4288_v21 = vadd.f32 %v4287_v30, %v4225_v43  ;;  %v4226_v62 = vmul.f32 %v8033_v22, %v8033_v22  ;;  %v4153_v18 = vadd.f32 %v8033_v22, %v4152_v54 }
 0x37c   :  { %v3429_v7 = vpop.f32.mrb[116].mxu1  ;;  %v4289_v40 = vadd.f32 %v4288_v21, %v4226_v62 }
 0x37d   :  { %v4007_v42 = vpop.f32.mrb[116].mxu0  ;;  %v3431_v28 = vpop.f32.mrb[117].mxu1 }
 0x37e   :  { %v8041_v16 = vadd.f32 %v4007_v42, %v3429_v7  ;;  %v4009_v12 = vpop.f32.mrb[117].mxu0  ;;  %v3432_v24 = vpop.f32.mrb[118].mxu1 }
 0x37f   :  { %v4010_v15 = vpop.f32.mrb[118].mxu0  ;;  %v3434_v0 = vpop.f32.mrb[119].mxu1 }
 0x380   :  { %v8045_v51 = vadd.f32 %v4010_v15, %v3432_v24  ;;  %v4012_v19 = vpop.f32.mrb[119].mxu0  ;;  %v4227_v28 = vmul.f32 %v8041_v16, %v8041_v16  ;;  %v4154_v39 = vadd.f32 %v8041_v16, %v4153_v18 }
 0x382   :  { %v4290_v12 = vadd.f32 %v4289_v40, %v4227_v28  ;;  %v4228_v30 = vmul.f32 %v8045_v51, %v8045_v51  ;;  %v4155_v54 = vadd.f32 %v8045_v51, %v4154_v39 }
 0x384   :  { %v3437_v44 = vpop.f32.mrb[120].mxu1  ;;  %v4291_v46 = vadd.f32 %v4290_v12, %v4228_v30 }
 0x385   :  { %v4015_v7 = vpop.f32.mrb[120].mxu0  ;;  %v3439_v42 = vpop.f32.mrb[121].mxu1 }
 0x386   :  { %v8053_v43 = vadd.f32 %v4015_v7, %v3437_v44  ;;  %v4017_v24 = vpop.f32.mrb[121].mxu0  ;;  %v3440_v15 = vpop.f32.mrb[122].mxu1 }
 0x387   :  { %v4018_v0 = vpop.f32.mrb[122].mxu0  ;;  %v3442_v19 = vpop.f32.mrb[123].mxu1 }
 0x388   :  { %v4229_v21 = vmul.f32 %v8053_v43, %v8053_v43  ;;  %v8058_v62 = vadd.f32 %v4018_v0, %v3440_v15  ;;  %v4020_v18 = vpop.f32.mrb[123].mxu0  ;;  %v4156_v28 = vadd.f32 %v8053_v43, %v4155_v54 }
 0x38a   :  { %v4292_v40 = vadd.f32 %v4291_v46, %v4229_v21  ;;  %v4230_v44 = vmul.f32 %v8058_v62, %v8058_v62  ;;  %v4157_v19 = vadd.f32 %v8058_v62, %v4156_v28 }
 0x38c   :  { %v3445_v7 = vpop.f32.mrb[124].mxu1  ;;  %v4293_v0 = vadd.f32 %v4292_v40, %v4230_v44  ;;  %v4096_v44 = vld [vmem:[#allocation2] sm:$0x1] }
 0x38d   :  { %v4023_v42 = vpop.f32.mrb[124].mxu0  ;;  %v3447_v24 = vpop.f32.mrb[125].mxu1 }
 0x38e   :  { %v8064_v13 = vadd.f32 %v4023_v42, %v3445_v7  ;;  %v4025_v39 = vpop.f32.mrb[125].mxu0  ;;  %v3448_v29 = vpop.f32.mrb[126].mxu1 }
 0x38f   :  { %v4026_v53 = vpop.f32.mrb[126].mxu0  ;;  %v3450_v15 = vpop.f32.mrb[127].mxu1 }
 0x390   :  { %v4158_v12 = vadd.f32 %v8064_v13, %v4157_v19  ;;  %v4231_v46 = vmul.f32 %v8064_v13, %v8064_v13  ;;  %v5164_v30 = vadd.f32 %v4026_v53, %v3448_v29  ;;  %v4028_v54 = vpop.f32.mrb[127].mxu0 }
 0x392   :  { %v4294_v21 = vadd.f32 %v4293_v0, %v4231_v46  ;;  %v4159_v18 = vadd.f32 %v5164_v30, %v4158_v12  ;;  %v4232_v45 = vmul.f32 %v5164_v30, %v5164_v30 }
 0x394   :  { %v4160_v24 = vrot.slane %v4159_v18, 4  ;;  %v4295_v23 = vadd.f32 %v4294_v21, %v4232_v45 }
 0x396   :  { %v4161_v28 = vadd.f32 %v4160_v24, %v4159_v18  ;;  %v4296_v7 = vrot.slane %v4295_v23, 4  ;;  %v4386_v24 = vlaneseq }
 0x398   :  { %v4162_v42 = vrot.slane %v4161_v28, 2  ;;  %v4297_v39 = vadd.f32 %v4296_v7, %v4295_v23 }
 0x39a   :  { %v4163_v36 = vadd.f32 %v4162_v42, %v4161_v28  ;;  %v4298_v3 = vrot.slane %v4297_v39, 2 }
 0x39c   :  { %v4164_v15 = vrot.slane %v4163_v36, 1  ;;  %v4299_v40 = vadd.f32 %v4298_v3, %v4297_v39  ;;  %v4387_v3 = vshrl.u32 %v4386_v24, 7 }
 0x39e   :  { %v4165_v19 = vadd.f32 %v4164_v15, %v4163_v36  ;;  %v4300_v61 = vrot.slane %v4299_v40, 1  ;;  %v4314_v36 = vld [vmem:[%s8365_s2] sm:$0x1]  ;;  %v4388_v28 = vsub.s32 0, %v4387_v3  ;;  %s6286_s2 = smov [#allocation4]  }
 0x3a0   :  { %v4166_v26 = vadd.f32 %v4165_v19, %v4096_v44  ;;  %v4301_v53 = vadd.f32 %v4300_v61, %v4299_v40 }
 0x3a2   :  { %4167 = vst [vmem:[#allocation2] sm:$0x1] %v4166_v26  ;;  %v4302_v29 = vadd.f32 %v4301_v53, %v4168_v58  ;;  %v4318_v58 = vld [vmem:[%s8366_s3] sm:$0x1]  ;;  %s4658_s3 = sshll.u32 %s6286_s2, 4  ;;  %s4659_s3 = int_to_ptr.vmem [resolvable:$true] %s4658_s3 }
 0x3a3   :  { %s6260_s6 = scalar_lea.vmem %s4659_s3, 8192  ;;  %p6265_p1 = scmp.lt.s32.totalorder %s4659_s3, %s4659_s3 }
 0x3a4   :  { %4303 = vst [vmem:[#allocation3] sm:$0x1] %v4302_v29  ;;  %p6261_p0 = scmp.ne.s32.totalorder %s4659_s3, %s6260_s6  ;;  %p6266_p2 = scmp.lt.s32.totalorder %s6260_s6, %s6260_s6 }
 0x3a6   :  { %p6267_p3 = por %p6266_p2, %p6265_p1 }
 0x3a8   :  { %p6268_p4 = pnand %p6267_p3, %p6261_p0 }
 0x3a9   :  { %v4307_v0 = vld [vmem:[#allocation2] sm:$0x1] }
 0x3aa   :  { %v4308_v12 = vmul.f32 0.001953125, %v4307_v0 }
 0x3ab   :  { %v4309_v45 = vld [vmem:[#allocation3] sm:$0x1] }
 0x3ac   :  { %v4310_v46 = vmul.f32 0.001953125, %v4309_v45  ;;  %v4311_v54 = vmul.f32 %v4308_v12, %v4308_v12 }
 0x3ae   :  { %v4312_v21 = vsub.f32 %v4310_v46, %v4311_v54 }
 0x3b0   :  { %v4313_v23 = vmax.f32 %v4312_v21, 0.0 }
 0x3b2   :  { %v4315_v18 = vadd.f32 1e-05, %v4313_v23 }
 0x3b4   :  { %6114 = vrsqrt.f32 %v4315_v18 }
 0x3be   :  { %v6115_v61 = vpop.eup %6114 }
 0x3bf   :  { %v4317_v26 = vmul.f32 %v6115_v61, %v4314_v36 }
 0x3c1   :  { %v4319_v7 = vmul.f32 %v4317_v26, %v4308_v12  ;;  %v8075_v42 = vrot.slane %v4317_v26, %v4388_v28 }
 0x3c3   :  { %v4320_v39 = vsub.f32 %v4318_v58, %v4319_v7  ;;  %v4454_v15 = vmul.f32 %v5164_v30, %v8075_v42  ;;  %v4391_v53 = vmul.f32 %v7672_v52, %v8075_v42  ;;  %v4392_v29 = vmul.f32 %v7684_v63, %v8075_v42 }
 0x3c4   :  { %v4393_v0 = vmul.f32 %v7690_v5, %v8075_v42  ;;  %v4394_v12 = vmul.f32 %v7702_v14, %v8075_v42  ;;  %v4395_v30 = vmul.f32 %v7708_v17, %v8075_v42  ;;  %v4396_v45 = vmul.f32 %v7720_v31, %v8075_v42 }
 0x3c5   :  { %v8078_v40 = vrot.slane %v4320_v39, %v4388_v28  ;;  %v8095_v46 = vmul.f32 %v7726_v38, %v8075_v42  ;;  %v4428_v52 = vmul.f32 %v7914_v8, %v8075_v42  ;;  %v4429_v63 = vmul.f32 %v7922_v35, %v8075_v42 }
 0x3c6   :  { %v4430_v5 = vmul.f32 %v7925_v9, %v8075_v42  ;;  %v4431_v14 = vmul.f32 %v7933_v1, %v8075_v42  ;;  %v4432_v17 = vmul.f32 %v7937_v2, %v8075_v42  ;;  %v4433_v31 = vmul.f32 %v7945_v59, %v8075_v42 }
 0x3c7   :  { %v4524_v44 = vadd.f32 %v8078_v40, %v4454_v15  ;;  %v4434_v38 = vmul.f32 %v7950_v33, %v8075_v42  ;;  %v4435_v8 = vmul.f32 %v7958_v37, %v8075_v42  ;;  %v4436_v35 = vmul.f32 %v7961_v20, %v8075_v42 }
 0x3c8   :  { %v4437_v9 = vmul.f32 %v7969_v6, %v8075_v42  ;;  %v4438_v1 = vmul.f32 %v7973_v55, %v8075_v42  ;;  %v4439_v2 = vmul.f32 %v7981_v47, %v8075_v42  ;;  %v4440_v59 = vmul.f32 %v7986_v57, %v8075_v42 }
 0x3c9   :  { %6116 = vtanh.f32 %v4524_v44  ;;  %v4441_v33 = vmul.f32 %v7994_v25, %v8075_v42  ;;  %v4442_v37 = vmul.f32 %v7997_v32, %v8075_v42  ;;  %v4443_v20 = vmul.f32 %v8005_v10, %v8075_v42 }
 0x3ca   :  { %v4444_v6 = vmul.f32 %v8009_v34, %v8075_v42  ;;  %v4445_v55 = vmul.f32 %v8017_v41, %v8075_v42  ;;  %v4446_v47 = vmul.f32 %v8022_v27, %v8075_v42  ;;  %v4447_v57 = vmul.f32 %v8030_v49, %v8075_v42 }
 0x3cb   :  { %v4448_v25 = vmul.f32 %v8033_v22, %v8075_v42  ;;  %v4449_v32 = vmul.f32 %v8041_v16, %v8075_v42  ;;  %v4450_v10 = vmul.f32 %v8045_v51, %v8075_v42  ;;  %v4451_v34 = vmul.f32 %v8053_v43, %v8075_v42 }
 0x3cc   :  { %v4452_v41 = vmul.f32 %v8058_v62, %v8075_v42  ;;  %v4453_v27 = vmul.f32 %v8064_v13, %v8075_v42  ;;  %v4461_v49 = vadd.f32 %v8078_v40, %v4391_v53  ;;  %v4462_v54 = vadd.f32 %v8078_v40, %v4392_v29 }
 0x3cd   :  { %v4463_v22 = vadd.f32 %v8078_v40, %v4393_v0  ;;  %v4464_v16 = vadd.f32 %v8078_v40, %v4394_v12  ;;  %v4465_v21 = vadd.f32 %v8078_v40, %v4395_v30  ;;  %v8155_v51 = vadd.f32 %v8078_v40, %v4428_v52 }
 0x3ce   :  { %v8158_v43 = vadd.f32 %v8078_v40, %v4429_v63  ;;  %v8161_v62 = vadd.f32 %v8078_v40, %v4430_v5  ;;  %v8164_v13 = vadd.f32 %v8078_v40, %v4431_v14  ;;  %v8167_v23 = vadd.f32 %v8078_v40, %v4432_v17 }
 0x3cf   :  { %v8170_v18 = vadd.f32 %v8078_v40, %v4433_v31  ;;  %v8173_v24 = vadd.f32 %v8078_v40, %v4434_v38  ;;  %v8176_v3 = vadd.f32 %v8078_v40, %v4435_v8  ;;  %v8179_v36 = vadd.f32 %v8078_v40, %v4436_v35 }
 0x3d0   :  { %v8182_v28 = vadd.f32 %v8078_v40, %v4437_v9  ;;  %v8185_v61 = vadd.f32 %v8078_v40, %v4438_v1  ;;  %v8188_v26 = vadd.f32 %v8078_v40, %v4439_v2  ;;  %v8191_v58 = vadd.f32 %v8078_v40, %v4440_v59  ;;  %v8416_v1 = vld [vmem:[#allocation7_spill] sm:$0xff]  ;;  %v8417_v59 = vld [vmem:[#allocation8_spill] sm:$0xff] }
 0x3d1   :  { %v8194_v7 = vadd.f32 %v8078_v40, %v4441_v33  ;;  %v8197_v39 = vadd.f32 %v8078_v40, %v4442_v37  ;;  %v8200_v15 = vadd.f32 %v8078_v40, %v4443_v20  ;;  %v8203_v44 = vadd.f32 %v8078_v40, %v4444_v6  ;;  %v8418_v37 = vld [vmem:[#allocation9_spill] sm:$0xff] }
 0x3d2   :  { %v8209_v53 = vadd.f32 %v8078_v40, %v4446_v47  ;;  %v8212_v29 = vadd.f32 %v8078_v40, %v4447_v57  ;;  %v8215_v0 = vadd.f32 %v8078_v40, %v4448_v25  ;;  %v8218_v12 = vadd.f32 %v8078_v40, %v4449_v32  ;;  %v8420_v32 = vld [vmem:[#allocation11_spill] sm:$0xff] }
 0x3d3   :  { %v6117_v19 = vpop.eup %6116  ;;  %v8221_v30 = vadd.f32 %v8078_v40, %v4450_v10  ;;  %v8224_v52 = vadd.f32 %v8078_v40, %v4451_v34  ;;  %v8227_v63 = vadd.f32 %v8078_v40, %v4452_v41  ;;  %v8230_v5 = vadd.f32 %v8078_v40, %v4453_v27  ;;  %v8421_v27 = vld [vmem:[#allocation12_spill] sm:$0xff] }
 0x3d4   :  { %4652 = vst [vmem:[#allocation4 + $0x1f8] sm:$0xff] %v6117_v19  ;;  %v8206_v19 = vadd.f32 %v8078_v40, %v4445_v55  ;;  %6118 = vtanh.f32 %v4461_v49  ;;  %v4398_v14 = vmul.f32 %v7738_v48, %v8075_v42  ;;  %v4466_v17 = vadd.f32 %v8078_v40, %v4396_v45  ;;  %v8419_v55 = vld [vmem:[#allocation10_spill] sm:$0xff] }
 0x3d5   :  { %6120 = vtanh.f32 %v4462_v54  ;;  %v4399_v31 = vmul.f32 %v7744_v56, %v8075_v42  ;;  %v4467_v38 = vadd.f32 %v8078_v40, %v8095_v46  ;;  %v4400_v8 = vmul.f32 %v7750_v60, %v8075_v42 }
 0x3d6   :  { %6122 = vtanh.f32 %v4463_v22  ;;  %v4468_v35 = vadd.f32 %v8078_v40, %v4398_v14  ;;  %v4401_v9 = vmul.f32 %v7753_v4, %v8075_v42  ;;  %v4402_v45 = vmul.f32 %v7756_v50, %v8075_v42 }
 0x3d7   :  { %6124 = vtanh.f32 %v4464_v16  ;;  %v4469_v48 = vadd.f32 %v8078_v40, %v4399_v31  ;;  %v4470_v56 = vadd.f32 %v8078_v40, %v4400_v8  ;;  %v4403_v46 = vmul.f32 %v7759_v11, %v8075_v42  ;;  %v8422_v16 = vld [vmem:[#allocation13_spill] sm:$0xff]  ;;  %v8423_v31 = vld [vmem:[#allocation14_spill] sm:$0xff] }
 0x3d8   :  { %6126 = vtanh.f32 %v4465_v21  ;;  %v4471_v60 = vadd.f32 %v8078_v40, %v4401_v9  ;;  %v4404_v2 = vmul.f32 %v8416_v1, %v8075_v42  ;;  %v4472_v4 = vadd.f32 %v8078_v40, %v4402_v45  ;;  %v8424_v9 = vld [vmem:[#allocation15_spill] sm:$0xff] }
 0x3d9   :  { %6128 = vtanh.f32 %v4466_v17  ;;  %v4405_v33 = vmul.f32 %v8417_v59, %v8075_v42  ;;  %v4473_v50 = vadd.f32 %v8078_v40, %v4403_v46  ;;  %v4406_v20 = vmul.f32 %v8418_v37, %v8075_v42  ;;  %v8425_v46 = vld [vmem:[#allocation16_spill] sm:$0xff]  ;;  %v8427_v37 = vld [vmem:[#allocation18_spill] sm:$0xff] }
 0x3da   :  { %6130 = vtanh.f32 %v4467_v38  ;;  %v4474_v11 = vadd.f32 %v8078_v40, %v4404_v2  ;;  %v4407_v47 = vmul.f32 %v8419_v55, %v8075_v42  ;;  %v4408_v10 = vmul.f32 %v8420_v32, %v8075_v42  ;;  %v8428_v55 = vld [vmem:[#allocation19_spill] sm:$0xff]  ;;  %v8429_v32 = vld [vmem:[#allocation20_spill] sm:$0xff] }
 0x3db   :  { %6132 = vtanh.f32 %v4468_v35  ;;  %v4475_v57 = vadd.f32 %v8078_v40, %v4405_v33  ;;  %v4476_v34 = vadd.f32 %v8078_v40, %v4406_v20  ;;  %v4409_v49 = vmul.f32 %v8421_v27, %v8075_v42  ;;  %v8430_v27 = vld [vmem:[#allocation21_spill] sm:$0xff] }
 0x3dc   :  { %6134 = vtanh.f32 %v4469_v48  ;;  %v4477_v54 = vadd.f32 %v8078_v40, %v4407_v47  ;;  %v4410_v21 = vmul.f32 %v8422_v16, %v8075_v42  ;;  %v4478_v14 = vadd.f32 %v8078_v40, %v4408_v10  ;;  %v8431_v16 = vld [vmem:[#allocation22_spill] sm:$0xff] }
 0x3dd   :  { %6136 = vtanh.f32 %v4470_v56  ;;  %v4411_v38 = vmul.f32 %v8423_v31, %v8075_v42  ;;  %v4479_v8 = vadd.f32 %v8078_v40, %v4409_v49  ;;  %v4412_v48 = vmul.f32 %v8424_v9, %v8075_v42  ;;  %v8432_v31 = vld [vmem:[#allocation23_spill] sm:$0xff]  ;;  %v8433_v9 = vld [vmem:[#allocation24_spill] sm:$0xff] }
 0x3de   :  { %v6119_v6 = vpop.eup %6118  ;;  %6138 = vtanh.f32 %v4471_v60  ;;  %v4480_v45 = vadd.f32 %v8078_v40, %v4410_v21  ;;  %v4413_v60 = vmul.f32 %v8425_v46, %v8075_v42  ;;  %v4415_v20 = vmul.f32 %v8427_v37, %v8075_v42  ;;  %v8434_v46 = vld [vmem:[#allocation25_spill] sm:$0xff]  ;;  %v8436_v37 = vld [vmem:[#allocation27_spill] sm:$0xff] }
 0x3df   :  { %v6121_v25 = vpop.eup %6120  ;;  %6140 = vtanh.f32 %v4472_v4  ;;  %4589 = vst [vmem:[#allocation4] sm:$0xff] %v6119_v6  ;;  %v4481_v1 = vadd.f32 %v8078_v40, %v4411_v38  ;;  %v8426_v4 = vld [vmem:[#allocation17_spill] sm:$0xff]  ;;  %v4482_v33 = vadd.f32 %v8078_v40, %v4412_v48  ;;  %v4416_v47 = vmul.f32 %v8428_v55, %v8075_v42  ;;  %v8437_v55 = vld [vmem:[#allocation28_spill] sm:$0xff] }
 0x3e0   :  { %v6123_v41 = vpop.eup %6122  ;;  %6142 = vtanh.f32 %v4473_v50  ;;  %4590 = vst [vmem:[#allocation4 + $0x8] sm:$0xff] %v6121_v25  ;;  %v4414_v59 = vmul.f32 %v8426_v4, %v8075_v42  ;;  %v4417_v10 = vmul.f32 %v8429_v32, %v8075_v42  ;;  %v4418_v49 = vmul.f32 %v8430_v27, %v8075_v42  ;;  %v8435_v4 = vld [vmem:[#allocation26_spill] sm:$0xff]  ;;  %v8438_v32 = vld [vmem:[#allocation29_spill] sm:$0xff] }
 0x3e1   :  { %v6125_v22 = vpop.eup %6124  ;;  %6144 = vtanh.f32 %v4474_v11  ;;  %4591 = vst [vmem:[#allocation4 + $0x10] sm:$0xff] %v6123_v41  ;;  %v4483_v11 = vadd.f32 %v8078_v40, %v4413_v60  ;;  %v4419_v21 = vmul.f32 %v8431_v16, %v8075_v42  ;;  %v4420_v38 = vmul.f32 %v8432_v31, %v8075_v42  ;;  %v8439_v27 = vld [vmem:[#allocation30_spill] sm:$0xff] }
 0x3e2   :  { %v6127_v17 = vpop.eup %6126  ;;  %6146 = vtanh.f32 %v4475_v57  ;;  %4592 = vst [vmem:[#allocation4 + $0x18] sm:$0xff] %v6125_v22  ;;  %v4484_v57 = vadd.f32 %v8078_v40, %v4414_v59  ;;  %v4421_v48 = vmul.f32 %v8433_v9, %v8075_v42  ;;  %v4422_v60 = vmul.f32 %v8434_v46, %v8075_v42 }
 0x3e3   :  { %v6129_v35 = vpop.eup %6128  ;;  %6148 = vtanh.f32 %v4476_v34  ;;  %4593 = vst [vmem:[#allocation4 + $0x20] sm:$0xff] %v6127_v17  ;;  %v4485_v34 = vadd.f32 %v8078_v40, %v4415_v20  ;;  %v4423_v59 = vmul.f32 %v8435_v4, %v8075_v42  ;;  %v4424_v20 = vmul.f32 %v8436_v37, %v8075_v42 }
 0x3e4   :  { %v6131_v56 = vpop.eup %6130  ;;  %6150 = vtanh.f32 %v4477_v54  ;;  %4594 = vst [vmem:[#allocation4 + $0x28] sm:$0xff] %v6129_v35  ;;  %v4486_v54 = vadd.f32 %v8078_v40, %v4416_v47  ;;  %v4425_v47 = vmul.f32 %v8437_v55, %v8075_v42 }
 0x3e5   :  { %v6133_v2 = vpop.eup %6132  ;;  %6152 = vtanh.f32 %v4478_v14  ;;  %4595 = vst [vmem:[#allocation4 + $0x30] sm:$0xff] %v6131_v56  ;;  %v4487_v14 = vadd.f32 %v8078_v40, %v4417_v10  ;;  %v4426_v10 = vmul.f32 %v8438_v32, %v8075_v42 }
 0x3e6   :  { %v6135_v50 = vpop.eup %6134  ;;  %6154 = vtanh.f32 %v4479_v8  ;;  %4596 = vst [vmem:[#allocation4 + $0x38] sm:$0xff] %v6133_v2  ;;  %v4488_v8 = vadd.f32 %v8078_v40, %v4418_v49  ;;  %v4427_v49 = vmul.f32 %v8439_v27, %v8075_v42 }
 0x3e7   :  { %v6137_v6 = vpop.eup %6136  ;;  %6156 = vtanh.f32 %v4480_v45  ;;  %4597 = vst [vmem:[#allocation4 + $0x40] sm:$0xff] %v6135_v50  ;;  %v4489_v45 = vadd.f32 %v8078_v40, %v4419_v21  ;;  %v4496_v16 = vadd.f32 %v8078_v40, %v4426_v10 }
 0x3e8   :  { %v6139_v25 = vpop.eup %6138  ;;  %6158 = vtanh.f32 %v4481_v1  ;;  %4598 = vst [vmem:[#allocation4 + $0x48] sm:$0xff] %v6137_v6  ;;  %v4490_v1 = vadd.f32 %v8078_v40, %v4420_v38 }
 0x3e9   :  { %v6141_v41 = vpop.eup %6140  ;;  %6160 = vtanh.f32 %v4482_v33  ;;  %4599 = vst [vmem:[#allocation4 + $0x50] sm:$0xff] %v6139_v25  ;;  %v4491_v33 = vadd.f32 %v8078_v40, %v4421_v48 }
 0x3ea   :  { %v6143_v22 = vpop.eup %6142  ;;  %6162 = vtanh.f32 %v4483_v11  ;;  %4600 = vst [vmem:[#allocation4 + $0x58] sm:$0xff] %v6141_v41  ;;  %v4492_v11 = vadd.f32 %v8078_v40, %v4422_v60 }
 0x3eb   :  { %v6145_v17 = vpop.eup %6144  ;;  %6164 = vtanh.f32 %v4484_v57  ;;  %4601 = vst [vmem:[#allocation4 + $0x60] sm:$0xff] %v6143_v22  ;;  %v4493_v57 = vadd.f32 %v8078_v40, %v4423_v59 }
 0x3ec   :  { %v6147_v35 = vpop.eup %6146  ;;  %6166 = vtanh.f32 %v4485_v34  ;;  %4602 = vst [vmem:[#allocation4 + $0x68] sm:$0xff] %v6145_v17  ;;  %v4494_v34 = vadd.f32 %v8078_v40, %v4424_v20 }
 0x3ed   :  { %v6149_v56 = vpop.eup %6148  ;;  %6168 = vtanh.f32 %v4486_v54  ;;  %4603 = vst [vmem:[#allocation4 + $0x70] sm:$0xff] %v6147_v35  ;;  %v4495_v54 = vadd.f32 %v8078_v40, %v4425_v47 }
 0x3ee   :  { %v6151_v2 = vpop.eup %6150  ;;  %6170 = vtanh.f32 %v4487_v14  ;;  %4604 = vst [vmem:[#allocation4 + $0x78] sm:$0xff] %v6149_v56  ;;  %v4497_v14 = vadd.f32 %v8078_v40, %v4427_v49 }
 0x3ef   :  { %v6153_v50 = vpop.eup %6152  ;;  %6172 = vtanh.f32 %v4488_v8  ;;  %4605 = vst [vmem:[#allocation4 + $0x80] sm:$0xff] %v6151_v2 }
 0x3f0   :  { %v6155_v6 = vpop.eup %6154  ;;  %6174 = vtanh.f32 %v4489_v45  ;;  %4606 = vst [vmem:[#allocation4 + $0x88] sm:$0xff] %v6153_v50 }
 0x3f1   :  { %v6157_v25 = vpop.eup %6156  ;;  %6176 = vtanh.f32 %v4490_v1  ;;  %4607 = vst [vmem:[#allocation4 + $0x90] sm:$0xff] %v6155_v6 }
 0x3f2   :  { %v6159_v41 = vpop.eup %6158  ;;  %6178 = vtanh.f32 %v4491_v33  ;;  %4608 = vst [vmem:[#allocation4 + $0x98] sm:$0xff] %v6157_v25 }
 0x3f3   :  { %v6161_v22 = vpop.eup %6160  ;;  %6180 = vtanh.f32 %v4492_v11  ;;  %4609 = vst [vmem:[#allocation4 + $0xa0] sm:$0xff] %v6159_v41 }
 0x3f4   :  { %v6163_v21 = vpop.eup %6162  ;;  %6182 = vtanh.f32 %v4493_v57  ;;  %4610 = vst [vmem:[#allocation4 + $0xa8] sm:$0xff] %v6161_v22 }
 0x3f5   :  { %v6165_v17 = vpop.eup %6164  ;;  %6184 = vtanh.f32 %v4494_v34  ;;  %4611 = vst [vmem:[#allocation4 + $0xb0] sm:$0xff] %v6163_v21 }
 0x3f6   :  { %v6167_v31 = vpop.eup %6166  ;;  %6186 = vtanh.f32 %v4495_v54  ;;  %4612 = vst [vmem:[#allocation4 + $0xb8] sm:$0xff] %v6165_v17 }
 0x3f7   :  { %v6169_v42 = vpop.eup %6168  ;;  %6188 = vtanh.f32 %v4496_v16  ;;  %4613 = vst [vmem:[#allocation4 + $0xc0] sm:$0xff] %v6167_v31 }
 0x3f8   :  { %v6171_v38 = vpop.eup %6170  ;;  %6190 = vtanh.f32 %v4497_v14  ;;  %4614 = vst [vmem:[#allocation4 + $0xc8] sm:$0xff] %v6169_v42 }
 0x3f9   :  { %v6173_v8 = vpop.eup %6172  ;;  %6192 = vtanh.f32 %v8155_v51  ;;  %4615 = vst [vmem:[#allocation4 + $0xd0] sm:$0xff] %v6171_v38 }
 0x3fa   :  { %v6175_v35 = vpop.eup %6174  ;;  %6194 = vtanh.f32 %v8158_v43  ;;  %4616 = vst [vmem:[#allocation4 + $0xd8] sm:$0xff] %v6173_v8 }
 0x3fb   :  { %v6177_v40 = vpop.eup %6176  ;;  %6196 = vtanh.f32 %v8161_v62  ;;  %4617 = vst [vmem:[#allocation4 + $0xe0] sm:$0xff] %v6175_v35 }
 0x3fc   :  { %v6179_v9 = vpop.eup %6178  ;;  %6198 = vtanh.f32 %v8164_v13  ;;  %4618 = vst [vmem:[#allocation4 + $0xe8] sm:$0xff] %v6177_v40 }
 0x3fd   :  { %v6181_v48 = vpop.eup %6180  ;;  %6200 = vtanh.f32 %v8167_v23  ;;  %4619 = vst [vmem:[#allocation4 + $0xf0] sm:$0xff] %v6179_v9 }
 0x3fe   :  { %v6183_v45 = vpop.eup %6182  ;;  %6202 = vtanh.f32 %v8170_v18  ;;  %4620 = vst [vmem:[#allocation4 + $0xf8] sm:$0xff] %v6181_v48 }
 0x3ff   :  { %v6185_v51 = vpop.eup %6184  ;;  %6204 = vtanh.f32 %v8173_v24  ;;  %4621 = vst [vmem:[#allocation4 + $0x100] sm:$0xff] %v6183_v45 }
 0x400   :  { %v6187_v43 = vpop.eup %6186  ;;  %6206 = vtanh.f32 %v8176_v3  ;;  %4622 = vst [vmem:[#allocation4 + $0x108] sm:$0xff] %v6185_v51 }
 0x401   :  { %v6189_v62 = vpop.eup %6188  ;;  %6208 = vtanh.f32 %v8179_v36  ;;  %4623 = vst [vmem:[#allocation4 + $0x110] sm:$0xff] %v6187_v43 }
 0x402   :  { %v6191_v13 = vpop.eup %6190  ;;  %6210 = vtanh.f32 %v8182_v28  ;;  %4624 = vst [vmem:[#allocation4 + $0x118] sm:$0xff] %v6189_v62 }
 0x403   :  { %v6193_v23 = vpop.eup %6192  ;;  %6212 = vtanh.f32 %v8185_v61  ;;  %4625 = vst [vmem:[#allocation4 + $0x120] sm:$0xff] %v6191_v13 }
 0x404   :  { %v6195_v18 = vpop.eup %6194  ;;  %6214 = vtanh.f32 %v8188_v26  ;;  %4626 = vst [vmem:[#allocation4 + $0x128] sm:$0xff] %v6193_v23 }
 0x405   :  { %v6197_v24 = vpop.eup %6196  ;;  %6216 = vtanh.f32 %v8191_v58  ;;  %4627 = vst [vmem:[#allocation4 + $0x130] sm:$0xff] %v6195_v18 }
 0x406   :  { %v6199_v3 = vpop.eup %6198  ;;  %6218 = vtanh.f32 %v8194_v7  ;;  %4628 = vst [vmem:[#allocation4 + $0x138] sm:$0xff] %v6197_v24 }
 0x407   :  { %v6201_v36 = vpop.eup %6200  ;;  %6220 = vtanh.f32 %v8197_v39  ;;  %4629 = vst [vmem:[#allocation4 + $0x140] sm:$0xff] %v6199_v3 }
 0x408   :  { %v6203_v28 = vpop.eup %6202  ;;  %6222 = vtanh.f32 %v8200_v15  ;;  %4630 = vst [vmem:[#allocation4 + $0x148] sm:$0xff] %v6201_v36 }
 0x409   :  { %v6205_v61 = vpop.eup %6204  ;;  %6224 = vtanh.f32 %v8203_v44  ;;  %4631 = vst [vmem:[#allocation4 + $0x150] sm:$0xff] %v6203_v28 }
 0x40a   :  { %v6207_v26 = vpop.eup %6206  ;;  %6226 = vtanh.f32 %v8206_v19  ;;  %4632 = vst [vmem:[#allocation4 + $0x158] sm:$0xff] %v6205_v61 }
 0x40b   :  { %v6209_v58 = vpop.eup %6208  ;;  %6228 = vtanh.f32 %v8209_v53  ;;  %4633 = vst [vmem:[#allocation4 + $0x160] sm:$0xff] %v6207_v26 }
 0x40c   :  { %v6211_v7 = vpop.eup %6210  ;;  %6230 = vtanh.f32 %v8212_v29  ;;  %4634 = vst [vmem:[#allocation4 + $0x168] sm:$0xff] %v6209_v58 }
 0x40d   :  { %v6213_v39 = vpop.eup %6212  ;;  %6232 = vtanh.f32 %v8215_v0  ;;  %4635 = vst [vmem:[#allocation4 + $0x170] sm:$0xff] %v6211_v7 }
 0x40e   :  { %v6215_v15 = vpop.eup %6214  ;;  %6234 = vtanh.f32 %v8218_v12  ;;  %4636 = vst [vmem:[#allocation4 + $0x178] sm:$0xff] %v6213_v39 }
 0x40f   :  { %v6217_v44 = vpop.eup %6216  ;;  %6236 = vtanh.f32 %v8221_v30  ;;  %4637 = vst [vmem:[#allocation4 + $0x180] sm:$0xff] %v6215_v15 }
 0x410   :  { %v6219_v19 = vpop.eup %6218  ;;  %6238 = vtanh.f32 %v8224_v52  ;;  %4638 = vst [vmem:[#allocation4 + $0x188] sm:$0xff] %v6217_v44 }
 0x411   :  { %v6221_v53 = vpop.eup %6220  ;;  %6240 = vtanh.f32 %v8227_v63  ;;  %4639 = vst [vmem:[#allocation4 + $0x190] sm:$0xff] %v6219_v19 }
 0x412   :  { %v6223_v29 = vpop.eup %6222  ;;  %6242 = vtanh.f32 %v8230_v5  ;;  %4640 = vst [vmem:[#allocation4 + $0x198] sm:$0xff] %v6221_v53 }
 0x413   :  { %v6225_v0 = vpop.eup %6224  ;;  %4641 = vst [vmem:[#allocation4 + $0x1a0] sm:$0xff] %v6223_v29 }
 0x414   :  { %v6227_v12 = vpop.eup %6226  ;;  %4642 = vst [vmem:[#allocation4 + $0x1a8] sm:$0xff] %v6225_v0 }
 0x415   :  { %v6229_v56 = vpop.eup %6228  ;;  %4643 = vst [vmem:[#allocation4 + $0x1b0] sm:$0xff] %v6227_v12 }
 0x416   :  { %v6231_v30 = vpop.eup %6230  ;;  %4644 = vst [vmem:[#allocation4 + $0x1b8] sm:$0xff] %v6229_v56 }
 0x417   :  { %v6233_v46 = vpop.eup %6232  ;;  %4645 = vst [vmem:[#allocation4 + $0x1c0] sm:$0xff] %v6231_v30 }
 0x418   :  { %v6235_v52 = vpop.eup %6234  ;;  %4646 = vst [vmem:[#allocation4 + $0x1c8] sm:$0xff] %v6233_v46 }
 0x419   :  { %v6237_v63 = vpop.eup %6236  ;;  %4647 = vst [vmem:[#allocation4 + $0x1d0] sm:$0xff] %v6235_v52 }
 0x41a   :  { %v6239_v60 = vpop.eup %6238  ;;  %4648 = vst [vmem:[#allocation4 + $0x1d8] sm:$0xff] %v6237_v63 }
 0x41b   :  { %v6241_v5 = vpop.eup %6240  ;;  %4649 = vst [vmem:[#allocation4 + $0x1e0] sm:$0xff] %v6239_v60 }
 0x41c   :  { %v6243_v1 = vpop.eup %6242  ;;  %4650 = vst [vmem:[#allocation4 + $0x1e8] sm:$0xff] %v6241_v5 }
 0x41d   :  { %4651 = vst [vmem:[#allocation4 + $0x1f0] sm:$0xff] %v6243_v1 }
 0x41e   :  { %6271 = shalt.err (!%p6268_p4)
}
 0x41f   :  { %s6272_s9 = scalar_lea.hbm %s8367_s4, 8192 }
 0x420   :  { %p6273_p5 = scmp.ne.s32.totalorder %s8367_s4, %s6272_s9  ;;  %p6276_p6 = scmp.lt.u32.totalorder %s6272_s9, %s8367_s4 }
 0x422   :  { %p6278_p7 = pnand %p6276_p6, %p6273_p5 }
 0x424   :  { %6281 = shalt.err (!%p6278_p7)
}
 0x425   :  { %s6287_s14 = smov 128   ;;  %s6288_s15 = smov 8  }
 0x426   :  { %4664 = dma.vmem_to_hbm [thread:$0]  %s4659_s3, 8192, %s8367_s4, [#allocation5], %s6287_s14, %s6287_s14, %s6288_s15  }
 0x427   :  { %6282 = dma.done.wait [#allocation5], 8192  }
 0x428   :  { %6283 = vsyncadd [#allocation5], 4294959104 }
 0x429   :  { %4668 = vsyncpa [#allocation5], 1 }

</bundles_post_ra>
